<compile_context>
chip_gen: v6e
topology: v6e:2x2x1
jax: 0.10.0
libtpu: 0.0.40
codegen_flags: <defaults>
</compile_context>

<pallas_src>
import functools

import jax
import jax.numpy as jnp
from jax.experimental import pallas as pl
from jax.experimental.pallas import tpu as pltpu


def _round_up(x, m):
    return (x + m - 1) // m * m


def _pad_last(a, target):
    pad = target - a.shape[-1]
    if pad <= 0:
        return a
    return jnp.pad(a, [(0, 0)] * (a.ndim - 1) + [(0, pad)])


def _vmem_limit_bytes():
    """Generation-aware VMEM limit: ~60% on 64 MiB parts (v7x), ~75% on 128 MiB parts."""
    cap = 64 * 1024 * 1024                      # conservative fallback (safe on every gen)
    try:
        cap = int(pltpu.get_tpu_info().vmem_capacity_bytes)
    except Exception:
        pass
    if cap <= 64 * 1024 * 1024:
        return max(int(cap * 0.60), 16 * 1024 * 1024)
    return int(cap * 0.75)


def _choose_tile_h(B, H, W, half, CIN_P, VAL_P, CP, HID_P, nh, kk,
                   vmem_limit, weight_bytes):
    """Largest H-tile whose (conservative) VMEM working set fits the budget."""
    Wp = W + 2 * half
    budget = max(vmem_limit - weight_bytes - (4 << 20), 2 << 20)

    def est(th):
        R = th + 2 * half
        n = th * W
        b = 2 * n * CIN_P * 2                    # x tile (bf16, double-buffered)
        b += 2 * R * Wp * VAL_P * 2              # value halo window (bf16, double-buffered)
        b += 2 * n * VAL_P * 2                   # prediction tile (bf16, double-buffered)
        b += R * Wp * (2 * CP * 2 + CP * 4)      # k|v map (bf16) + value-path f32 temps
        b += n * (5 * CP * 4 + HID_P * 4)        # q / shortcut / acc / gather tmp / MLP hidden (f32)
        b += 2 * n * nh * kk * 4                 # per-offset logits / probs
        return b

    tile_h = 1
    for th in range(1, H + 1):
        if est(th) <= budget:
            tile_h = th
        else:
            break
    # Keep >= 2 grid steps when possible so both v7x TensorCores get work.
    if B * ((H + tile_h - 1) // tile_h) < 2 and H > 1:
        tile_h = (H + 1) // 2
    return max(1, min(tile_h, H))


def pna_level_kernel(
    x_ref, vwin_ref,
    w_patch_ref, w_value_ref,
    g1_ref, b1_ref, g12_ref, b12_ref,
    wq_ref, bq_ref, wkv_ref, bkv_ref, wp_ref, bp_ref,
    g2_ref, b2_ref, wm1_ref, bm1_ref, wm2_ref, bm2_ref,
    go_ref, bo_ref, wseg_ref, bseg_ref,
    out_ref,
    *, tile_h, W, half, CP, C_real, num_heads, ksize,
):
    f32, bf16 = jnp.float32, jnp.bfloat16
    R = tile_h + 2 * half
    Wp = W + 2 * half
    n = tile_h * W

    def mm(a, w_ref, b_ref=None):
        y = jnp.dot(a.astype(bf16), w_ref[...], preferred_element_type=f32)
        if b_ref is not None:
            y = y + b_ref[...]
        return y

    def ln(t, g_ref, b_ref, eps=1e-5):
        # LayerNorm over the C_real real channels only (padded lanes are exactly
        # zero and carry zero gamma/beta, so they stay zero through the norm).
        inv_c = 1.0 / C_real
        mu = jnp.sum(t, axis=-1, keepdims=True) * inv_c
        var = jnp.sum(t * t, axis=-1, keepdims=True) * inv_c - mu * mu
        return (t - mu) * jax.lax.rsqrt(var + eps) * g_ref[...] + b_ref[...]

    # ------------------------- query path (tile rows) -------------------------
    x = x_ref[0].reshape(n, x_ref.shape[-1])
    query = mm(x, w_patch_ref)                       # patch_embed (1x1 conv, no bias)
    shortcut = query                                 # atten1 == Identity (use_sa=False)
    q = mm(ln(query, g1_ref, b1_ref), wq_ref, bq_ref)  # norm1 + q proj (scale folded into wq)

    # ---------- value path: host-built, edge-clamped halo window --------------
    v = vwin_ref[0, 0].reshape(R * Wp, vwin_ref.shape[-1])
    val = mm(v, w_value_ref)                         # value_embed (1x1 conv, no bias)
    kv = mm(ln(val, g12_ref, b12_ref), wkv_ref, bkv_ref)  # norm1_2 + fused k|v proj
    kmap = kv[:, :CP].astype(bf16).reshape(R, Wp, CP)
    vmap = kv[:, CP:].astype(bf16).reshape(R, Wp, CP)

    # per-head helpers (only materialized when num_heads > 1)
    nh = num_heads
    if nh > 1:
        dh = C_real // nh
        c_i = jax.lax.broadcasted_iota(jnp.int32, (CP, nh), 0)
        h_i = jax.lax.broadcasted_iota(jnp.int32, (CP, nh), 1)
        hmat = jnp.where((c_i < C_real) & (c_i // dh == h_i), 1.0, 0.0).astype(bf16)
        c_j = jax.lax.broadcasted_iota(jnp.int32, (nh, CP), 1)
        h_j = jax.lax.broadcasted_iota(jnp.int32, (nh, CP), 0)
        hmat_t = jnp.where((c_j < C_real) & (c_j // dh == h_j), 1.0, 0.0).astype(bf16)

    def head_sum(prod):                              # (n, CP) f32 -> (n, nh) f32
        if nh == 1:
            return jnp.sum(prod, axis=-1, keepdims=True)
        return jnp.dot(prod.astype(bf16), hmat, preferred_element_type=f32)

    def head_bcast(a):                               # (n, nh) -> broadcastable to (n, CP)
        if nh == 1:
            return a
        return jnp.dot(a.astype(bf16), hmat_t, preferred_element_type=f32)

    # ---- neighborhood cross attention: slice-only gathers, two-pass softmax ----
    # TODO(synk): NAT relative-position bias omitted (class source unavailable).
    # TODO(synk): NeighborhoodCrossAttention source unavailable; image borders use
    #             edge-replicated k/v (centered window); interior pixels are exact NAT.
    s_list = []
    for di in range(ksize):
        for dj in range(ksize):
            k_o = kmap[di:di + tile_h, dj:dj + W].reshape(n, CP)
            s_list.append(head_sum(q * k_o.astype(f32)))
    m = s_list[0]
    for s in s_list[1:]:
        m = jnp.maximum(m, s)
    p_list = [jnp.exp(s - m) for s in s_list]
    l = p_list[0]
    for p in p_list[1:]:
        l = l + p

    acc = jnp.zeros((n, CP), f32)
    idx = 0
    for di in range(ksize):
        for dj in range(ksize):
            v_o = vmap[di:di + tile_h, dj:dj + W].reshape(n, CP)
            acc = acc + head_bcast(p_list[idx]) * v_o.astype(f32)
            idx += 1
    attn = acc * head_bcast(pl.reciprocal(l, approx=True))

    # ---------- proj + residual, MLP + residual, out_norm, conv_seg ------------
    x1 = shortcut + mm(attn, wp_ref, bp_ref)
    hid = mm(ln(x1, g2_ref, b2_ref), wm1_ref, bm1_ref)
    # TODO(synk): PyTorch nn.GELU() defaults to exact erf; tanh approx used for lowering safety.
    hid = jax.nn.gelu(hid, approximate=True)
    x1 = x1 + mm(hid, wm2_ref, bm2_ref)
    x1 = ln(x1, go_ref, bo_ref)                      # out_norm
    pred = mm(x1, wseg_ref, bseg_ref)                # conv_seg (lane-dense, 128-padded classes)
    out_ref[0] = pred.reshape(tile_h, W, pred.shape[-1]).astype(out_ref.dtype)


_WEIGHT_ORDER = (
    "w_patch", "w_value",
    "g1", "b1", "g12", "b12",
    "wq", "bq", "wkv", "bkv", "wp", "bp",
    "g2", "b2", "wm1", "bm1", "wm2", "bm2",
    "go", "bo", "wseg", "bseg",
)


def pna_level_apply(x_nhwc, value_nhwc, params, ksize):
    """One feature level: patch/value embed + PNALayer + conv_seg.  Grid = (batch, H tiles)."""
    B, H, W, CIN_P = x_nhwc.shape
    VAL_P = value_nhwc.shape[-1]
    CP = params["wq"].shape[0]
    HID_P = params["wm1"].shape[1]
    C_real = int(params["C"])
    num_heads = int(params["num_heads"])
    assert ksize % 2 == 1
    half = ksize // 2
    kk = ksize * ksize

    weights = [params[k] for k in _WEIGHT_ORDER]
    weight_bytes = 2 * int(sum(int(w.size) * w.dtype.itemsize for w in weights))

    vmem_limit = _vmem_limit_bytes()
    tile_h = _choose_tile_h(B, H, W, half, CIN_P, VAL_P, CP, HID_P,
                            num_heads, kk, vmem_limit, weight_bytes)
    T = (H + tile_h - 1) // tile_h
    H_pad = T * tile_h
    R = tile_h + 2 * half
    Wp = W + 2 * half

    # Host-side: H padded (edge) to a tile multiple; value stream pre-clamped
    # (edge replication) along H and W and cut into thin per-tile halo windows,
    # so the kernel never re-fetches whole neighbor tiles and never re-clamps
    # borders per window offset.
    if H_pad > H:
        x_nhwc = jnp.pad(x_nhwc, ((0, 0), (0, H_pad - H), (0, 0), (0, 0)), mode="edge")
    vpad = jnp.pad(value_nhwc,
                   ((0, 0), (half, half + H_pad - H), (half, half), (0, 0)),
                   mode="edge")
    vwin = jnp.stack([vpad[:, t * tile_h: t * tile_h + R] for t in range(T)],
                     axis=1)                          # (B, T, R, W+2*half, VAL_P)

    def full_spec(a):
        nd = a.ndim
        return pl.BlockSpec(a.shape, lambda b, t, _nd=nd: (0,) * _nd)

    in_specs = [
        pl.BlockSpec((1, tile_h, W, CIN_P), lambda b, t: (b, t, 0, 0)),
        pl.BlockSpec((1, 1, R, Wp, VAL_P), lambda b, t: (b, t, 0, 0, 0)),
    ] + [full_spec(w) for w in weights]

    kernel = functools.partial(
        pna_level_kernel, tile_h=tile_h, W=W, half=half, CP=CP,
        C_real=C_real, num_heads=num_heads, ksize=ksize)

    out = pl.pallas_call(
        kernel,
        out_shape=jax.ShapeDtypeStruct((B, H_pad, W, VAL_P), jnp.bfloat16),
        grid=(B, T),
        in_specs=in_specs,
        out_specs=pl.BlockSpec((1, tile_h, W, VAL_P), lambda b, t: (b, t, 0, 0)),
        compiler_params=pltpu.CompilerParams(
            dimension_semantics=("parallel", "parallel"),
            vmem_limit_bytes=int(vmem_limit),
        ),
    )(x_nhwc, vwin, *weights)
    return out[:, :H]


def init_level_params(key, Cin, C, ncls, num_heads=None, mlp_ratio=4.0):
    """Kernel-ready (128-lane padded / bf16 / fused / scale-folded) parameters for one level."""
    if num_heads is None:
        num_heads = max(1, C // 32)                  # PNAHead: num_heads = embed_dim // 32
    hid = int(C * mlp_ratio)
    CIN_P = _round_up(Cin, 128)
    VAL_P = _round_up(ncls, 128)
    CP = _round_up(C, 128)
    HID_P = _round_up(hid, 128)
    scale = float((C // num_heads) ** -0.5)
    ks = jax.random.split(key, 9)
    bf = jnp.bfloat16

    def dense(k, fan_in, shape):
        return jax.random.normal(k, shape, jnp.float32) * (fan_in ** -0.5)

    def pad2(w, r, c):
        return jnp.pad(w, ((0, r - w.shape[0]), (0, c - w.shape[1])))

    def vec(m, mp, fill):
        v = jnp.full((1, m), fill, jnp.float32)
        return jnp.pad(v, ((0, 0), (0, mp - m)))

    w_patch = pad2(dense(ks[0], Cin, (Cin, C)), CIN_P, CP).astype(bf)
    w_value = pad2(dense(ks[1], ncls, (ncls, C)), VAL_P, CP).astype(bf)
    wq = pad2(dense(ks[2], C, (C, C)) * scale, CP, CP).astype(bf)   # attention scale folded
    wk = pad2(dense(ks[3], C, (C, C)), CP, CP)
    wv = pad2(dense(ks[4], C, (C, C)), CP, CP)
    wkv = jnp.concatenate([wk, wv], axis=1).astype(bf)              # (CP, 2*CP), fused k | v
    wp = pad2(dense(ks[5], C, (C, C)), CP, CP).astype(bf)
    wm1 = pad2(dense(ks[6], C, (C, hid)), CP, HID_P).astype(bf)
    wm2 = pad2(dense(ks[7], hid, (hid, C)), HID_P, CP).astype(bf)
    wseg = pad2(jax.random.normal(ks[8], (C, ncls), jnp.float32) * 0.001, CP, VAL_P).astype(bf)

    ones_c = vec(C, CP, 1.0)      # LayerNorm gamma: 1 on real channels, 0 on padding
    zeros_c = vec(C, CP, 0.0)

    return {
        "w_patch": w_patch, "w_value": w_value,
        "g1": ones_c, "b1": zeros_c, "g12": ones_c, "b12": zeros_c,
        "wq": wq, "bq": zeros_c,
        "wkv": wkv, "bkv": jnp.zeros((1, 2 * CP), jnp.float32),
        "wp": wp, "bp": zeros_c,
        "g2": ones_c, "b2": zeros_c,
        "wm1": wm1, "bm1": jnp.zeros((1, HID_P), jnp.float32),
        "wm2": wm2, "bm2": zeros_c,
        "go": ones_c, "bo": zeros_c,
        "wseg": wseg, "bseg": jnp.zeros((1, VAL_P), jnp.float32),
        "num_heads": num_heads, "C": C, "ncls": ncls, "cin": Cin,
    }


def pna_head_forward(coarse_logits, features, params, in_features, window_size,
                     common_stride, upsample_mode="bilinear"):
    """Inference branch of PNAHead.forward (NCHW logits in / NCHW logits out)."""
    B, ncls = coarse_logits.shape[0], coarse_logits.shape[1]
    VAL_P = _round_up(ncls, 128)
    method = "bilinear" if upsample_mode == "bilinear" else "nearest"

    # Inter-level value stream kept at the real `ncls` channel count in bf16
    # (cheap resize); padded to 128 lanes only at the kernel boundary.
    value = jnp.transpose(coarse_logits, (0, 2, 3, 1)).astype(jnp.bfloat16)
    pred = None
    H = W = None
    for f in in_features[::-1]:
        x = features[f]                               # (B, Cin, H, W)
        _, Cin, H, W = x.shape
        ks = window_size[in_features.index(f)]
        value = jax.image.resize(value, (B, H, W, ncls), method=method)
        x_nhwc = _pad_last(jnp.transpose(x, (0, 2, 3, 1)),
                           _round_up(Cin, 128)).astype(jnp.bfloat16)
        pred = pna_level_apply(x_nhwc, _pad_last(value, VAL_P), params[f], ks)
        value = pred[..., :ncls]                      # bf16 prediction feeds the next level

    y = value.astype(jnp.float32)                     # last processed level's logits
    y = jax.image.resize(
        y, (B, H * common_stride, W * common_stride, ncls), method="bilinear")
    return jnp.transpose(y, (0, 3, 1, 2)), {}


if __name__ == "__main__":
    key = jax.random.PRNGKey(0)
    B = 2
    num_classes = 4
    in_features = ["p2", "p3"]          # processed in reverse ("p3" first)
    embed_dims = [32, 32]               # num_heads = embed_dim // 32 = 1
    window_size = [3, 3]
    common_stride = 4
    feat_shapes = {"p2": (B, 8, 16, 16), "p3": (B, 8, 8, 8)}

    k0, kp2, kp3, kf2, kf3 = jax.random.split(key, 5)
    coarse = jax.random.normal(k0, (B, num_classes, 8, 8), jnp.float32)
    features = {
        "p2": jax.random.normal(kf2, feat_shapes["p2"], jnp.float32),
        "p3": jax.random.normal(kf3, feat_shapes["p3"], jnp.float32),
    }
    params = {
        "p2": init_level_params(kp2, feat_shapes["p2"][1], embed_dims[0], num_classes),
        "p3": init_level_params(kp3, feat_shapes["p3"][1], embed_dims[1], num_classes),
    }

    y, losses = pna_head_forward(coarse, features, params, in_features,
                                 window_size, common_stride)
    jax.block_until_ready(y)
    assert y.shape == (B, num_classes, 16 * common_stride, 16 * common_stride)
    assert losses == {}
    assert bool(jnp.all(jnp.isfinite(y)))
    print("KERNEL_OK")
</pallas_src>

<mosaic_0001>
module attributes {stable_mosaic.version = 11 : i64} {
  func.func @pna_level_kernel(%arg0: i32, %arg1: i32, %arg2: memref<1x8x8x128xbf16, #tpu.memory_space<vmem>>, %arg3: memref<1x1x10x10x128xbf16, #tpu.memory_space<vmem>>, %arg4: memref<128x128xbf16, #tpu.memory_space<vmem>>, %arg5: memref<128x128xbf16, #tpu.memory_space<vmem>>, %arg6: memref<1x128xf32, #tpu.memory_space<vmem>>, %arg7: memref<1x128xf32, #tpu.memory_space<vmem>>, %arg8: memref<1x128xf32, #tpu.memory_space<vmem>>, %arg9: memref<1x128xf32, #tpu.memory_space<vmem>>, %arg10: memref<128x128xbf16, #tpu.memory_space<vmem>>, %arg11: memref<1x128xf32, #tpu.memory_space<vmem>>, %arg12: memref<128x256xbf16, #tpu.memory_space<vmem>>, %arg13: memref<1x256xf32, #tpu.memory_space<vmem>>, %arg14: memref<128x128xbf16, #tpu.memory_space<vmem>>, %arg15: memref<1x128xf32, #tpu.memory_space<vmem>>, %arg16: memref<1x128xf32, #tpu.memory_space<vmem>>, %arg17: memref<1x128xf32, #tpu.memory_space<vmem>>, %arg18: memref<128x128xbf16, #tpu.memory_space<vmem>>, %arg19: memref<1x128xf32, #tpu.memory_space<vmem>>, %arg20: memref<128x128xbf16, #tpu.memory_space<vmem>>, %arg21: memref<1x128xf32, #tpu.memory_space<vmem>>, %arg22: memref<1x128xf32, #tpu.memory_space<vmem>>, %arg23: memref<1x128xf32, #tpu.memory_space<vmem>>, %arg24: memref<128x128xbf16, #tpu.memory_space<vmem>>, %arg25: memref<1x128xf32, #tpu.memory_space<vmem>>, %arg26: memref<1x8x8x128xbf16, #tpu.memory_space<vmem>>) attributes {dimension_semantics = [#tpu.dimension_semantics<parallel>, #tpu.dimension_semantics<parallel>], iteration_bounds = array<i64: 2, 1>, scalar_prefetch = 0 : i64, scratch_operands = 0 : i64, tpu.core_type = #tpu.core_type<tc>, window_params = [{transform_indices = @transform_0, window_bounds = array<i64: 1, 8, 8, 128>}, {transform_indices = @transform_1, window_bounds = array<i64: 1, 1, 10, 10, 128>}, {pipeline_mode = #tpu.pipeline_mode<synchronous>, transform_indices = @transform_2, window_bounds = array<i64: 128, 128>}, {pipeline_mode = #tpu.pipeline_mode<synchronous>, transform_indices = @transform_3, window_bounds = array<i64: 128, 128>}, {pipeline_mode = #tpu.pipeline_mode<synchronous>, transform_indices = @transform_4, window_bounds = array<i64: 1, 128>}, {pipeline_mode = #tpu.pipeline_mode<synchronous>, transform_indices = @transform_5, window_bounds = array<i64: 1, 128>}, {pipeline_mode = #tpu.pipeline_mode<synchronous>, transform_indices = @transform_6, window_bounds = array<i64: 1, 128>}, {pipeline_mode = #tpu.pipeline_mode<synchronous>, transform_indices = @transform_7, window_bounds = array<i64: 1, 128>}, {pipeline_mode = #tpu.pipeline_mode<synchronous>, transform_indices = @transform_8, window_bounds = array<i64: 128, 128>}, {pipeline_mode = #tpu.pipeline_mode<synchronous>, transform_indices = @transform_9, window_bounds = array<i64: 1, 128>}, {pipeline_mode = #tpu.pipeline_mode<synchronous>, transform_indices = @transform_10, window_bounds = array<i64: 128, 256>}, {pipeline_mode = #tpu.pipeline_mode<synchronous>, transform_indices = @transform_11, window_bounds = array<i64: 1, 256>}, {pipeline_mode = #tpu.pipeline_mode<synchronous>, transform_indices = @transform_12, window_bounds = array<i64: 128, 128>}, {pipeline_mode = #tpu.pipeline_mode<synchronous>, transform_indices = @transform_13, window_bounds = array<i64: 1, 128>}, {pipeline_mode = #tpu.pipeline_mode<synchronous>, transform_indices = @transform_14, window_bounds = array<i64: 1, 128>}, {pipeline_mode = #tpu.pipeline_mode<synchronous>, transform_indices = @transform_15, window_bounds = array<i64: 1, 128>}, {pipeline_mode = #tpu.pipeline_mode<synchronous>, transform_indices = @transform_16, window_bounds = array<i64: 128, 128>}, {pipeline_mode = #tpu.pipeline_mode<synchronous>, transform_indices = @transform_17, window_bounds = array<i64: 1, 128>}, {pipeline_mode = #tpu.pipeline_mode<synchronous>, transform_indices = @transform_18, window_bounds = array<i64: 128, 128>}, {pipeline_mode = #tpu.pipeline_mode<synchronous>, transform_indices = @transform_19, window_bounds = array<i64: 1, 128>}, {pipeline_mode = #tpu.pipeline_mode<synchronous>, transform_indices = @transform_20, window_bounds = array<i64: 1, 128>}, {pipeline_mode = #tpu.pipeline_mode<synchronous>, transform_indices = @transform_21, window_bounds = array<i64: 1, 128>}, {pipeline_mode = #tpu.pipeline_mode<synchronous>, transform_indices = @transform_22, window_bounds = array<i64: 128, 128>}, {pipeline_mode = #tpu.pipeline_mode<synchronous>, transform_indices = @transform_23, window_bounds = array<i64: 1, 128>}, {transform_indices = @transform_24, window_bounds = array<i64: 1, 8, 8, 128>}]} {
    %c0 = arith.constant 0 : index
    %c0_0 = arith.constant 0 : index
    %c0_1 = arith.constant 0 : index
    %c0_2 = arith.constant 0 : index
    %0 = vector.load %arg2[%c0, %c0_0, %c0_1, %c0_2] : memref<1x8x8x128xbf16, #tpu.memory_space<vmem>>, vector<1x8x8x128xbf16>
    %1 = vector.shape_cast %0 : vector<1x8x8x128xbf16> to vector<8x8x128xbf16>
    %2 = vector.shape_cast %1 : vector<8x8x128xbf16> to vector<64x128xbf16>
    %c0_3 = arith.constant 0 : index
    %c0_4 = arith.constant 0 : index
    %3 = vector.load %arg4[%c0_3, %c0_4] : memref<128x128xbf16, #tpu.memory_space<vmem>>, vector<128x128xbf16>
    %cst = arith.constant dense<0.000000e+00> : vector<64x128xf32>
    %4 = tpu.matmul %2, %3, %cst {dimension_numbers = #tpu.dot_dimension_numbers<[1], [0], [0], [1], [0, 0, 1, 1], [], []>} : vector<64x128xbf16>, vector<128x128xbf16>, vector<64x128xf32> -> vector<64x128xf32>
    %cst_5 = arith.constant dense<0.000000e+00> : vector<64xf32>
    %5 = vector.multi_reduction <add>, %4, %cst_5 [1] : vector<64x128xf32> to vector<64xf32>
    %6 = vector.shape_cast %5 : vector<64xf32> to vector<64x1xf32>
    %cst_6 = arith.constant 3.125000e-02 : f32
    %7 = vector.broadcast %cst_6 : f32 to vector<64x1xf32>
    %8 = arith.mulf %6, %7 : vector<64x1xf32>
    %9 = arith.mulf %4, %4 : vector<64x128xf32>
    %cst_7 = arith.constant dense<0.000000e+00> : vector<64xf32>
    %10 = vector.multi_reduction <add>, %9, %cst_7 [1] : vector<64x128xf32> to vector<64xf32>
    %11 = vector.shape_cast %10 : vector<64xf32> to vector<64x1xf32>
    %cst_8 = arith.constant 3.125000e-02 : f32
    %12 = vector.broadcast %cst_8 : f32 to vector<64x1xf32>
    %13 = arith.mulf %11, %12 : vector<64x1xf32>
    %14 = arith.mulf %8, %8 : vector<64x1xf32>
    %15 = arith.subf %13, %14 : vector<64x1xf32>
    %16 = vector.broadcast %8 : vector<64x1xf32> to vector<64x128xf32>
    %17 = arith.subf %4, %16 : vector<64x128xf32>
    %cst_9 = arith.constant 9.99999974E-6 : f32
    %18 = vector.broadcast %cst_9 : f32 to vector<64x1xf32>
    %19 = arith.addf %15, %18 : vector<64x1xf32>
    %20 = math.rsqrt %19 : vector<64x1xf32>
    %21 = vector.broadcast %20 : vector<64x1xf32> to vector<64x128xf32>
    %22 = arith.mulf %17, %21 : vector<64x128xf32>
    %c0_10 = arith.constant 0 : index
    %c0_11 = arith.constant 0 : index
    %23 = vector.load %arg6[%c0_10, %c0_11] : memref<1x128xf32, #tpu.memory_space<vmem>>, vector<1x128xf32>
    %24 = vector.broadcast %23 : vector<1x128xf32> to vector<64x128xf32>
    %25 = arith.mulf %22, %24 : vector<64x128xf32>
    %c0_12 = arith.constant 0 : index
    %c0_13 = arith.constant 0 : index
    %26 = vector.load %arg7[%c0_12, %c0_13] : memref<1x128xf32, #tpu.memory_space<vmem>>, vector<1x128xf32>
    %27 = vector.broadcast %26 : vector<1x128xf32> to vector<64x128xf32>
    %28 = arith.addf %25, %27 : vector<64x128xf32>
    %29 = arith.truncf %28 : vector<64x128xf32> to vector<64x128xbf16>
    %c0_14 = arith.constant 0 : index
    %c0_15 = arith.constant 0 : index
    %30 = vector.load %arg10[%c0_14, %c0_15] : memref<128x128xbf16, #tpu.memory_space<vmem>>, vector<128x128xbf16>
    %cst_16 = arith.constant dense<0.000000e+00> : vector<64x128xf32>
    %31 = tpu.matmul %29, %30, %cst_16 {dimension_numbers = #tpu.dot_dimension_numbers<[1], [0], [0], [1], [0, 0, 1, 1], [], []>} : vector<64x128xbf16>, vector<128x128xbf16>, vector<64x128xf32> -> vector<64x128xf32>
    %c0_17 = arith.constant 0 : index
    %c0_18 = arith.constant 0 : index
    %32 = vector.load %arg11[%c0_17, %c0_18] : memref<1x128xf32, #tpu.memory_space<vmem>>, vector<1x128xf32>
    %33 = vector.broadcast %32 : vector<1x128xf32> to vector<64x128xf32>
    %34 = arith.addf %31, %33 : vector<64x128xf32>
    %c0_19 = arith.constant 0 : index
    %c0_20 = arith.constant 0 : index
    %c0_21 = arith.constant 0 : index
    %c0_22 = arith.constant 0 : index
    %c0_23 = arith.constant 0 : index
    %35 = vector.load %arg3[%c0_19, %c0_20, %c0_21, %c0_22, %c0_23] : memref<1x1x10x10x128xbf16, #tpu.memory_space<vmem>>, vector<1x1x10x10x128xbf16>
    %36 = vector.shape_cast %35 : vector<1x1x10x10x128xbf16> to vector<10x10x128xbf16>
    %37 = vector.shape_cast %36 : vector<10x10x128xbf16> to vector<100x128xbf16>
    %c0_24 = arith.constant 0 : index
    %c0_25 = arith.constant 0 : index
    %38 = vector.load %arg5[%c0_24, %c0_25] : memref<128x128xbf16, #tpu.memory_space<vmem>>, vector<128x128xbf16>
    %cst_26 = arith.constant dense<0.000000e+00> : vector<100x128xf32>
    %39 = tpu.matmul %37, %38, %cst_26 {dimension_numbers = #tpu.dot_dimension_numbers<[1], [0], [0], [1], [0, 0, 1, 1], [], []>} : vector<100x128xbf16>, vector<128x128xbf16>, vector<100x128xf32> -> vector<100x128xf32>
    %cst_27 = arith.constant dense<0.000000e+00> : vector<100xf32>
    %40 = vector.multi_reduction <add>, %39, %cst_27 [1] : vector<100x128xf32> to vector<100xf32>
    %41 = vector.shape_cast %40 : vector<100xf32> to vector<100x1xf32>
    %cst_28 = arith.constant 3.125000e-02 : f32
    %42 = vector.broadcast %cst_28 : f32 to vector<100x1xf32>
    %43 = arith.mulf %41, %42 : vector<100x1xf32>
    %44 = arith.mulf %39, %39 : vector<100x128xf32>
    %cst_29 = arith.constant dense<0.000000e+00> : vector<100xf32>
    %45 = vector.multi_reduction <add>, %44, %cst_29 [1] : vector<100x128xf32> to vector<100xf32>
    %46 = vector.shape_cast %45 : vector<100xf32> to vector<100x1xf32>
    %cst_30 = arith.constant 3.125000e-02 : f32
    %47 = vector.broadcast %cst_30 : f32 to vector<100x1xf32>
    %48 = arith.mulf %46, %47 : vector<100x1xf32>
    %49 = arith.mulf %43, %43 : vector<100x1xf32>
    %50 = arith.subf %48, %49 : vector<100x1xf32>
    %51 = vector.broadcast %43 : vector<100x1xf32> to vector<100x128xf32>
    %52 = arith.subf %39, %51 : vector<100x128xf32>
    %cst_31 = arith.constant 9.99999974E-6 : f32
    %53 = vector.broadcast %cst_31 : f32 to vector<100x1xf32>
    %54 = arith.addf %50, %53 : vector<100x1xf32>
    %55 = math.rsqrt %54 : vector<100x1xf32>
    %56 = vector.broadcast %55 : vector<100x1xf32> to vector<100x128xf32>
    %57 = arith.mulf %52, %56 : vector<100x128xf32>
    %c0_32 = arith.constant 0 : index
    %c0_33 = arith.constant 0 : index
    %58 = vector.load %arg8[%c0_32, %c0_33] : memref<1x128xf32, #tpu.memory_space<vmem>>, vector<1x128xf32>
    %59 = vector.broadcast %58 : vector<1x128xf32> to vector<100x128xf32>
    %60 = arith.mulf %57, %59 : vector<100x128xf32>
    %c0_34 = arith.constant 0 : index
    %c0_35 = arith.constant 0 : index
    %61 = vector.load %arg9[%c0_34, %c0_35] : memref<1x128xf32, #tpu.memory_space<vmem>>, vector<1x128xf32>
    %62 = vector.broadcast %61 : vector<1x128xf32> to vector<100x128xf32>
    %63 = arith.addf %60, %62 : vector<100x128xf32>
    %64 = arith.truncf %63 : vector<100x128xf32> to vector<100x128xbf16>
    %c0_36 = arith.constant 0 : index
    %c0_37 = arith.constant 0 : index
    %65 = vector.load %arg12[%c0_36, %c0_37] : memref<128x256xbf16, #tpu.memory_space<vmem>>, vector<128x256xbf16>
    %cst_38 = arith.constant dense<0.000000e+00> : vector<100x256xf32>
    %66 = tpu.matmul %64, %65, %cst_38 {dimension_numbers = #tpu.dot_dimension_numbers<[1], [0], [0], [1], [0, 0, 1, 1], [], []>} : vector<100x128xbf16>, vector<128x256xbf16>, vector<100x256xf32> -> vector<100x256xf32>
    %c0_39 = arith.constant 0 : index
    %c0_40 = arith.constant 0 : index
    %67 = vector.load %arg13[%c0_39, %c0_40] : memref<1x256xf32, #tpu.memory_space<vmem>>, vector<1x256xf32>
    %68 = vector.broadcast %67 : vector<1x256xf32> to vector<100x256xf32>
    %69 = arith.addf %66, %68 : vector<100x256xf32>
    %70 = vector.extract_strided_slice %69 {offsets = [0, 0], sizes = [100, 128], strides = [1, 1]} : vector<100x256xf32> to vector<100x128xf32>
    %71 = arith.truncf %70 : vector<100x128xf32> to vector<100x128xbf16>
    %72 = vector.shape_cast %71 : vector<100x128xbf16> to vector<10x10x128xbf16>
    %73 = vector.extract_strided_slice %69 {offsets = [0, 128], sizes = [100, 128], strides = [1, 1]} : vector<100x256xf32> to vector<100x128xf32>
    %74 = arith.truncf %73 : vector<100x128xf32> to vector<100x128xbf16>
    %75 = vector.shape_cast %74 : vector<100x128xbf16> to vector<10x10x128xbf16>
    %76 = vector.extract_strided_slice %72 {offsets = [0, 0, 0], sizes = [8, 8, 128], strides = [1, 1, 1]} : vector<10x10x128xbf16> to vector<8x8x128xbf16>
    %77 = vector.shape_cast %76 : vector<8x8x128xbf16> to vector<64x128xbf16>
    %78 = arith.extf %77 : vector<64x128xbf16> to vector<64x128xf32>
    %79 = arith.mulf %34, %78 : vector<64x128xf32>
    %cst_41 = arith.constant dense<0.000000e+00> : vector<64xf32>
    %80 = vector.multi_reduction <add>, %79, %cst_41 [1] : vector<64x128xf32> to vector<64xf32>
    %81 = vector.shape_cast %80 : vector<64xf32> to vector<64x1xf32>
    %82 = vector.extract_strided_slice %72 {offsets = [0, 1, 0], sizes = [8, 8, 128], strides = [1, 1, 1]} : vector<10x10x128xbf16> to vector<8x8x128xbf16>
    %83 = vector.shape_cast %82 : vector<8x8x128xbf16> to vector<64x128xbf16>
    %84 = arith.extf %83 : vector<64x128xbf16> to vector<64x128xf32>
    %85 = arith.mulf %34, %84 : vector<64x128xf32>
    %cst_42 = arith.constant dense<0.000000e+00> : vector<64xf32>
    %86 = vector.multi_reduction <add>, %85, %cst_42 [1] : vector<64x128xf32> to vector<64xf32>
    %87 = vector.shape_cast %86 : vector<64xf32> to vector<64x1xf32>
    %88 = vector.extract_strided_slice %72 {offsets = [0, 2, 0], sizes = [8, 8, 128], strides = [1, 1, 1]} : vector<10x10x128xbf16> to vector<8x8x128xbf16>
    %89 = vector.shape_cast %88 : vector<8x8x128xbf16> to vector<64x128xbf16>
    %90 = arith.extf %89 : vector<64x128xbf16> to vector<64x128xf32>
    %91 = arith.mulf %34, %90 : vector<64x128xf32>
    %cst_43 = arith.constant dense<0.000000e+00> : vector<64xf32>
    %92 = vector.multi_reduction <add>, %91, %cst_43 [1] : vector<64x128xf32> to vector<64xf32>
    %93 = vector.shape_cast %92 : vector<64xf32> to vector<64x1xf32>
    %94 = vector.extract_strided_slice %72 {offsets = [1, 0, 0], sizes = [8, 8, 128], strides = [1, 1, 1]} : vector<10x10x128xbf16> to vector<8x8x128xbf16>
    %95 = vector.shape_cast %94 : vector<8x8x128xbf16> to vector<64x128xbf16>
    %96 = arith.extf %95 : vector<64x128xbf16> to vector<64x128xf32>
    %97 = arith.mulf %34, %96 : vector<64x128xf32>
    %cst_44 = arith.constant dense<0.000000e+00> : vector<64xf32>
    %98 = vector.multi_reduction <add>, %97, %cst_44 [1] : vector<64x128xf32> to vector<64xf32>
    %99 = vector.shape_cast %98 : vector<64xf32> to vector<64x1xf32>
    %100 = vector.extract_strided_slice %72 {offsets = [1, 1, 0], sizes = [8, 8, 128], strides = [1, 1, 1]} : vector<10x10x128xbf16> to vector<8x8x128xbf16>
    %101 = vector.shape_cast %100 : vector<8x8x128xbf16> to vector<64x128xbf16>
    %102 = arith.extf %101 : vector<64x128xbf16> to vector<64x128xf32>
    %103 = arith.mulf %34, %102 : vector<64x128xf32>
    %cst_45 = arith.constant dense<0.000000e+00> : vector<64xf32>
    %104 = vector.multi_reduction <add>, %103, %cst_45 [1] : vector<64x128xf32> to vector<64xf32>
    %105 = vector.shape_cast %104 : vector<64xf32> to vector<64x1xf32>
    %106 = vector.extract_strided_slice %72 {offsets = [1, 2, 0], sizes = [8, 8, 128], strides = [1, 1, 1]} : vector<10x10x128xbf16> to vector<8x8x128xbf16>
    %107 = vector.shape_cast %106 : vector<8x8x128xbf16> to vector<64x128xbf16>
    %108 = arith.extf %107 : vector<64x128xbf16> to vector<64x128xf32>
    %109 = arith.mulf %34, %108 : vector<64x128xf32>
    %cst_46 = arith.constant dense<0.000000e+00> : vector<64xf32>
    %110 = vector.multi_reduction <add>, %109, %cst_46 [1] : vector<64x128xf32> to vector<64xf32>
    %111 = vector.shape_cast %110 : vector<64xf32> to vector<64x1xf32>
    %112 = vector.extract_strided_slice %72 {offsets = [2, 0, 0], sizes = [8, 8, 128], strides = [1, 1, 1]} : vector<10x10x128xbf16> to vector<8x8x128xbf16>
    %113 = vector.shape_cast %112 : vector<8x8x128xbf16> to vector<64x128xbf16>
    %114 = arith.extf %113 : vector<64x128xbf16> to vector<64x128xf32>
    %115 = arith.mulf %34, %114 : vector<64x128xf32>
    %cst_47 = arith.constant dense<0.000000e+00> : vector<64xf32>
    %116 = vector.multi_reduction <add>, %115, %cst_47 [1] : vector<64x128xf32> to vector<64xf32>
    %117 = vector.shape_cast %116 : vector<64xf32> to vector<64x1xf32>
    %118 = vector.extract_strided_slice %72 {offsets = [2, 1, 0], sizes = [8, 8, 128], strides = [1, 1, 1]} : vector<10x10x128xbf16> to vector<8x8x128xbf16>
    %119 = vector.shape_cast %118 : vector<8x8x128xbf16> to vector<64x128xbf16>
    %120 = arith.extf %119 : vector<64x128xbf16> to vector<64x128xf32>
    %121 = arith.mulf %34, %120 : vector<64x128xf32>
    %cst_48 = arith.constant dense<0.000000e+00> : vector<64xf32>
    %122 = vector.multi_reduction <add>, %121, %cst_48 [1] : vector<64x128xf32> to vector<64xf32>
    %123 = vector.shape_cast %122 : vector<64xf32> to vector<64x1xf32>
    %124 = vector.extract_strided_slice %72 {offsets = [2, 2, 0], sizes = [8, 8, 128], strides = [1, 1, 1]} : vector<10x10x128xbf16> to vector<8x8x128xbf16>
    %125 = vector.shape_cast %124 : vector<8x8x128xbf16> to vector<64x128xbf16>
    %126 = arith.extf %125 : vector<64x128xbf16> to vector<64x128xf32>
    %127 = arith.mulf %34, %126 : vector<64x128xf32>
    %cst_49 = arith.constant dense<0.000000e+00> : vector<64xf32>
    %128 = vector.multi_reduction <add>, %127, %cst_49 [1] : vector<64x128xf32> to vector<64xf32>
    %129 = vector.shape_cast %128 : vector<64xf32> to vector<64x1xf32>
    %130 = arith.maximumf %81, %87 : vector<64x1xf32>
    %131 = arith.maximumf %130, %93 : vector<64x1xf32>
    %132 = arith.maximumf %131, %99 : vector<64x1xf32>
    %133 = arith.maximumf %132, %105 : vector<64x1xf32>
    %134 = arith.maximumf %133, %111 : vector<64x1xf32>
    %135 = arith.maximumf %134, %117 : vector<64x1xf32>
    %136 = arith.maximumf %135, %123 : vector<64x1xf32>
    %137 = arith.maximumf %136, %129 : vector<64x1xf32>
    %138 = arith.subf %81, %137 : vector<64x1xf32>
    %139 = math.exp %138 : vector<64x1xf32>
    %140 = arith.subf %87, %137 : vector<64x1xf32>
    %141 = math.exp %140 : vector<64x1xf32>
    %142 = arith.subf %93, %137 : vector<64x1xf32>
    %143 = math.exp %142 : vector<64x1xf32>
    %144 = arith.subf %99, %137 : vector<64x1xf32>
    %145 = math.exp %144 : vector<64x1xf32>
    %146 = arith.subf %105, %137 : vector<64x1xf32>
    %147 = math.exp %146 : vector<64x1xf32>
    %148 = arith.subf %111, %137 : vector<64x1xf32>
    %149 = math.exp %148 : vector<64x1xf32>
    %150 = arith.subf %117, %137 : vector<64x1xf32>
    %151 = math.exp %150 : vector<64x1xf32>
    %152 = arith.subf %123, %137 : vector<64x1xf32>
    %153 = math.exp %152 : vector<64x1xf32>
    %154 = arith.subf %129, %137 : vector<64x1xf32>
    %155 = math.exp %154 : vector<64x1xf32>
    %156 = arith.addf %139, %141 : vector<64x1xf32>
    %157 = arith.addf %156, %143 : vector<64x1xf32>
    %158 = arith.addf %157, %145 : vector<64x1xf32>
    %159 = arith.addf %158, %147 : vector<64x1xf32>
    %160 = arith.addf %159, %149 : vector<64x1xf32>
    %161 = arith.addf %160, %151 : vector<64x1xf32>
    %162 = arith.addf %161, %153 : vector<64x1xf32>
    %163 = arith.addf %162, %155 : vector<64x1xf32>
    %cst_50 = arith.constant 0.000000e+00 : f32
    %164 = vector.broadcast %cst_50 : f32 to vector<64x128xf32>
    %165 = vector.extract_strided_slice %75 {offsets = [0, 0, 0], sizes = [8, 8, 128], strides = [1, 1, 1]} : vector<10x10x128xbf16> to vector<8x8x128xbf16>
    %166 = vector.shape_cast %165 : vector<8x8x128xbf16> to vector<64x128xbf16>
    %167 = arith.extf %166 : vector<64x128xbf16> to vector<64x128xf32>
    %168 = vector.broadcast %139 : vector<64x1xf32> to vector<64x128xf32>
    %169 = arith.mulf %168, %167 : vector<64x128xf32>
    %170 = arith.addf %164, %169 : vector<64x128xf32>
    %171 = vector.extract_strided_slice %75 {offsets = [0, 1, 0], sizes = [8, 8, 128], strides = [1, 1, 1]} : vector<10x10x128xbf16> to vector<8x8x128xbf16>
    %172 = vector.shape_cast %171 : vector<8x8x128xbf16> to vector<64x128xbf16>
    %173 = arith.extf %172 : vector<64x128xbf16> to vector<64x128xf32>
    %174 = vector.broadcast %141 : vector<64x1xf32> to vector<64x128xf32>
    %175 = arith.mulf %174, %173 : vector<64x128xf32>
    %176 = arith.addf %170, %175 : vector<64x128xf32>
    %177 = vector.extract_strided_slice %75 {offsets = [0, 2, 0], sizes = [8, 8, 128], strides = [1, 1, 1]} : vector<10x10x128xbf16> to vector<8x8x128xbf16>
    %178 = vector.shape_cast %177 : vector<8x8x128xbf16> to vector<64x128xbf16>
    %179 = arith.extf %178 : vector<64x128xbf16> to vector<64x128xf32>
    %180 = vector.broadcast %143 : vector<64x1xf32> to vector<64x128xf32>
    %181 = arith.mulf %180, %179 : vector<64x128xf32>
    %182 = arith.addf %176, %181 : vector<64x128xf32>
    %183 = vector.extract_strided_slice %75 {offsets = [1, 0, 0], sizes = [8, 8, 128], strides = [1, 1, 1]} : vector<10x10x128xbf16> to vector<8x8x128xbf16>
    %184 = vector.shape_cast %183 : vector<8x8x128xbf16> to vector<64x128xbf16>
    %185 = arith.extf %184 : vector<64x128xbf16> to vector<64x128xf32>
    %186 = vector.broadcast %145 : vector<64x1xf32> to vector<64x128xf32>
    %187 = arith.mulf %186, %185 : vector<64x128xf32>
    %188 = arith.addf %182, %187 : vector<64x128xf32>
    %189 = vector.extract_strided_slice %75 {offsets = [1, 1, 0], sizes = [8, 8, 128], strides = [1, 1, 1]} : vector<10x10x128xbf16> to vector<8x8x128xbf16>
    %190 = vector.shape_cast %189 : vector<8x8x128xbf16> to vector<64x128xbf16>
    %191 = arith.extf %190 : vector<64x128xbf16> to vector<64x128xf32>
    %192 = vector.broadcast %147 : vector<64x1xf32> to vector<64x128xf32>
    %193 = arith.mulf %192, %191 : vector<64x128xf32>
    %194 = arith.addf %188, %193 : vector<64x128xf32>
    %195 = vector.extract_strided_slice %75 {offsets = [1, 2, 0], sizes = [8, 8, 128], strides = [1, 1, 1]} : vector<10x10x128xbf16> to vector<8x8x128xbf16>
    %196 = vector.shape_cast %195 : vector<8x8x128xbf16> to vector<64x128xbf16>
    %197 = arith.extf %196 : vector<64x128xbf16> to vector<64x128xf32>
    %198 = vector.broadcast %149 : vector<64x1xf32> to vector<64x128xf32>
    %199 = arith.mulf %198, %197 : vector<64x128xf32>
    %200 = arith.addf %194, %199 : vector<64x128xf32>
    %201 = vector.extract_strided_slice %75 {offsets = [2, 0, 0], sizes = [8, 8, 128], strides = [1, 1, 1]} : vector<10x10x128xbf16> to vector<8x8x128xbf16>
    %202 = vector.shape_cast %201 : vector<8x8x128xbf16> to vector<64x128xbf16>
    %203 = arith.extf %202 : vector<64x128xbf16> to vector<64x128xf32>
    %204 = vector.broadcast %151 : vector<64x1xf32> to vector<64x128xf32>
    %205 = arith.mulf %204, %203 : vector<64x128xf32>
    %206 = arith.addf %200, %205 : vector<64x128xf32>
    %207 = vector.extract_strided_slice %75 {offsets = [2, 1, 0], sizes = [8, 8, 128], strides = [1, 1, 1]} : vector<10x10x128xbf16> to vector<8x8x128xbf16>
    %208 = vector.shape_cast %207 : vector<8x8x128xbf16> to vector<64x128xbf16>
    %209 = arith.extf %208 : vector<64x128xbf16> to vector<64x128xf32>
    %210 = vector.broadcast %153 : vector<64x1xf32> to vector<64x128xf32>
    %211 = arith.mulf %210, %209 : vector<64x128xf32>
    %212 = arith.addf %206, %211 : vector<64x128xf32>
    %213 = vector.extract_strided_slice %75 {offsets = [2, 2, 0], sizes = [8, 8, 128], strides = [1, 1, 1]} : vector<10x10x128xbf16> to vector<8x8x128xbf16>
    %214 = vector.shape_cast %213 : vector<8x8x128xbf16> to vector<64x128xbf16>
    %215 = arith.extf %214 : vector<64x128xbf16> to vector<64x128xf32>
    %216 = vector.broadcast %155 : vector<64x1xf32> to vector<64x128xf32>
    %217 = arith.mulf %216, %215 : vector<64x128xf32>
    %218 = arith.addf %212, %217 : vector<64x128xf32>
    %219 = tpu.reciprocal %163 {approx = true} : vector<64x1xf32> -> vector<64x1xf32>
    %220 = vector.broadcast %219 : vector<64x1xf32> to vector<64x128xf32>
    %221 = arith.mulf %218, %220 : vector<64x128xf32>
    %222 = arith.truncf %221 : vector<64x128xf32> to vector<64x128xbf16>
    %c0_51 = arith.constant 0 : index
    %c0_52 = arith.constant 0 : index
    %223 = vector.load %arg14[%c0_51, %c0_52] : memref<128x128xbf16, #tpu.memory_space<vmem>>, vector<128x128xbf16>
    %cst_53 = arith.constant dense<0.000000e+00> : vector<64x128xf32>
    %224 = tpu.matmul %222, %223, %cst_53 {dimension_numbers = #tpu.dot_dimension_numbers<[1], [0], [0], [1], [0, 0, 1, 1], [], []>} : vector<64x128xbf16>, vector<128x128xbf16>, vector<64x128xf32> -> vector<64x128xf32>
    %c0_54 = arith.constant 0 : index
    %c0_55 = arith.constant 0 : index
    %225 = vector.load %arg15[%c0_54, %c0_55] : memref<1x128xf32, #tpu.memory_space<vmem>>, vector<1x128xf32>
    %226 = vector.broadcast %225 : vector<1x128xf32> to vector<64x128xf32>
    %227 = arith.addf %224, %226 : vector<64x128xf32>
    %228 = arith.addf %4, %227 : vector<64x128xf32>
    %cst_56 = arith.constant dense<0.000000e+00> : vector<64xf32>
    %229 = vector.multi_reduction <add>, %228, %cst_56 [1] : vector<64x128xf32> to vector<64xf32>
    %230 = vector.shape_cast %229 : vector<64xf32> to vector<64x1xf32>
    %cst_57 = arith.constant 3.125000e-02 : f32
    %231 = vector.broadcast %cst_57 : f32 to vector<64x1xf32>
    %232 = arith.mulf %230, %231 : vector<64x1xf32>
    %233 = arith.mulf %228, %228 : vector<64x128xf32>
    %cst_58 = arith.constant dense<0.000000e+00> : vector<64xf32>
    %234 = vector.multi_reduction <add>, %233, %cst_58 [1] : vector<64x128xf32> to vector<64xf32>
    %235 = vector.shape_cast %234 : vector<64xf32> to vector<64x1xf32>
    %cst_59 = arith.constant 3.125000e-02 : f32
    %236 = vector.broadcast %cst_59 : f32 to vector<64x1xf32>
    %237 = arith.mulf %235, %236 : vector<64x1xf32>
    %238 = arith.mulf %232, %232 : vector<64x1xf32>
    %239 = arith.subf %237, %238 : vector<64x1xf32>
    %240 = vector.broadcast %232 : vector<64x1xf32> to vector<64x128xf32>
    %241 = arith.subf %228, %240 : vector<64x128xf32>
    %cst_60 = arith.constant 9.99999974E-6 : f32
    %242 = vector.broadcast %cst_60 : f32 to vector<64x1xf32>
    %243 = arith.addf %239, %242 : vector<64x1xf32>
    %244 = math.rsqrt %243 : vector<64x1xf32>
    %245 = vector.broadcast %244 : vector<64x1xf32> to vector<64x128xf32>
    %246 = arith.mulf %241, %245 : vector<64x128xf32>
    %c0_61 = arith.constant 0 : index
    %c0_62 = arith.constant 0 : index
    %247 = vector.load %arg16[%c0_61, %c0_62] : memref<1x128xf32, #tpu.memory_space<vmem>>, vector<1x128xf32>
    %248 = vector.broadcast %247 : vector<1x128xf32> to vector<64x128xf32>
    %249 = arith.mulf %246, %248 : vector<64x128xf32>
    %c0_63 = arith.constant 0 : index
    %c0_64 = arith.constant 0 : index
    %250 = vector.load %arg17[%c0_63, %c0_64] : memref<1x128xf32, #tpu.memory_space<vmem>>, vector<1x128xf32>
    %251 = vector.broadcast %250 : vector<1x128xf32> to vector<64x128xf32>
    %252 = arith.addf %249, %251 : vector<64x128xf32>
    %253 = arith.truncf %252 : vector<64x128xf32> to vector<64x128xbf16>
    %c0_65 = arith.constant 0 : index
    %c0_66 = arith.constant 0 : index
    %254 = vector.load %arg18[%c0_65, %c0_66] : memref<128x128xbf16, #tpu.memory_space<vmem>>, vector<128x128xbf16>
    %cst_67 = arith.constant dense<0.000000e+00> : vector<64x128xf32>
    %255 = tpu.matmul %253, %254, %cst_67 {dimension_numbers = #tpu.dot_dimension_numbers<[1], [0], [0], [1], [0, 0, 1, 1], [], []>} : vector<64x128xbf16>, vector<128x128xbf16>, vector<64x128xf32> -> vector<64x128xf32>
    %c0_68 = arith.constant 0 : index
    %c0_69 = arith.constant 0 : index
    %256 = vector.load %arg19[%c0_68, %c0_69] : memref<1x128xf32, #tpu.memory_space<vmem>>, vector<1x128xf32>
    %257 = vector.broadcast %256 : vector<1x128xf32> to vector<64x128xf32>
    %258 = arith.addf %255, %257 : vector<64x128xf32>
    %259 = arith.mulf %258, %258 : vector<64x128xf32>
    %260 = arith.mulf %258, %259 : vector<64x128xf32>
    %cst_70 = arith.constant 4.471500e-02 : f32
    %261 = vector.broadcast %cst_70 : f32 to vector<64x128xf32>
    %262 = arith.mulf %261, %260 : vector<64x128xf32>
    %263 = arith.addf %258, %262 : vector<64x128xf32>
    %cst_71 = arith.constant 0.797884583 : f32
    %264 = vector.broadcast %cst_71 : f32 to vector<64x128xf32>
    %265 = arith.mulf %264, %263 : vector<64x128xf32>
    %266 = math.tanh %265 : vector<64x128xf32>
    %cst_72 = arith.constant 1.000000e+00 : f32
    %267 = vector.broadcast %cst_72 : f32 to vector<64x128xf32>
    %268 = arith.addf %267, %266 : vector<64x128xf32>
    %cst_73 = arith.constant 5.000000e-01 : f32
    %269 = vector.broadcast %cst_73 : f32 to vector<64x128xf32>
    %270 = arith.mulf %269, %268 : vector<64x128xf32>
    %271 = arith.mulf %258, %270 : vector<64x128xf32>
    %272 = arith.truncf %271 : vector<64x128xf32> to vector<64x128xbf16>
    %c0_74 = arith.constant 0 : index
    %c0_75 = arith.constant 0 : index
    %273 = vector.load %arg20[%c0_74, %c0_75] : memref<128x128xbf16, #tpu.memory_space<vmem>>, vector<128x128xbf16>
    %cst_76 = arith.constant dense<0.000000e+00> : vector<64x128xf32>
    %274 = tpu.matmul %272, %273, %cst_76 {dimension_numbers = #tpu.dot_dimension_numbers<[1], [0], [0], [1], [0, 0, 1, 1], [], []>} : vector<64x128xbf16>, vector<128x128xbf16>, vector<64x128xf32> -> vector<64x128xf32>
    %c0_77 = arith.constant 0 : index
    %c0_78 = arith.constant 0 : index
    %275 = vector.load %arg21[%c0_77, %c0_78] : memref<1x128xf32, #tpu.memory_space<vmem>>, vector<1x128xf32>
    %276 = vector.broadcast %275 : vector<1x128xf32> to vector<64x128xf32>
    %277 = arith.addf %274, %276 : vector<64x128xf32>
    %278 = arith.addf %228, %277 : vector<64x128xf32>
    %cst_79 = arith.constant dense<0.000000e+00> : vector<64xf32>
    %279 = vector.multi_reduction <add>, %278, %cst_79 [1] : vector<64x128xf32> to vector<64xf32>
    %280 = vector.shape_cast %279 : vector<64xf32> to vector<64x1xf32>
    %cst_80 = arith.constant 3.125000e-02 : f32
    %281 = vector.broadcast %cst_80 : f32 to vector<64x1xf32>
    %282 = arith.mulf %280, %281 : vector<64x1xf32>
    %283 = arith.mulf %278, %278 : vector<64x128xf32>
    %cst_81 = arith.constant dense<0.000000e+00> : vector<64xf32>
    %284 = vector.multi_reduction <add>, %283, %cst_81 [1] : vector<64x128xf32> to vector<64xf32>
    %285 = vector.shape_cast %284 : vector<64xf32> to vector<64x1xf32>
    %cst_82 = arith.constant 3.125000e-02 : f32
    %286 = vector.broadcast %cst_82 : f32 to vector<64x1xf32>
    %287 = arith.mulf %285, %286 : vector<64x1xf32>
    %288 = arith.mulf %282, %282 : vector<64x1xf32>
    %289 = arith.subf %287, %288 : vector<64x1xf32>
    %290 = vector.broadcast %282 : vector<64x1xf32> to vector<64x128xf32>
    %291 = arith.subf %278, %290 : vector<64x128xf32>
    %cst_83 = arith.constant 9.99999974E-6 : f32
    %292 = vector.broadcast %cst_83 : f32 to vector<64x1xf32>
    %293 = arith.addf %289, %292 : vector<64x1xf32>
    %294 = math.rsqrt %293 : vector<64x1xf32>
    %295 = vector.broadcast %294 : vector<64x1xf32> to vector<64x128xf32>
    %296 = arith.mulf %291, %295 : vector<64x128xf32>
    %c0_84 = arith.constant 0 : index
    %c0_85 = arith.constant 0 : index
    %297 = vector.load %arg22[%c0_84, %c0_85] : memref<1x128xf32, #tpu.memory_space<vmem>>, vector<1x128xf32>
    %298 = vector.broadcast %297 : vector<1x128xf32> to vector<64x128xf32>
    %299 = arith.mulf %296, %298 : vector<64x128xf32>
    %c0_86 = arith.constant 0 : index
    %c0_87 = arith.constant 0 : index
    %300 = vector.load %arg23[%c0_86, %c0_87] : memref<1x128xf32, #tpu.memory_space<vmem>>, vector<1x128xf32>
    %301 = vector.broadcast %300 : vector<1x128xf32> to vector<64x128xf32>
    %302 = arith.addf %299, %301 : vector<64x128xf32>
    %303 = arith.truncf %302 : vector<64x128xf32> to vector<64x128xbf16>
    %c0_88 = arith.constant 0 : index
    %c0_89 = arith.constant 0 : index
    %304 = vector.load %arg24[%c0_88, %c0_89] : memref<128x128xbf16, #tpu.memory_space<vmem>>, vector<128x128xbf16>
    %cst_90 = arith.constant dense<0.000000e+00> : vector<64x128xf32>
    %305 = tpu.matmul %303, %304, %cst_90 {dimension_numbers = #tpu.dot_dimension_numbers<[1], [0], [0], [1], [0, 0, 1, 1], [], []>} : vector<64x128xbf16>, vector<128x128xbf16>, vector<64x128xf32> -> vector<64x128xf32>
    %c0_91 = arith.constant 0 : index
    %c0_92 = arith.constant 0 : index
    %306 = vector.load %arg25[%c0_91, %c0_92] : memref<1x128xf32, #tpu.memory_space<vmem>>, vector<1x128xf32>
    %307 = vector.broadcast %306 : vector<1x128xf32> to vector<64x128xf32>
    %308 = arith.addf %305, %307 : vector<64x128xf32>
    %309 = vector.shape_cast %308 : vector<64x128xf32> to vector<8x8x128xf32>
    %310 = arith.truncf %309 : vector<8x8x128xf32> to vector<8x8x128xbf16>
    %c0_93 = arith.constant 0 : index
    %c0_94 = arith.constant 0 : index
    %c0_95 = arith.constant 0 : index
    %c0_96 = arith.constant 0 : index
    %311 = vector.load %arg26[%c0_93, %c0_94, %c0_95, %c0_96] : memref<1x8x8x128xbf16, #tpu.memory_space<vmem>>, vector<1x8x8x128xbf16>
    %312 = vector.shape_cast %311 : vector<1x8x8x128xbf16> to vector<8x8x128xbf16>
    %313 = vector.shape_cast %310 : vector<8x8x128xbf16> to vector<1x8x8x128xbf16>
    tpu.vector_store %arg26[%c0_93, %c0_94, %c0_95, %c0_96], %313 {strides = array<i32>} : memref<1x8x8x128xbf16, #tpu.memory_space<vmem>>, vector<1x8x8x128xbf16>,
    return
  }
  func.func @transform_0(%arg0: i32, %arg1: i32) -> (i32, i32, i32, i32) {
    %c0_i32 = arith.constant 0 : i32
    %c0_i32_0 = arith.constant 0 : i32
    %c0_i32_1 = arith.constant 0 : i32
    return %arg0, %arg1, %c0_i32, %c0_i32_0 : i32, i32, i32, i32
  }
  func.func @transform_1(%arg0: i32, %arg1: i32) -> (i32, i32, i32, i32, i32) {
    %c0_i32 = arith.constant 0 : i32
    %c0_i32_0 = arith.constant 0 : i32
    %c0_i32_1 = arith.constant 0 : i32
    %c0_i32_2 = arith.constant 0 : i32
    return %arg0, %arg1, %c0_i32, %c0_i32_0, %c0_i32_1 : i32, i32, i32, i32, i32
  }
  func.func @transform_2(%arg0: i32, %arg1: i32) -> (i32, i32) {
    %c0_i32 = arith.constant 0 : i32
    %c0_i32_0 = arith.constant 0 : i32
    %c0_i32_1 = arith.constant 0 : i32
    return %c0_i32, %c0_i32_0 : i32, i32
  }
  func.func @transform_3(%arg0: i32, %arg1: i32) -> (i32, i32) {
    %c0_i32 = arith.constant 0 : i32
    %c0_i32_0 = arith.constant 0 : i32
    %c0_i32_1 = arith.constant 0 : i32
    return %c0_i32, %c0_i32_0 : i32, i32
  }
  func.func @transform_4(%arg0: i32, %arg1: i32) -> (i32, i32) {
    %c0_i32 = arith.constant 0 : i32
    %c0_i32_0 = arith.constant 0 : i32
    %c0_i32_1 = arith.constant 0 : i32
    return %c0_i32, %c0_i32_0 : i32, i32
  }
  func.func @transform_5(%arg0: i32, %arg1: i32) -> (i32, i32) {
    %c0_i32 = arith.constant 0 : i32
    %c0_i32_0 = arith.constant 0 : i32
    %c0_i32_1 = arith.constant 0 : i32
    return %c0_i32, %c0_i32_0 : i32, i32
  }
  func.func @transform_6(%arg0: i32, %arg1: i32) -> (i32, i32) {
    %c0_i32 = arith.constant 0 : i32
    %c0_i32_0 = arith.constant 0 : i32
    %c0_i32_1 = arith.constant 0 : i32
    return %c0_i32, %c0_i32_0 : i32, i32
  }
  func.func @transform_7(%arg0: i32, %arg1: i32) -> (i32, i32) {
    %c0_i32 = arith.constant 0 : i32
    %c0_i32_0 = arith.constant 0 : i32
    %c0_i32_1 = arith.constant 0 : i32
    return %c0_i32, %c0_i32_0 : i32, i32
  }
  func.func @transform_8(%arg0: i32, %arg1: i32) -> (i32, i32) {
    %c0_i32 = arith.constant 0 : i32
    %c0_i32_0 = arith.constant 0 : i32
    %c0_i32_1 = arith.constant 0 : i32
    return %c0_i32, %c0_i32_0 : i32, i32
  }
  func.func @transform_9(%arg0: i32, %arg1: i32) -> (i32, i32) {
    %c0_i32 = arith.constant 0 : i32
    %c0_i32_0 = arith.constant 0 : i32
    %c0_i32_1 = arith.constant 0 : i32
    return %c0_i32, %c0_i32_0 : i32, i32
  }
  func.func @transform_10(%arg0: i32, %arg1: i32) -> (i32, i32) {
    %c0_i32 = arith.constant 0 : i32
    %c0_i32_0 = arith.constant 0 : i32
    %c0_i32_1 = arith.constant 0 : i32
    return %c0_i32, %c0_i32_0 : i32, i32
  }
  func.func @transform_11(%arg0: i32, %arg1: i32) -> (i32, i32) {
    %c0_i32 = arith.constant 0 : i32
    %c0_i32_0 = arith.constant 0 : i32
    %c0_i32_1 = arith.constant 0 : i32
    return %c0_i32, %c0_i32_0 : i32, i32
  }
  func.func @transform_12(%arg0: i32, %arg1: i32) -> (i32, i32) {
    %c0_i32 = arith.constant 0 : i32
    %c0_i32_0 = arith.constant 0 : i32
    %c0_i32_1 = arith.constant 0 : i32
    return %c0_i32, %c0_i32_0 : i32, i32
  }
  func.func @transform_13(%arg0: i32, %arg1: i32) -> (i32, i32) {
    %c0_i32 = arith.constant 0 : i32
    %c0_i32_0 = arith.constant 0 : i32
    %c0_i32_1 = arith.constant 0 : i32
    return %c0_i32, %c0_i32_0 : i32, i32
  }
  func.func @transform_14(%arg0: i32, %arg1: i32) -> (i32, i32) {
    %c0_i32 = arith.constant 0 : i32
    %c0_i32_0 = arith.constant 0 : i32
    %c0_i32_1 = arith.constant 0 : i32
    return %c0_i32, %c0_i32_0 : i32, i32
  }
  func.func @transform_15(%arg0: i32, %arg1: i32) -> (i32, i32) {
    %c0_i32 = arith.constant 0 : i32
    %c0_i32_0 = arith.constant 0 : i32
    %c0_i32_1 = arith.constant 0 : i32
    return %c0_i32, %c0_i32_0 : i32, i32
  }
  func.func @transform_16(%arg0: i32, %arg1: i32) -> (i32, i32) {
    %c0_i32 = arith.constant 0 : i32
    %c0_i32_0 = arith.constant 0 : i32
    %c0_i32_1 = arith.constant 0 : i32
    return %c0_i32, %c0_i32_0 : i32, i32
  }
  func.func @transform_17(%arg0: i32, %arg1: i32) -> (i32, i32) {
    %c0_i32 = arith.constant 0 : i32
    %c0_i32_0 = arith.constant 0 : i32
    %c0_i32_1 = arith.constant 0 : i32
    return %c0_i32, %c0_i32_0 : i32, i32
  }
  func.func @transform_18(%arg0: i32, %arg1: i32) -> (i32, i32) {
    %c0_i32 = arith.constant 0 : i32
    %c0_i32_0 = arith.constant 0 : i32
    %c0_i32_1 = arith.constant 0 : i32
    return %c0_i32, %c0_i32_0 : i32, i32
  }
  func.func @transform_19(%arg0: i32, %arg1: i32) -> (i32, i32) {
    %c0_i32 = arith.constant 0 : i32
    %c0_i32_0 = arith.constant 0 : i32
    %c0_i32_1 = arith.constant 0 : i32
    return %c0_i32, %c0_i32_0 : i32, i32
  }
  func.func @transform_20(%arg0: i32, %arg1: i32) -> (i32, i32) {
    %c0_i32 = arith.constant 0 : i32
    %c0_i32_0 = arith.constant 0 : i32
    %c0_i32_1 = arith.constant 0 : i32
    return %c0_i32, %c0_i32_0 : i32, i32
  }
  func.func @transform_21(%arg0: i32, %arg1: i32) -> (i32, i32) {
    %c0_i32 = arith.constant 0 : i32
    %c0_i32_0 = arith.constant 0 : i32
    %c0_i32_1 = arith.constant 0 : i32
    return %c0_i32, %c0_i32_0 : i32, i32
  }
  func.func @transform_22(%arg0: i32, %arg1: i32) -> (i32, i32) {
    %c0_i32 = arith.constant 0 : i32
    %c0_i32_0 = arith.constant 0 : i32
    %c0_i32_1 = arith.constant 0 : i32
    return %c0_i32, %c0_i32_0 : i32, i32
  }
  func.func @transform_23(%arg0: i32, %arg1: i32) -> (i32, i32) {
    %c0_i32 = arith.constant 0 : i32
    %c0_i32_0 = arith.constant 0 : i32
    %c0_i32_1 = arith.constant 0 : i32
    return %c0_i32, %c0_i32_0 : i32, i32
  }
  func.func @transform_24(%arg0: i32, %arg1: i32) -> (i32, i32, i32, i32) {
    %c0_i32 = arith.constant 0 : i32
    %c0_i32_0 = arith.constant 0 : i32
    %c0_i32_1 = arith.constant 0 : i32
    return %arg0, %arg1, %c0_i32, %c0_i32_0 : i32, i32, i32, i32
  }
}

</mosaic_0001>

<bundles_post_ra>
// kernel: tpu_custom_call.1
= control target key start
LH: loop header
LB: loop body
LE: loop exit
PB: predicated region body
PF: predicated region fallthrough
CT: control target
= control target key end

     0   :  { %s11825_s0 = inlined_call_operand.vmem [shape: bf16[2,8,8,128], index: 0, kind: input, shape index: {}]   ;;  %s11826_s1 = inlined_call_operand.vmem [shape: bf16[2,1,10,10,128], index: 1, kind: input, shape index: {}]   ;;  %s11827_s2 = inlined_call_operand.vmem [shape: bf16[128,128], index: 2, kind: input, shape index: {}]   ;;  %s11828_s3 = inlined_call_operand.hbm [shape: bf16[128,128], index: 3, kind: input, shape index: {}]   ;;  %s11829_s4 = inlined_call_operand.vmem [shape: f32[1,128], index: 4, kind: input, shape index: {}]   ;;  %s11830_s5 = inlined_call_operand.vmem [shape: f32[1,128], index: 5, kind: input, shape index: {}]   ;;  %s11831_s6 = inlined_call_operand.vmem [shape: f32[1,128], index: 6, kind: input, shape index: {}]   ;;  %s11832_s7 = inlined_call_operand.vmem [shape: f32[1,128], index: 7, kind: input, shape index: {}]   ;;  %s11833_s8 = inlined_call_operand.hbm [shape: bf16[128,128], index: 8, kind: input, shape index: {}]   ;;  %s11834_s9 = inlined_call_operand.vmem [shape: f32[1,128], index: 9, kind: input, shape index: {}]   ;;  %s11835_s10 = inlined_call_operand.vmem [shape: bf16[128,256], index: 10, kind: input, shape index: {}]   ;;  %s11836_s11 = inlined_call_operand.vmem [shape: f32[1,256], index: 11, kind: input, shape index: {}]   ;;  %s11837_s12 = inlined_call_operand.hbm [shape: bf16[128,128], index: 12, kind: input, shape index: {}]   ;;  %s11838_s13 = inlined_call_operand.vmem [shape: f32[1,128], index: 13, kind: input, shape index: {}]   ;;  %s11839_s14 = inlined_call_operand.vmem [shape: f32[1,128], index: 14, kind: input, shape index: {}]   ;;  %s11840_s15 = inlined_call_operand.vmem [shape: f32[1,128], index: 15, kind: input, shape index: {}]   ;;  %s11841_s16 = inlined_call_operand.hbm [shape: bf16[128,128], index: 16, kind: input, shape index: {}]   ;;  %s11842_s17 = inlined_call_operand.vmem [shape: f32[1,128], index: 17, kind: input, shape index: {}]   ;;  %s11843_s18 = inlined_call_operand.hbm [shape: bf16[128,128], index: 18, kind: input, shape index: {}]   ;;  %s11844_s19 = inlined_call_operand.vmem [shape: f32[1,128], index: 19, kind: input, shape index: {}]   ;;  %s11845_s20 = inlined_call_operand.vmem [shape: f32[1,128], index: 20, kind: input, shape index: {}]   ;;  %s11846_s21 = inlined_call_operand.vmem [shape: f32[1,128], index: 21, kind: input, shape index: {}]   ;;  %s11847_s22 = inlined_call_operand.hbm [shape: bf16[128,128], index: 22, kind: input, shape index: {}]   ;;  %s11848_s23 = inlined_call_operand.vmem [shape: f32[1,128], index: 23, kind: input, shape index: {}]   ;;  %s11849_s24 = inlined_call_operand.hbm [shape: bf16[2,8,8,128], index: 24, kind: output, shape index: {}]  }
   0x1   :  { %11964 = sst [smem:[#allocation86_spill]] %s11825_s0 }
   0x2   :  { %11965 = sst [smem:[#allocation87_spill]] %s11826_s1 }
   0x3   :  { %11966 = sst [smem:[#allocation88_spill]] %s11827_s2 }
   0x4   :  { %11967 = sst [smem:[#allocation89_spill]] %s11828_s3 }
   0x5   :  { %11968 = sst [smem:[#allocation90_spill]] %s11829_s4 }
   0x6   :  { %11969 = sst [smem:[#allocation91_spill]] %s11830_s5 }
   0x7   :  { %11970 = sst [smem:[#allocation92_spill]] %s11831_s6 }
   0x8   :  { %11971 = sst [smem:[#allocation93_spill]] %s11832_s7 }
   0x9   :  { %11972 = sst [smem:[#allocation94_spill]] %s11833_s8 }
   0xa   :  { %11973 = sst [smem:[#allocation95_spill]] %s11848_s23 }
   0xb   :  { %11974 = sst [smem:[#allocation96_spill]] %s11849_s24 }
   0xc   :  { %29 = vsyncpa [#allocation3], 0 }
   0xd   :  { %30 = vsyncpa [#allocation6], 0 }
   0xe   :  { %31 = vsyncpa [#allocation9], 0 }
   0xf   :  { %32 = vsyncpa [#allocation12], 0 }
  0x10   :  { %33 = vsyncpa [#allocation4], 0 }
  0x11   :  { %35 = vsyncpa [#allocation4 + $0x1], 0  ;;  %s8807_s5 = smov 0   ;;  %s8809_s26 = smov 0  }
  0x12   :  { %s8811_s27 = smov 0   ;;  %s8813_s28 = smov 0  }
  0x13   :  { %s8815_s6 = smov 0   ;;  %s8817_s2 = smov 0  }
  0x14 LB: > { %11975 = sst [smem:[#allocation19_spill]] %s8644_s5  ;;  %s7424_s29 = sadd.s32 4294967295, %s8664_s2   ;;  %s8664_s2 = sphi %s8817_s2, %s41_s2   ;;  %s8660_s6 = sphi %s8815_s6, %s12303_s6   ;;  %s8656_s28 = sphi %s8813_s28, %s12302_s28   ;;  %s8652_s27 = sphi %s8811_s27, %s12301_s27   ;;  %s8648_s26 = sphi %s8809_s26, %s12305_s26   ;;  %s8644_s5 = sphi %s8807_s5, %s12304_s5  }
  0x15   : > { %11976 = sst [smem:[#allocation20_spill]] %s8652_s27  ;;  %s7425_s0 = sadd.s32 4294967294, %s8664_s2  }
  0x16   : > { %11977 = sst [smem:[#allocation21_spill]] %s8660_s6  ;;  %s53_s7 = sadd.s32 1, %s8660_s6 }
  0x17   : > { %11978 = sst [smem:[#allocation22_spill]] %s8664_s2  ;;  %s580_s30 = sadd.s32 1, %s8652_s27 }
  0x18   : > { %p55_p0 = scmp.ge.s32.totalorder %s53_s7, 2  ;;  %p590_p1 = scmp.ne.s32.totalorder %s8652_s27, %s8648_s26 }
  0x19   : > { %p591_p2 = scmp.eq.s32.totalorder %s7424_s29, 1  ;;  %p596_p3 = scmp.ne.s32.totalorder %s8648_s26, %s8644_s5 }
  0x1a   : > { %s12307_s7 = smov (%p55_p0, %s53_s7), 0  ;;  %p597_p5 = scmp.eq.s32.totalorder %s7425_s0, 1 }
  0x1b   : > { %11979 = sst [smem:[#allocation23_spill]] %s12307_s7  ;;  %p8847_p4 = por %p591_p2, %p590_p1 }
  0x1c   : > { %s575_s25 = ssub.s32 %s8660_s6, %s12307_s7  ;;  %p7426_p6 = scmp.ge.s32.totalorder %s8664_s2, 1 }
  0x1d   : > { %s11980_s3 = scalar_select %p8847_p4, 1, 0 }
  0x1e   : > { %p578_p7 = scmp.eq.s32.totalorder %s575_s25, 0  ;;  %p8854_p8 = por %p597_p5, %p596_p3 }
  0x1f   : > { %11981 = sst [smem:[#allocation24_spill]] %s11980_s3  ;;  %p604_p9 = scmp.lt.s32.totalorder %s8664_s2, 3 }
  0x20   : > { %s11982_s8 = scalar_select %p8854_p8, 1, 0 }
  0x21   : > { %s8860_s4 = scalar_select %p578_p7, %s8652_s27, %s580_s30  }
  0x22   : > { %11983 = sst [smem:[#allocation25_spill]] %s11982_s8  ;;  %p8862_p10 = pnand %p7426_p6, %p604_p9 }
  0x23   : > { %11984 = sst [smem:[#allocation26_spill]] %s8860_s4  ;;  %p8866_p11 = scmp.eq.s32.totalorder %s7424_s29, 0 }
  0x24   : > { %p7983_p12 = pneg %p8862_p10  ;;  %s8666_s0 = smov [#allocation5]  }
  0x25   : > { %s644_s25 = sshll.u32 %s8666_s0, 4  ;;  %s8667_s30 = smov [#allocation8]   ;;  %s645_s25 = int_to_ptr.vmem [resolvable:$true] %s644_s25 }
  0x26   : > { %p8874_p13 = pnand %p8866_p11, %p7983_p12  ;;  %s688_s6 = sshll.u32 %s8667_s30, 4  ;;  %s689_s6 = int_to_ptr.vmem [resolvable:$true] %s688_s6 }
  0x27   : > { %s8427_s4 = scalar_lea.vmem %s645_s25, 1024  ;;  %p8435_p5 = scmp.lt.s32.totalorder %s645_s25, %s645_s25 }
  0x28   : > { %p8880_p0 = pneg %p8874_p13  ;;  %p8428_p1 = scmp.ne.s32.totalorder %s645_s25, %s8427_s4 }
  0x29   : > { %p8436_p6 = scmp.lt.s32.totalorder %s8427_s4, %s8427_s4 }
  0x2a   : > { %p8430_p2 = pnand %p8428_p1, %p8880_p0 }
  0x2b   : > { %p8437_p7 = por %p8436_p6, %p8435_p5 }
  0x2c   : > { %p8431_p3 = pneg %p8430_p2 }
  0x2e   : > { %p8438_p9 = pnand %p8437_p7, %p8431_p3 }
  0x30   : > { %8441 = shalt.err (!%p8438_p9)
}
  0x31   : > { %s8668_s0 = smov 64   ;;  %s8669_s30 = smov 4  }
  0x32   : > { %s11989_s2 = sld [smem:[#allocation94_spill]]  ;;  %s8453_s24 = scalar_lea.vmem %s689_s6, 1024 }
  0x33   : > { %p8454_p12 = scmp.ne.s32.totalorder %s689_s6, %s8453_s24  ;;  %p8461_p5 = scmp.lt.s32.totalorder %s689_s6, %s689_s6 }
  0x34   : > { %p8462_p3 = scmp.lt.s32.totalorder %s8453_s24, %s8453_s24 }
  0x35   : > { %p8456_p1 = pnand %p8454_p12, %p8880_p0 }
  0x36   : > { %p8463_p6 = por %p8462_p3, %p8461_p5 }
  0x37   : > { %p8457_p2 = pneg %p8456_p1 }
  0x38   : > { %7989 = dma.hbm_to_vmem [thread:$0]  (!%p8874_p13), %s11989_s2, 1024, %s645_s25, [#allocation6], %s8668_s0, %s8668_s0, %s8669_s30  }
  0x39   : > { %p8464_p7 = pnand %p8463_p6, %p8457_p2 }
  0x3b   : > { %8467 = shalt.err (!%p8464_p7)
}
  0x3c   : > { %7995 = dma.hbm_to_vmem [thread:$0]  (!%p8874_p13), %s11841_s16, 1024, %s689_s6, [#allocation9], %s8668_s0, %s8668_s0, %s8669_s30  }
  0x3d   : > { %s8670_s27 = smov [#allocation2]   ;;  %s8671_s8 = smov [#allocation7]  }
  0x3e   : > { %s619_s2 = sshll.u32 %s8670_s27, 4  ;;  %s666_s25 = sshll.u32 %s8671_s8, 4  ;;  %s620_s2 = int_to_ptr.vmem [resolvable:$true] %s619_s2  ;;  %s667_s25 = int_to_ptr.vmem [resolvable:$true] %s666_s25 }
  0x3f   : > { %s8479_s23 = scalar_lea.vmem %s620_s2, 1024  ;;  %p8487_p2 = scmp.lt.s32.totalorder %s620_s2, %s620_s2 }
  0x40   : > { %p8480_p9 = scmp.ne.s32.totalorder %s620_s2, %s8479_s23  ;;  %p8488_p5 = scmp.lt.s32.totalorder %s8479_s23, %s8479_s23 }
  0x42   : > { %p8482_p12 = pnand %p8480_p9, %p8880_p0  ;;  %p8489_p3 = por %p8488_p5, %p8487_p2 }
  0x44   : > { %p8483_p1 = pneg %p8482_p12 }
  0x46   : > { %p8490_p6 = pnand %p8489_p3, %p8483_p1 }
  0x48   : > { %8493 = shalt.err (!%p8490_p6)
}
  0x49   : > { %s11990_s3 = sld [smem:[#allocation89_spill]]  ;;  %s8505_s4 = scalar_lea.vmem %s667_s25, 1024 }
  0x4a   : > { %p8506_p7 = scmp.ne.s32.totalorder %s667_s25, %s8505_s4  ;;  %p8513_p8 = scmp.lt.s32.totalorder %s667_s25, %s667_s25 }
  0x4b   : > { %p8514_p2 = scmp.lt.s32.totalorder %s8505_s4, %s8505_s4 }
  0x4c   : > { %p8508_p9 = pnand %p8506_p7, %p8880_p0 }
  0x4d   : > { %p8515_p1 = por %p8514_p2, %p8513_p8 }
  0x4e   : > { %p8509_p12 = pneg %p8508_p9 }
  0x4f   : > { %7986 = dma.hbm_to_vmem [thread:$0]  (!%p8874_p13), %s11990_s3, 1024, %s620_s2, [#allocation3], %s8668_s0, %s8668_s0, %s8669_s30  }
  0x50   : > { %p8516_p5 = pnand %p8515_p1, %p8509_p12 }
  0x52   : > { %8519 = shalt.err (!%p8516_p5)
}
  0x53   : > { %7992 = dma.hbm_to_vmem [thread:$0]  (!%p8874_p13), %s11837_s12, 1024, %s667_s25, [#allocation6], %s8668_s0, %s8668_s0, %s8669_s30  }
  0x54   : > { %s8672_s2 = smov [#allocation10]   ;;  %s8673_s24 = smov [#allocation11]  }
  0x55   : > { %s704_s8 = sshll.u32 %s8672_s2, 4  ;;  %s726_s6 = sshll.u32 %s8673_s24, 4  ;;  %s705_s8 = int_to_ptr.vmem [resolvable:$true] %s704_s8  ;;  %s727_s6 = int_to_ptr.vmem [resolvable:$true] %s726_s6 }
  0x56   : > { %s8531_s3 = scalar_lea.vmem %s705_s8, 1024  ;;  %p8539_p7 = scmp.lt.s32.totalorder %s705_s8, %s705_s8 }
  0x57   : > { %p8532_p3 = scmp.ne.s32.totalorder %s705_s8, %s8531_s3  ;;  %p8540_p9 = scmp.lt.s32.totalorder %s8531_s3, %s8531_s3 }
  0x59   : > { %p8534_p8 = pnand %p8532_p3, %p8880_p0  ;;  %p8541_p12 = por %p8540_p9, %p8539_p7 }
  0x5b   : > { %p8535_p6 = pneg %p8534_p8 }
  0x5d   : > { %p8542_p2 = pnand %p8541_p12, %p8535_p6 }
  0x5f   : > { %8545 = shalt.err (!%p8542_p2)
}
  0x60   : > { %7998 = dma.hbm_to_vmem [thread:$0]  (!%p8874_p13), %s11843_s18, 1024, %s705_s8, [#allocation9], %s8668_s0, %s8668_s0, %s8669_s30  }
  0x61   : > { %s8557_s23 = scalar_lea.vmem %s727_s6, 1024  ;;  %p8565_p8 = scmp.lt.s32.totalorder %s727_s6, %s727_s6 }
  0x62   : > { %p8558_p1 = scmp.ne.s32.totalorder %s727_s6, %s8557_s23  ;;  %p8566_p7 = scmp.lt.s32.totalorder %s8557_s23, %s8557_s23 }
  0x64   : > { %p8560_p5 = pnand %p8558_p1, %p8880_p0  ;;  %p8567_p6 = por %p8566_p7, %p8565_p8 }
  0x66   : > { %p8561_p3 = pneg %p8560_p5 }
  0x68   : > { %p8568_p9 = pnand %p8567_p6, %p8561_p3 }
  0x6a   : > { %8571 = shalt.err (!%p8568_p9)
}
  0x6b   : > { %8001 = dma.hbm_to_vmem [thread:$0]  (!%p8874_p13), %s11847_s22, 1024, %s727_s6, [#allocation12], %s8668_s0, %s8668_s0, %s8669_s30  }
  0x6c   : > { %770 = sbr.rel (%p8862_p10) target bundleno = 2426 (0x97a), region = 116 }
  0x71   : > { %8623 = dma.done.wait (%p8866_p11), [#allocation3], 1024  }
  0x72   : > { %8625 = vsyncadd (%p8866_p11), [#allocation3], 4294966272 }
  0x73   : > { %8627 = dma.done.wait (%p8866_p11), [#allocation6], 2048  }
  0x74   : > { %8629 = vsyncadd (%p8866_p11), [#allocation6], 4294965248 }
  0x75   : > { %8631 = dma.done.wait (%p8866_p11), [#allocation9], 2048  }
  0x76   : > { %8633 = vsyncadd (%p8866_p11), [#allocation9], 4294965248 }
  0x77   : > { %8635 = dma.done.wait (%p8866_p11), [#allocation12], 1024  }
  0x78   : > { %8637 = vsyncadd (%p8866_p11), [#allocation12], 4294966272  ;;  %p870_p10 = scmp.lt.s32.totalorder %s8656_s28, 1  ;;  %s11991_s0 = sld [smem:[#allocation88_spill]]  ;;  %v8674_v9 = vmov 1966171168   ;;  %v1376_v11 = vlaneseq }
  0x79   : > { %s11992_s4 = sld [smem:[#allocation86_spill]]  ;;  %v1374_v10 = vunpack.c.l.s4 %v8674_v9  ;;  %v8092_v15 = vld [vmem:[#allocation2 + $0x38] sm:$0xff]   ;;  %v8675_v17 = vmov 0.0   ;;  %v8093_v18 = vld [vmem:[#allocation2 + $0x30] sm:$0xff]   ;;  %v8094_v22 = vld [vmem:[#allocation2 + $0x28] sm:$0xff]   ;;  %vm8676_vm0 = vmmov 0  }
  0x7a   : > { %s8964_s7 = scalar_select %p870_p10, %s8656_s28, 1  ;;  %v8999_v14 = vshrl.u32 %v1376_v11, 7  ;;  %v8097_v29 = vld [vmem:[#allocation2 + $0x20] sm:$0xff]   ;;  %v8098_v39 = vld [vmem:[#allocation2 + $0x18] sm:$0xff]   ;;  %v8099_v50 = vld [vmem:[#allocation2 + $0x10] sm:$0xff]   ;;  %vm2237_vm1 = vcmask 1043456  }
  0x7b   : > { %v1375_v13 = vunpack.c.0.s8 %v1374_v10  ;;  %s11993_s2 = sld [smem:[#allocation87_spill]]  ;;  %v8100_v63 = vld [vmem:[#allocation2 + $0x8] sm:$0xff]   ;;  %v8101_v10 = vld [vmem:[#allocation2] sm:$0xff]   ;;  %vm3633_vm2 = vsmask.f32 256  ;;  %s866_s5 = sand.u32 1, %s8648_s26  }
  0x7c   : > { %s7656_s24 = sshll.u32 %s8964_s7, 5  ;;  %s7956_s25 = smul.u32 80, %s8964_s7  ;;  %vm3634_vm3 = vsmask.f32 1284  ;;  %vm3636_vm5 = vsmask.f32 2312 }
  0x7d   : > { %v9010_v20 = vsub.s32 %v1375_v13, %v8999_v14  ;;  %s12002_s8 = sld [smem:[#allocation90_spill]]  ;;  %vm3635_vm4 = vmor %vm3633_vm2, %vm3634_vm3  ;;  %vm3638_vm7 = vsmask.f32 3340  ;;  %vm3640_vm9 = vsmask.f32 4368  ;;  %s7657_s7 = sshll.u32 %s8656_s28, 9 }
  0x7e   : > { %v8082_v0 = vld [vmem:[%s11991_s0 + $0x38] sm:$0xff]   ;;  %v8083_v1 = vld [vmem:[%s11991_s0 + $0x30] sm:$0xff]   ;;  %v8084_v2 = vld [vmem:[%s11991_s0 + $0x28] sm:$0xff]   ;;  %s12003_s6 = sld [smem:[#allocation91_spill]]  ;;  %vm3642_vm11 = vsmask.f32 5396 }
  0x7f   : > { %7768 = vmatprep.subr.bf16.mxu0 %v8082_v0  ;;  %s8979_s23 = scalar_lea.vmem %s11992_s4, %s7656_s24  ;;  %v8085_v3 = vld [vmem:[%s11991_s0 + $0x20] sm:$0xff]   ;;  %v8086_v5 = vld [vmem:[%s11991_s0 + $0x18] sm:$0xff]   ;;  %v8087_v6 = vld [vmem:[%s11991_s0 + $0x10] sm:$0xff]   ;;  %s12004_s3 = sld [smem:[#allocation92_spill]]  ;;  %vm3644_vm13 = vsmask.f32 6424 }
  0x80   : > { %7769 = vmatpush3.bf16.msra.mxu0 %v8082_v0  ;;  %v8090_v4 = vld [vmem:[%s8979_s23] sm:$0xff]   ;;  %v8088_v7 = vld [vmem:[%s11991_s0 + $0x8] sm:$0xff]   ;;  %v8095_v16 = vld [vmem:[%s8979_s23 + $0x10] sm:$0xff]   ;;  %vm3646_vm15 = vsmask.f32 7452  ;;  %s7441_s4 = sshll.u32 %s866_s5, 5 }
  0x81   : > { %7770 = vmatprep.subr.bf16.mxu0 %v8083_v1  ;;  %7784 = vmatprep.mubr.bf16.mxu0 %v8090_v4  ;;  %v8089_v8 = vld [vmem:[%s11991_s0] sm:$0xff]   ;;  %v8091_v12 = vld [vmem:[%s8979_s23 + $0x8] sm:$0xff]   ;;  %s9004_s1 = scalar_lea.vmem %s11993_s2, %s7956_s25  ;;  %v8096_v23 = vld [vmem:[%s8979_s23 + $0x18] sm:$0xff]   ;;  %s12005_s23 = sld [smem:[#allocation93_spill]] }
  0x82   : > { %v7468_v19 = vld.sshfl [vmem:[%s9004_s1] sm:$0x33 pattern:$0x75316420]  ;;  %vm3637_vm6 = vmor %vm3635_vm4, %vm3636_vm5  ;;  %s12293_s25 = sld [smem:[#allocation95_spill]]  ;;  %s868_s27 = scalar_lea.vmem [#allocation13], %s7441_s4 }
  0x83   : > { %v7470_v21 = vld.sshfl [vmem:[%s9004_s1 + $0x8] sm:$0x33 pattern:$0x75316420]  ;;  %v1372_v24 = vcombine.high %v7468_v19, %v7468_v19  ;;  %v1379_v30 = vrot.slane %v7468_v19, %v9010_v20  ;;  %vm3639_vm8 = vmor %vm3637_vm6, %vm3638_vm7  ;;  %s7264_s2 = sshll.u32 %s868_s27, 4  ;;  %s12295_s30 = sld [smem:[#allocation96_spill]]  ;;  %s11771_s2 = int_to_ptr.vmem [resolvable:$true] %s7264_s2 }
  0x84   : > { %7771 = vmatpush3.bf16.msra.mxu0 %v8083_v1  ;;  %v7469_v25 = vld.sshfl [vmem:[%s9004_s1 + $0x4] sm:$0x1 pattern:$0x75316420]  ;;  %v1410_v26 = vcombine.high %v7470_v21, %v7470_v21  ;;  %v1417_v27 = vrot.slane %v7470_v21, %v9010_v20  ;;  %vm3641_vm10 = vmor %vm3639_vm8, %vm3640_vm9  ;;  %s11780_s24 = scalar_lea.sflag [#allocation4], %s866_s5  ;;  %s8572_s28 = scalar_lea.vmem %s11771_s2, 512 }
  0x85   : > { %7772 = vmatprep.subr.bf16.mxu0 %v8084_v2  ;;  %v7472_v28 = vld.sshfl [vmem:[%s9004_s1 + $0x10] sm:$0x33 pattern:$0x75316420]  ;;  %v1386_v31 = vrot.slane %v1372_v24, %v9010_v20  ;;  %v1402_v32 = vrot.slane %v7469_v25, %v9010_v20  ;;  %vm3643_vm12 = vmor %vm3641_vm10, %vm3642_vm11  ;;  %p8573_p11 = scmp.ne.s32.totalorder %s11771_s2, %s8572_s28 }
  0x86   : > { %v1424_v33 = vrot.slane %v1410_v26, %v9010_v20  ;;  %v1425_v34 = vcombine.high %v1417_v27, %v1417_v27  ;;  %v7471_v35 = vld.sshfl [vmem:[%s9004_s1 + $0xc] sm:$0x1 pattern:$0x75316420]  ;;  %v1448_v38 = vcombine.high %v7472_v28, %v7472_v28  ;;  %v1455_v46 = vrot.slane %v7472_v28, %v9010_v20  ;;  %vm3645_vm14 = vmor %vm3643_vm12, %vm3644_vm13 }
  0x87   : > { %v7473_v36 = vld.sshfl [vmem:[%s9004_s1 + $0x14] sm:$0x1 pattern:$0x75316420]  ;;  %v1761_v40 = vcombine.low %v1379_v30, %v1386_v31  ;;  %v7488_v41 = vcombine.high %v1379_v30, %v1386_v31  ;;  %v1763_v42 = vcombine.low %v1402_v32, %v1417_v27  ;;  %v1440_v45 = vrot.slane %v7471_v35, %v9010_v20  ;;  %p8574_p13 = pnand %p8573_p11, %p8847_p4 }
  0x88   : > { %7773 = vmatpush3.bf16.msra.mxu0 %v8084_v2  ;;  %v7474_v37 = vld.sshfl [vmem:[%s9004_s1 + $0x18] sm:$0x33 pattern:$0x75316420]  ;;  %v1764_v43 = vcombine.low %v1424_v33, %v1425_v34  ;;  %v1426_v44 = vcombine.high %v1424_v33, %v1424_v33  ;;  %v1462_v47 = vrot.slane %v1448_v38, %v9010_v20  ;;  %v1478_v48 = vrot.slane %v7473_v36, %v9010_v20 }
  0x89   : > { %7774 = vmatprep.subr.bf16.mxu0 %v8085_v3  ;;  %v1493_v49 = vrot.slane %v7474_v37, %v9010_v20  ;;  %v1771_v51 = vrot.slane %v1761_v40, %v9010_v20  ;;  %v1778_v52 = vrot.slane %v7488_v41, %v9010_v20  ;;  %v7476_v53 = vld.sshfl [vmem:[%s9004_s1 + $0x20] sm:$0x33 pattern:$0x75316420]  ;;  %v1785_v54 = vrot.slane %v1763_v42, %v9010_v20  ;;  %p8575_p0 = pneg %p8574_p13 }
  0x8a   : > { %v1792_v55 = vrot.slane %v1764_v43, %v9010_v20  ;;  %v1486_v56 = vcombine.high %v7474_v37, %v7474_v37  ;;  %v1810_v57 = vcombine.low %v1426_v44, %v1440_v45  ;;  %v1811_v58 = vcombine.low %v1455_v46, %v1462_v47  ;;  %v7475_v61 = vld.sshfl [vmem:[%s9004_s1 + $0x1c] sm:$0x1 pattern:$0x75316420] }
  0x8b   : > { %v7489_v59 = vcombine.high %v1455_v46, %v1462_v47  ;;  %v1813_v60 = vcombine.low %v1478_v48, %v1493_v49  ;;  %v7478_v62 = vld.sshfl [vmem:[%s9004_s1 + $0x28] sm:$0x33 pattern:$0x75316420]  ;;  %v1793_v0 = vcombine.low %v1771_v51, %v1778_v52 }
  0x8c   : > { %7775 = vmatpush3.bf16.msra.mxu0 %v8085_v3  ;;  %v1794_v1 = vcombine.low %v1785_v54, %v1792_v55  ;;  %v1500_v2 = vrot.slane %v1486_v56, %v9010_v20  ;;  %v1524_v3 = vcombine.high %v7476_v53, %v7476_v53  ;;  %v1820_v4 = vrot.slane %v1810_v57, %v9010_v20  ;;  %v7480_v9 = vld.sshfl [vmem:[%s9004_s1 + $0x30] sm:$0x33 pattern:$0x75316420] }
  0x8d   : > { %7776 = vmatprep.subr.bf16.mxu0 %v8086_v5  ;;  %v1801_v11 = vrot.slane %v1793_v0, %v9010_v20  ;;  %v1562_v13 = vcombine.high %v7478_v62, %v7478_v62  ;;  %v7477_v21 = vld.sshfl [vmem:[%s9004_s1 + $0x24] sm:$0x1 pattern:$0x75316420]  ;;  %v1569_v26 = vrot.slane %v7478_v62, %v9010_v20  ;;  %v1600_v28 = vcombine.high %v7480_v9, %v7480_v9 }
  0x8e   : > { %v1538_v19 = vrot.slane %v1524_v3, %v9010_v20  ;;  %v7479_v25 = vld.sshfl [vmem:[%s9004_s1 + $0x2c] sm:$0x1 pattern:$0x75316420]  ;;  %v1554_v34 = vrot.slane %v7477_v21, %v9010_v20  ;;  %v1607_v41 = vrot.slane %v7480_v9, %v9010_v20 }
  0x8f   : > { %v1576_v27 = vrot.slane %v1562_v13, %v9010_v20  ;;  %v1577_v38 = vcombine.high %v1569_v26, %v1569_v26  ;;  %v1592_v40 = vrot.slane %v7479_v25, %v9010_v20  ;;  %v1614_v42 = vrot.slane %v1600_v28, %v9010_v20  ;;  %v7481_v55 = vld.sshfl [vmem:[%s9004_s1 + $0x34] sm:$0x1 pattern:$0x75316420] }
  0x90   : > { %7777 = vmatpush3.bf16.msra.mxu0 %v8086_v5  ;;  %v1827_v5 = vrot.slane %v1811_v58, %v9010_v20  ;;  %v1908_v47 = vcombine.low %v1554_v34, %v1569_v26  ;;  %v7483_v57 = vld.sshfl [vmem:[%s9004_s1 + $0x3c] sm:$0x1 pattern:$0x75316420]  ;;  %v1630_v62 = vrot.slane %v7481_v55, %v9010_v20 }
  0x91   : > { %7778 = vmatprep.subr.bf16.mxu0 %v8087_v6  ;;  %v1909_v48 = vcombine.low %v1576_v27, %v1577_v38  ;;  %v1668_v3 = vrot.slane %v7483_v57, %v9010_v20 }
  0x92   : > { %v1918_v58 = vrot.slane %v1908_v47, %v9010_v20  ;;  %v7487_v47 = vld.sshfl [vmem:[%s9004_s1 + $0x4c] sm:$0x1 pattern:$0x75316420] }
  0x94   : > { %7779 = vmatpush3.bf16.msra.mxu0 %v8087_v6  ;;  %v1834_v6 = vrot.slane %v7489_v59, %v9010_v20  ;;  %v1925_v59 = vrot.slane %v1909_v48, %v9010_v20 }
  0x95   : > { %7780 = vmatprep.subr.bf16.mxu0 %v8088_v7 }
  0x98   : > { %7781 = vmatpush3.bf16.msra.mxu0 %v8088_v7  ;;  %v1841_v7 = vrot.slane %v1813_v60, %v9010_v20 }
  0x99   : > { %7782 = vmatprep.subr.bf16.mxu0 %v8089_v8 }
  0x9c   : > { %7783 = vmatpush3.bf16.msra.mxu0 %v8089_v8  ;;  %v1501_v8 = vcombine.high %v1493_v49, %v1493_v49 }
  0x9d   : > { %7816 = vmatprep.subr.bf16.mxu0 %v8675_v17 }
  0x9e   : > { %v1859_v24 = vcombine.low %v1500_v2, %v1501_v8 }
  0x9f   : > { %7785 = vmatmul.mubr.bf16.vlgmr.msra.gmra.mxu0 %v8091_v12  ;;  %v1516_v12 = vrot.slane %v7475_v61, %v9010_v20 }
  0xa0   : > { %7817 = vmatpush3.bf16.msra.mxu0 %v8092_v15  ;;  %7788 = vmatprep.mubr.bf16.mxu0 %v8095_v16  ;;  %v1808_v15 = vrot.slane %v1794_v1, %v9010_v20  ;;  %v1502_v16 = vcombine.high %v1500_v2, %v1500_v2  ;;  %v1869_v37 = vrot.slane %v1859_v24, %v9010_v20 }
  0xa1   : > { %7818 = vmatprep.subr.bf16.mxu0 %v8675_v17 }
  0xa2   : > { %v1809_v30 = vcombine.low %v1801_v11, %v1808_v15  ;;  %v1860_v31 = vcombine.low %v1502_v16, %v1516_v12 }
  0xa4   : > { %7819 = vmatpush3.bf16.msra.mxu0 %v8093_v18  ;;  %v1531_v18 = vrot.slane %v7476_v53, %v9010_v20  ;;  %v1876_v43 = vrot.slane %v1860_v31, %v9010_v20 }
  0xa5   : > { %7820 = vmatprep.subr.bf16.mxu0 %v8675_v17 }
  0xa6   : > { %v1861_v32 = vcombine.low %v1531_v18, %v1538_v19  ;;  %v7490_v33 = vcombine.high %v1531_v18, %v1538_v19  ;;  %v1891_v53 = vcombine.low %v1869_v37, %v1876_v43  ;;  %v7485_v18 = vld.sshfl [vmem:[%s9004_s1 + $0x44] sm:$0x1 pattern:$0x75316420] }
  0xa7   : > { %7789 = vmatmul.mubr.bf16.gmra.mxu0 %v8096_v23  ;;  %v1843_v23 = vcombine.low %v1834_v6, %v1841_v7  ;;  %v1940_v6 = vcombine.low %v1918_v58, %v1925_v59  ;;  %v7491_v7 = vcombine.high %v1607_v41, %v1614_v42  ;;  %v1706_v28 = vrot.slane %v7485_v18, %v9010_v20 }
  0xa8   : > { %7821 = vmatpush3.bf16.msra.mxu0 %v8094_v22  ;;  %7832 = vmatprep.mubr.msk.bf16.mxu0 %vm8676_vm0, %v8675_v17  ;;  %v1842_v22 = vcombine.low %v1820_v4, %v1827_v5  ;;  %v1883_v44 = vrot.slane %v1861_v32, %v9010_v20  ;;  %v1890_v45 = vrot.slane %v7490_v33, %v9010_v20  ;;  %v7484_v4 = vld.sshfl [vmem:[%s9004_s1 + $0x40] sm:$0x33 pattern:$0x75316420] }
  0xa9   : > { %7822 = vmatprep.subr.bf16.mxu0 %v8675_v17  ;;  %v1857_v36 = vrot.slane %v1843_v23, %v9010_v20  ;;  %v1899_v0 = vrot.slane %v1891_v53, %v9010_v20  ;;  %v7486_v5 = vld.sshfl [vmem:[%s9004_s1 + $0x48] sm:$0x33 pattern:$0x75316420]  ;;  %v1676_v11 = vcombine.high %v7484_v4, %v7484_v4  ;;  %v1948_v19 = vrot.slane %v1940_v6, %v9010_v20 }
  0xaa   : > { %v1850_v35 = vrot.slane %v1842_v22, %v9010_v20  ;;  %v1892_v54 = vcombine.low %v1883_v44, %v1890_v45  ;;  %v1714_v15 = vcombine.high %v7486_v5, %v7486_v5  ;;  %v1721_v16 = vrot.slane %v7486_v5, %v9010_v20  ;;  %v8103_v5 = vld [vmem:[#allocation5 + $0x30] sm:$0xff]  }
  0xab   : > { %v1967_v21 = vrot.slane %v7491_v7, %v9010_v20  ;;  %v1683_v22 = vrot.slane %v7484_v4, %v9010_v20  ;;  %v1690_v26 = vrot.slane %v1676_v11, %v9010_v20 }
  0xac   : > { %7823 = vmatpush3.bf16.msra.mxu0 %v8097_v29  ;;  %v7482_v29 = vld.sshfl [vmem:[%s9004_s1 + $0x38] sm:$0x33 pattern:$0x75316420]  ;;  %v1858_v52 = vcombine.low %v1850_v35, %v1857_v36  ;;  %v1906_v1 = vrot.slane %v1892_v54, %v9010_v20  ;;  %v2008_v36 = vcombine.low %v1706_v28, %v1721_v16 }
  0xad   : > { %7824 = vmatprep.subr.bf16.mxu0 %v8675_v17  ;;  %v1638_v46 = vcombine.high %v7482_v29, %v7482_v29  ;;  %v1645_v51 = vrot.slane %v7482_v29, %v9010_v20  ;;  %v1728_v29 = vrot.slane %v1714_v15, %v9010_v20  ;;  %v2006_v33 = vcombine.low %v1683_v22, %v1690_v26  ;;  %v8106_v15 = vld [vmem:[#allocation5 + $0x18] sm:$0xff]  }
  0xae   : > { %v1907_v12 = vcombine.low %v1899_v0, %v1906_v1  ;;  %v7492_v35 = vcombine.high %v1683_v22, %v1690_v26 }
  0xaf   : > { %v1652_v56 = vrot.slane %v1638_v46, %v9010_v20  ;;  %v1958_v9 = vcombine.low %v1630_v62, %v1645_v51 }
  0xb0   : > { %7825 = vmatpush3.bf16.msra.mxu0 %v8098_v39  ;;  %v1578_v39 = vcombine.high %v1576_v27, %v1576_v27 }
  0xb1   : > { %7826 = vmatprep.subr.bf16.mxu0 %v8675_v17  ;;  %v1654_v2 = vcombine.high %v1652_v56, %v1652_v56  ;;  %v1974_v24 = vrot.slane %v1958_v9, %v9010_v20 }
  0xb2   : > { %v1910_v49 = vcombine.low %v1578_v39, %v1592_v40  ;;  %v2016_v39 = vrot.slane %v2006_v33, %v9010_v20  ;;  %v8112_v33 = vld [vmem:[%s11835_s10 + $0x74] ss:$8 sps:$4 sm:$0xff]  }
  0xb3   : > { %v1960_v13 = vcombine.low %v1654_v2, %v1668_v3  ;;  %v1989_v32 = vcombine.low %v1967_v21, %v1974_v24  ;;  %v8102_v3 = vld [vmem:[#allocation5 + $0x38] sm:$0xff]   ;;  %v8107_v21 = vld [vmem:[#allocation5 + $0x10] sm:$0xff]  }
  0xb4   : > { %7827 = vmatpush3.bf16.msra.mxu0 %v8099_v50  ;;  %v1911_v50 = vcombine.low %v1607_v41, %v1614_v42  ;;  %v1932_v60 = vrot.slane %v1910_v49, %v9010_v20  ;;  %v2023_v41 = vrot.slane %v7492_v35, %v9010_v20  ;;  %v2030_v42 = vrot.slane %v2008_v36, %v9010_v20 }
  0xb5   : > { %7828 = vmatprep.subr.bf16.mxu0 %v8675_v17  ;;  %v1988_v27 = vrot.slane %v1960_v13, %v9010_v20  ;;  %v1997_v38 = vrot.slane %v1989_v32, %v9010_v20  ;;  %7792 = vmatprep.subr.bf16.mxu1 %v8102_v3 }
  0xb6   : > { %v1939_v61 = vrot.slane %v1911_v50, %v9010_v20  ;;  %v2038_v45 = vcombine.low %v2016_v39, %v2023_v41  ;;  %v1730_v50 = vcombine.high %v1728_v29, %v1728_v29  ;;  %7793 = vmatpush3.bf16.msra.mxu1 %v8102_v3 }
  0xb7   : > { %7794 = vmatprep.subr.bf16.mxu1 %v8103_v5 }
  0xb8   : > { %7829 = vmatpush3.bf16.msra.mxu0 %v8100_v63  ;;  %v1653_v63 = vcombine.high %v1645_v51, %v1645_v51  ;;  %v1941_v8 = vcombine.low %v1932_v60, %v1939_v61  ;;  %v2046_v48 = vrot.slane %v2038_v45, %v9010_v20  ;;  %v1744_v51 = vrot.slane %v7487_v47, %v9010_v20 }
  0xb9   : > { %7830 = vmatprep.subr.bf16.mxu0 %v8675_v17 }
  0xba   : > { %v1955_v23 = vrot.slane %v1941_v8, %v9010_v20  ;;  %v2055_v53 = vcombine.low %v1730_v50, %v1744_v51  ;;  %7795 = vmatpush3.bf16.msra.mxu1 %v8103_v5  ;;  %v8104_v8 = vld [vmem:[#allocation5 + $0x28] sm:$0xff]  }
  0xbb   : > { %7796 = vmatprep.subr.bf16.mxu1 %v8104_v8 }
  0xbc   : > { %7831 = vmatpush3.bf16.msra.mxu0 %v8101_v10  ;;  %v1959_v10 = vcombine.low %v1652_v56, %v1653_v63  ;;  %v1956_v31 = vcombine.low %v1948_v19, %v1955_v23  ;;  %v2062_v54 = vrot.slane %v2055_v53, %v9010_v20 }
  0xbe   : > { %v1981_v25 = vrot.slane %v1959_v10, %v9010_v20  ;;  %v2069_v55 = vrot.slane %v2062_v54, %v9010_v20  ;;  %7797 = vmatpush3.bf16.msra.mxu1 %v8104_v8  ;;  %v8105_v10 = vld [vmem:[#allocation5 + $0x20] sm:$0xff]  }
  0xbf   : > { %7833 = vmatmul.mubr.bf16.vlgmr.msra.gmra.mxu0 %v1809_v30  ;;  %v1729_v30 = vcombine.high %v1721_v16, %v1721_v16  ;;  %7798 = vmatprep.subr.bf16.mxu1 %v8105_v10 }
  0xc0   : > { %7836 = vmatprep.mubr.msk.bf16.mxu0 %vm8676_vm0, %v8675_v17  ;;  %v1990_v34 = vcombine.low %v1981_v25, %v1988_v27  ;;  %v8108_v25 = vld [vmem:[#allocation5 + $0x8] sm:$0xff]  }
  0xc1   : > { %v2009_v37 = vcombine.low %v1728_v29, %v1729_v30  ;;  %v8109_v29 = vld [vmem:[#allocation5] sm:$0xff]  }
  0xc2   : > { %v2004_v40 = vrot.slane %v1990_v34, %v9010_v20  ;;  %7799 = vmatpush3.bf16.msra.mxu1 %v8105_v10 }
  0xc3   : > { %v2037_v43 = vrot.slane %v2009_v37, %v9010_v20  ;;  %7800 = vmatprep.subr.bf16.mxu1 %v8106_v15 }
  0xc4   : > { %v2005_v44 = vcombine.low %v1997_v38, %v2004_v40 }
  0xc5   : > { %v2039_v46 = vcombine.low %v2030_v42, %v2037_v43 }
  0xc6   : > { %7801 = vmatpush3.bf16.msra.mxu1 %v8106_v15 }
  0xc7   : > { %7837 = vmatmul.mubr.bf16.gmra.mxu0 %v1858_v52  ;;  %v2053_v49 = vrot.slane %v2039_v46, %v9010_v20  ;;  %7802 = vmatprep.subr.bf16.mxu1 %v8107_v21 }
  0xc8   : > { %7840 = vmatprep.mubr.msk.bf16.mxu0 %vm8676_vm0, %v8675_v17 }
  0xc9   : > { %v2054_v52 = vcombine.low %v2046_v48, %v2053_v49 }
  0xca   : > { %7803 = vmatpush3.bf16.msra.mxu1 %v8107_v21 }
  0xcb   : > { %7804 = vmatprep.subr.bf16.mxu1 %v8108_v25 }
  0xce   : > { %7805 = vmatpush3.bf16.msra.mxu1 %v8108_v25 }
  0xcf   : > { %7841 = vmatmul.mubr.bf16.gmra.mxu0 %v1907_v12  ;;  %7806 = vmatprep.subr.bf16.mxu1 %v8109_v29 }
  0xd0   : > { %7844 = vmatprep.mubr.msk.bf16.mxu0 %vm8676_vm0, %v8675_v17 }
  0xd2   : > { %7807 = vmatpush3.bf16.msra.mxu1 %v8109_v29 }
  0xd3   : > { %2540 = vmatprep.subr.bf16.mxu1 %v8112_v33 }
  0xd7   : > { %7845 = vmatmul.mubr.bf16.gmra.mxu0 %v1956_v31 }
  0xd8   : > { %7848 = vmatprep.mubr.msk.bf16.mxu0 %vm8676_vm0, %v8675_v17 }
  0xdf   : > { %7849 = vmatmul.mubr.bf16.gmra.mxu0 %v2005_v44 }
  0xe0   : > { %7852 = vmatprep.mubr.msk.bf16.mxu0 %vm8676_vm0, %v8675_v17 }
  0xe7   : > { %7853 = vmatmul.mubr.bf16.gmra.mxu0 %v2054_v52 }
  0xe8   : > { %7856 = vmatprep.mubr.msk.bf16.mxu0 %vm8676_vm0, %v8675_v17  ;;  %vm9521_vm0 = vmor %vm3645_vm14, %vm3646_vm15 }
  0xef   : > { %7857 = vmatmul.mubr.bf16.gmra.mxu0 %v2069_v55 }
 0x15f   : > { %v9121_v56 = vpop.f32.mrf.mxu0 }
 0x160   : > { %11994 = vst [vmem:[#allocation27_spill] sm:$0xff] %v9121_v56  ;;  %1055 = vadd.xlane.f32.xlu1 %v9121_v56  ;;  %v1077_v0 = vmul.f32 %v9121_v56, %v9121_v56 }
 0x161   : > { %v9124_v57 = vpop.f32.mrf.mxu0 }
 0x162   : > { %11995 = vst [vmem:[#allocation28_spill] sm:$0xff] %v9124_v57  ;;  %1051 = vadd.xlane.f32.xlu0 %v9124_v57  ;;  %v1075_v59 = vmul.f32 %v9124_v57, %v9124_v57 }
 0x163   : > { %v9127_v58 = vpop.f32.mrf.mxu0 }
 0x164   : > { %11996 = vst [vmem:[#allocation29_spill] sm:$0xff] %v9127_v58  ;;  %1057 = vadd.xlane.f32.xlu1 %v9127_v58  ;;  %v1078_v63 = vmul.f32 %v9127_v58, %v9127_v58 }
 0x165   : > { %v9132_v60 = vpop.f32.mrf.mxu0 }
 0x166   : > { %11997 = vst [vmem:[#allocation30_spill] sm:$0xff] %v9132_v60  ;;  %1083 = vadd.xlane.f32.xlu0 %v1075_v59  ;;  %v1076_v17 = vmul.f32 %v9132_v60, %v9132_v60 }
 0x167   : > { %v9136_v61 = vpop.f32.mrf.mxu0 }
 0x168   : > { %11998 = vst [vmem:[#allocation31_spill] sm:$0xff] %v9136_v61  ;;  %1085 = vadd.xlane.f32.xlu1 %v1076_v17  ;;  %v1081_v9 = vmul.f32 %v9136_v61, %v9136_v61 }
 0x169   : > { %v9138_v62 = vpop.f32.mrf.mxu0 }
 0x16a   : > { %11999 = vst [vmem:[#allocation32_spill] sm:$0xff] %v9138_v62  ;;  %1053 = vadd.xlane.f32.xlu0 %v9132_v60  ;;  %v1079_v6 = vmul.f32 %v9138_v62, %v9138_v62 }
 0x16b   : > { %v9145_v1 = vpop.f32.mrf.mxu0 }
 0x16c   : > { %1089 = vadd.xlane.f32.xlu1 %v1078_v63  ;;  %12000 = vst [vmem:[#allocation33_spill] sm:$0xff] %v9145_v1  ;;  %v1082_v7 = vmul.f32 %v9145_v1, %v9145_v1 }
 0x16d   : > { %v9148_v2 = vpop.f32.mrf.mxu0 }
 0x16e   : > { %1087 = vadd.xlane.f32.xlu0 %v1077_v0  ;;  %12001 = vst [vmem:[#allocation34_spill] sm:$0xff] %v9148_v2  ;;  %v1080_v4 = vmul.f32 %v9148_v2, %v9148_v2 }
 0x170   : > { %1065 = vadd.xlane.f32.xlu1 %v9145_v1 }
 0x172   : > { %1063 = vadd.xlane.f32.xlu0 %v9136_v61 }
 0x174   : > { %1061 = vadd.xlane.f32.xlu1 %v9148_v2 }
 0x176   : > { %1059 = vadd.xlane.f32.xlu0 %v9138_v62 }
 0x178   : > { %1093 = vadd.xlane.f32.xlu1 %v1080_v4 }
 0x17a   : > { %1091 = vadd.xlane.f32.xlu0 %v1079_v6 }
 0x17c   : > { %1097 = vadd.xlane.f32.xlu1 %v1082_v7 }
 0x17e   : > { %1095 = vadd.xlane.f32.xlu0 %v1081_v9 }
 0x17f   : > { %v9161_v11 = vpop.f32.mrf.mxu0 }
 0x180   : > { %v2254_v13 = vmul.f32 %v9161_v11, %v9161_v11 }
 0x181   : > { %v7834_v12 = vpop.f32.mrf.mxu0 }
 0x182   : > { %2213 = vadd.xlane.f32.xlu0 %v9161_v11 }
 0x183   : > { %v9166_v16 = vpop.f32.mrf.mxu0 }
 0x184   : > { %2215 = vadd.xlane.f32.xlu1 %v9166_v16  ;;  %v2255_v18 = vmul.f32 %v9166_v16, %v9166_v16 }
 0x185   : > { %v7835_v19 = vpop.f32.mrf.mxu0 }
 0x186   : > { %2267 = vadd.xlane.f32.xlu0 %v2254_v13 }
 0x187   : > { %v9171_v22 = vpop.f32.mrf.mxu0 }
 0x188   : > { %2269 = vadd.xlane.f32.xlu1 %v2255_v18  ;;  %v2256_v24 = vmul.f32 %v9171_v22, %v9171_v22 }
 0x189   : > { %v7838_v23 = vpop.f32.mrf.mxu0 }
 0x18a   : > { %2217 = vadd.xlane.f32.xlu0 %v9171_v22 }
 0x18b   : > { %v9176_v26 = vpop.f32.mrf.mxu0 }
 0x18c   : > { %2219 = vadd.xlane.f32.xlu1 %v9176_v26  ;;  %v2257_v27 = vmul.f32 %v9176_v26, %v9176_v26 }
 0x18d   : > { %v7839_v28 = vpop.f32.mrf.mxu0 }
 0x18e   : > { %2271 = vadd.xlane.f32.xlu0 %v2256_v24 }
 0x18f   : > { %v9181_v30 = vpop.f32.mrf.mxu0 }
 0x190   : > { %2273 = vadd.xlane.f32.xlu1 %v2257_v27  ;;  %v2258_v32 = vmul.f32 %v9181_v30, %v9181_v30 }
 0x191   : > { %v7842_v31 = vpop.f32.mrf.mxu0 }
 0x192   : > { %2221 = vadd.xlane.f32.xlu0 %v9181_v30 }
 0x193   : > { %v9189_v34 = vpop.f32.mrf.mxu0 }
 0x194   : > { %2223 = vadd.xlane.f32.xlu1 %v9189_v34  ;;  %v2259_v35 = vmul.f32 %v9189_v34, %v9189_v34 }
 0x195   : > { %v7843_v36 = vpop.f32.mrf.mxu0 }
 0x196   : > { %2275 = vadd.xlane.f32.xlu0 %v2258_v32 }
 0x197   : > { %v9194_v37 = vpop.f32.mrf.mxu0 }
 0x198   : > { %2277 = vadd.xlane.f32.xlu1 %v2259_v35  ;;  %v2260_v39 = vmul.f32 %v9194_v37, %v9194_v37 }
 0x199   : > { %v7846_v38 = vpop.f32.mrf.mxu0 }
 0x19a   : > { %2225 = vadd.xlane.f32.xlu0 %v9194_v37 }
 0x19b   : > { %v9199_v40 = vpop.f32.mrf.mxu0 }
 0x19c   : > { %2227 = vadd.xlane.f32.xlu1 %v9199_v40  ;;  %v2261_v41 = vmul.f32 %v9199_v40, %v9199_v40 }
 0x19d   : > { %v7847_v42 = vpop.f32.mrf.mxu0 }
 0x19e   : > { %2279 = vadd.xlane.f32.xlu0 %v2260_v39 }
 0x19f   : > { %v9204_v43 = vpop.f32.mrf.mxu0 }
 0x1a0   : > { %2281 = vadd.xlane.f32.xlu1 %v2261_v41  ;;  %v2262_v45 = vmul.f32 %v9204_v43, %v9204_v43 }
 0x1a1   : > { %v7850_v44 = vpop.f32.mrf.mxu0 }
 0x1a2   : > { %2229 = vadd.xlane.f32.xlu0 %v9204_v43 }
 0x1a3   : > { %v9209_v46 = vpop.f32.mrf.mxu0 }
 0x1a4   : > { %2231 = vadd.xlane.f32.xlu1 %v9209_v46  ;;  %v2263_v47 = vmul.f32 %v9209_v46, %v9209_v46 }
 0x1a5   : > { %v7851_v48 = vpop.f32.mrf.mxu0 }
 0x1a6   : > { %2283 = vadd.xlane.f32.xlu0 %v2262_v45 }
 0x1a7   : > { %v9214_v49 = vpop.f32.mrf.mxu0 }
 0x1a8   : > { %2285 = vadd.xlane.f32.xlu1 %v2263_v47  ;;  %v2264_v51 = vmul.f32 %v9214_v49, %v9214_v49 }
 0x1a9   : > { %v7854_v50 = vpop.f32.mrf.mxu0 }
 0x1aa   : > { %2233 = vadd.xlane.f32.xlu0 %v9214_v49 }
 0x1ab   : > { %v9219_v52 = vpop.f32.mrf.mxu0 }
 0x1ac   : > { %2235 = vadd.xlane.f32.xlu1 %v9219_v52  ;;  %v2265_v53 = vmul.f32 %v9219_v52, %v9219_v52 }
 0x1ad   : > { %v7855_v54 = vpop.f32.mrf.mxu0 }
 0x1ae   : > { %2287 = vadd.xlane.f32.xlu0 %v2264_v51 }
 0x1af   : > { %v9224_v55 = vpop.f32.mrf.mxu0 }
 0x1b0   : > { %2289 = vadd.xlane.f32.xlu1 %v2265_v53  ;;  %v2238_v59 = vsel %vm2237_vm1, %v9224_v55, 0.0  ;;  %v2266_v17 = vmul.f32 %v9224_v55, %v9224_v55 }
 0x1b1   : > { %v7858_v63 = vpop.f32.mrf.mxu0 }
 0x1b2   : > { %2239 = vadd.xlane.f32.xlu0 %v2238_v59  ;;  %v2291_v0 = vsel %vm2237_vm1, %v2266_v17, 0.0 }
 0x1b3   : > { %v2210_v3 = vpop.f32.mrf.mxu0 }
 0x1b4   : > { %2292 = vadd.xlane.f32.xlu1 %v2291_v0 }
 0x1b5   : > { %v7859_v4 = vpop.f32.mrf.mxu0 }
 0x1e9   : > { %v1056_v5 = vpop.xlane.xlu1 %1055 }
 0x1ea   : > { %v9231_v21 = vmul.f32 0.03125, %v1056_v5 }
 0x1eb   : > { %v1052_v6 = vpop.xlane.xlu0 %1051 }
 0x1ec   : > { %v1067_v7 = vmul.f32 0.03125, %v1052_v6  ;;  %v1109_v33 = vmul.f32 %v9231_v21, %v9231_v21 }
 0x1ed   : > { %v1058_v8 = vpop.xlane.xlu1 %1057 }
 0x1ee   : > { %v1107_v10 = vmul.f32 %v1067_v7, %v1067_v7  ;;  %v9229_v15 = vmul.f32 0.03125, %v1058_v8  ;;  %v1123_v8 = vsub.f32 %v9124_v57, %v1067_v7 }
 0x1ef   : > { %v1084_v9 = vpop.xlane.xlu0 %1083 }
 0x1f0   : > { %v1099_v12 = vmul.f32 0.03125, %v1084_v9  ;;  %v1110_v27 = vmul.f32 %v9229_v15, %v9229_v15 }
 0x1f1   : > { %v1086_v13 = vpop.xlane.xlu1 %1085 }
 0x1f2   : > { %v1115_v18 = vsub.f32 %v1099_v12, %v1107_v10  ;;  %v1100_v28 = vmul.f32 0.03125, %v1086_v13 }
 0x1f3   : > { %v1054_v19 = vpop.xlane.xlu0 %1053 }
 0x1f4   : > { %v1131_v23 = vadd.f32 1e-05, %v1115_v18  ;;  %v1068_v24 = vmul.f32 0.03125, %v1054_v19 }
 0x1f5   : > { %v1090_v25 = vpop.xlane.xlu1 %1089 }
 0x1f6   : > { %v1108_v29 = vmul.f32 %v1068_v24, %v1068_v24  ;;  %v1102_v31 = vmul.f32 0.03125, %v1090_v25  ;;  %8166 = vrsqrt.f32 %v1131_v23  ;;  %v1124_v23 = vsub.f32 %v9132_v60, %v1068_v24 }
 0x1f7   : > { %v1088_v32 = vpop.xlane.xlu0 %1087 }
 0x1f8   : > { %v1116_v35 = vsub.f32 %v1100_v28, %v1108_v29  ;;  %v1118_v36 = vsub.f32 %v1102_v31, %v1110_v27  ;;  %v1101_v38 = vmul.f32 0.03125, %v1088_v32  ;;  %v9258_v32 = vld [vmem:[%s12002_s8] ss:$0 sm:$0xff]  ;;  %s11776_s8 = scalar_lea.hbm %s12295_s30, %s7657_s7 }
 0x1f9   : > { %v1066_v39 = vpop.xlane.xlu1 %1065 }
 0x1fa   : > { %v1132_v41 = vadd.f32 1e-05, %v1116_v35  ;;  %v1134_v42 = vadd.f32 1e-05, %v1118_v36  ;;  %v1117_v44 = vsub.f32 %v1101_v38, %v1109_v33  ;;  %v9243_v3 = vmul.f32 0.03125, %v1066_v39 }
 0x1fb   : > { %v1064_v45 = vpop.xlane.xlu0 %1063  ;;  %v1126_v35 = vsub.f32 %v9127_v58, %v9229_v15  ;;  %v9271_v15 = vld [vmem:[%s12003_s6] ss:$0 sm:$0xff]  ;;  %s8679_s6 = smov [#allocation13]  }
 0x1fc   : > { %8168 = vrsqrt.f32 %v1132_v41  ;;  %v1133_v47 = vadd.f32 1e-05, %v1117_v44  ;;  %v9248_v9 = vmul.f32 0.03125, %v1064_v45  ;;  %v1114_v12 = vmul.f32 %v9243_v3, %v9243_v3 }
 0x1fd   : > { %8170 = vrsqrt.f32 %v1134_v42  ;;  %v1062_v48 = vpop.xlane.xlu1 %1061  ;;  %v1125_v42 = vsub.f32 %v9121_v56, %v9231_v21 }
 0x1fe   : > { %8172 = vrsqrt.f32 %v1133_v47  ;;  %v9237_v50 = vmul.f32 0.03125, %v1062_v48  ;;  %v1113_v25 = vmul.f32 %v9248_v9, %v9248_v9 }
 0x1ff   : > { %v1060_v51 = vpop.xlane.xlu0 %1059 }
 0x200   : > { %v1112_v53 = vmul.f32 %v9237_v50, %v9237_v50  ;;  %v9241_v54 = vmul.f32 0.03125, %v1060_v51 }
 0x201   : > { %v1094_v59 = vpop.xlane.xlu1 %1093 }
 0x202   : > { %v1104_v17 = vmul.f32 0.03125, %v1094_v59  ;;  %v1111_v4 = vmul.f32 %v9241_v54, %v9241_v54 }
 0x203   : > { %v1092_v63 = vpop.xlane.xlu0 %1091  ;;  %v8167_v0 = vpop.eup %8166 }
 0x204   : > { %v1120_v5 = vsub.f32 %v1104_v17, %v1112_v53  ;;  %v1103_v6 = vmul.f32 0.03125, %v1092_v63  ;;  %v1147_v28 = vmul.f32 %v8167_v0, %v1123_v8 }
 0x205   : > { %v1098_v10 = vpop.xlane.xlu1 %1097 }
 0x206   : > { %v1136_v13 = vadd.f32 1e-05, %v1120_v5  ;;  %v1119_v18 = vsub.f32 %v1103_v6, %v1111_v4  ;;  %v1106_v19 = vmul.f32 0.03125, %v1098_v10  ;;  %v1162_v45 = vmul.f32 %v9258_v32, %v1147_v28  ;;  %v8110_v28 = vld [vmem:[%s11835_s10 + $0x70] ss:$8 sps:$4 sm:$0xff]  }
 0x207   : > { %v1096_v27 = vpop.xlane.xlu0 %1095 }
 0x208   : > { %8174 = vrsqrt.f32 %v1136_v13  ;;  %v1135_v29 = vadd.f32 1e-05, %v1119_v18  ;;  %v1122_v31 = vsub.f32 %v1106_v19, %v1114_v12  ;;  %v1105_v7 = vmul.f32 0.03125, %v1096_v27 }
 0x209   : > { %v8169_v33 = vpop.eup %8168  ;;  %v1177_v5 = vadd.f32 %v9271_v15, %v1162_v45  ;;  %v8113_v45 = vld [vmem:[%s11835_s10 + $0x60] ss:$8 sps:$4 sm:$0xff]  }
 0x20a   : > { %v8171_v36 = vpop.eup %8170  ;;  %v1148_v24 = vmul.f32 %v8169_v33, %v1124_v23  ;;  %8176 = vrsqrt.f32 %v1135_v29  ;;  %v1138_v38 = vadd.f32 1e-05, %v1122_v31  ;;  %v1121_v39 = vsub.f32 %v1105_v7, %v1113_v25  ;;  %v8115_v7 = vld [vmem:[%s11835_s10 + $0x64] ss:$8 sps:$4 sm:$0xff]  }
 0x20b   : > { %v8173_v41 = vpop.eup %8172  ;;  %v2214_v44 = vpop.xlane.xlu0 %2213  ;;  %v1150_v47 = vmul.f32 %v8171_v36, %v1126_v35 }
 0x20c   : > { %8178 = vrsqrt.f32 %v1138_v38  ;;  %v1137_v48 = vadd.f32 1e-05, %v1121_v39  ;;  %v9265_v51 = vmul.f32 0.03125, %v2214_v44  ;;  %v1163_v53 = vmul.f32 %v9258_v32, %v1148_v24 }
 0x20d   : > { %v2216_v59 = vpop.xlane.xlu1 %2215  ;;  %v1149_v17 = vmul.f32 %v8173_v41, %v1125_v42  ;;  %v1165_v63 = vmul.f32 %v9258_v32, %v1150_v47  ;;  %v1128_v24 = vsub.f32 %v9148_v2, %v9237_v50  ;;  %v1127_v41 = vsub.f32 %v9138_v62, %v9241_v54 }
 0x20e   : > { %8180 = vrsqrt.f32 %v1137_v48  ;;  %v2307_v21 = vmul.f32 %v9265_v51, %v9265_v51  ;;  %v9276_v0 = vmul.f32 0.03125, %v2216_v59  ;;  %v1178_v6 = vadd.f32 %v9271_v15, %v1163_v53  ;;  %v8118_v53 = vld [vmem:[%s11835_s10 + $0x54] ss:$8 sps:$4 sm:$0xff]  }
 0x20f   : > { %v2268_v4 = vpop.xlane.xlu0 %2267  ;;  %v1164_v8 = vmul.f32 %v9258_v32, %v1149_v17  ;;  %v1180_v23 = vadd.f32 %v9271_v15, %v1165_v63  ;;  %v1130_v54 = vsub.f32 %v9145_v1, %v9243_v3 }
 0x210   : > { %v2308_v10 = vmul.f32 %v9276_v0, %v9276_v0  ;;  %v2294_v12 = vmul.f32 0.03125, %v2268_v4  ;;  %v1185_v18 = vpack.c.bf16 %v1178_v6, %v1177_v5 }
 0x211   : > { %v2270_v13 = vpop.xlane.xlu1 %2269  ;;  %v1179_v19 = vadd.f32 %v9271_v15, %v1164_v8 }
 0x212   : > { %v2320_v25 = vsub.f32 %v2294_v12, %v2307_v21  ;;  %v2295_v27 = vmul.f32 0.03125, %v2270_v13  ;;  %7808 = vmatprep.mubr.bf16.mxu1 %v1185_v18  ;;  %v8116_v12 = vld [vmem:[%s11835_s10 + $0x50] ss:$8 sps:$4 sm:$0xff]  }
 0x213   : > { %v2218_v29 = vpop.xlane.xlu0 %2217  ;;  %v1186_v31 = vpack.c.bf16 %v1180_v23, %v1179_v19  ;;  %v1129_v19 = vsub.f32 %v9136_v61, %v9248_v9 }
 0x214   : > { %v2321_v33 = vsub.f32 %v2295_v27, %v2308_v10  ;;  %v9291_v35 = vmul.f32 0.03125, %v2218_v29  ;;  %v2346_v38 = vadd.f32 1e-05, %v2320_v25  ;;  %v8121_v25 = vld [vmem:[%s11835_s10 + $0x44] ss:$8 sps:$4 sm:$0xff]  }
 0x215   : > { %v8175_v36 = vpop.eup %8174  ;;  %7809 = vmatmul.mubr.bf16.vlgmr.msra.gmra.mxu1 %v1186_v31  ;;  %v2220_v39 = vpop.xlane.xlu1 %2219 }
 0x216   : > { %v2347_v42 = vadd.f32 1e-05, %v2321_v33  ;;  %v2309_v44 = vmul.f32 %v9291_v35, %v9291_v35  ;;  %2541 = vmatpush1.bf16.msra.mxu1 %v8110_v28  ;;  %v9302_v48 = vmul.f32 0.03125, %v2220_v39  ;;  %v1152_v59 = vmul.f32 %v8175_v36, %v1128_v24  ;;  %v8119_v39 = vld [vmem:[%s11835_s10 + $0x40] ss:$8 sps:$4 sm:$0xff]  }
 0x217   : > { %v8177_v47 = vpop.eup %8176  ;;  %2542 = vmatprep.subr.bf16.mxu1 %v8115_v7  ;;  %v2272_v50 = vpop.xlane.xlu0 %2271 }
 0x218   : > { %8182 = vrsqrt.f32 %v2347_v42  ;;  %v2296_v17 = vmul.f32 0.03125, %v2272_v50  ;;  %v1151_v63 = vmul.f32 %v8177_v47, %v1127_v41  ;;  %v2310_v4 = vmul.f32 %v9302_v48, %v9302_v48 }
 0x219   : > { %v8179_v21 = vpop.eup %8178  ;;  %8184 = vrsqrt.f32 %v2346_v38  ;;  %v2274_v5 = vpop.xlane.xlu1 %2273  ;;  %v1167_v6 = vmul.f32 %v9258_v32, %v1152_v59 }
 0x21a   : > { %v2322_v8 = vsub.f32 %v2296_v17, %v2309_v44  ;;  %2543 = vmatpush1.bf16.msra.mxu1 %v8113_v45  ;;  %v2297_v10 = vmul.f32 0.03125, %v2274_v5  ;;  %v1166_v3 = vmul.f32 %v9258_v32, %v1151_v63  ;;  %v1154_v13 = vmul.f32 %v8179_v21, %v1130_v54  ;;  %v8124_v45 = vld [vmem:[%s11835_s10 + $0x34] ss:$8 sps:$4 sm:$0xff]  }
 0x21b   : > { %v8181_v18 = vpop.eup %8180  ;;  %2544 = vmatprep.subr.bf16.mxu1 %v8118_v53  ;;  %v2222_v23 = vpop.xlane.xlu0 %2221  ;;  %v1182_v33 = vadd.f32 %v9271_v15, %v1167_v6  ;;  %v8127_v6 = vld [vmem:[%s11835_s10 + $0x24] ss:$8 sps:$4 sm:$0xff]  }
 0x21c   : > { %v2323_v27 = vsub.f32 %v2297_v10, %v2310_v4  ;;  %v9321_v28 = vmul.f32 0.03125, %v2222_v23  ;;  %v1181_v29 = vadd.f32 %v9271_v15, %v1166_v3  ;;  %v2348_v31 = vadd.f32 1e-05, %v2322_v8  ;;  %v8122_v4 = vld [vmem:[%s11835_s10 + $0x30] ss:$8 sps:$4 sm:$0xff]  }
 0x21d   : > { %v2224_v7 = vpop.xlane.xlu1 %2223  ;;  %v1153_v36 = vmul.f32 %v8181_v18, %v1129_v19  ;;  %v1169_v24 = vmul.f32 %v9258_v32, %v1154_v13 }
 0x21e   : > { %v2349_v38 = vadd.f32 1e-05, %v2323_v27  ;;  %v2311_v9 = vmul.f32 %v9321_v28, %v9321_v28  ;;  %2545 = vmatpush1.bf16.msra.mxu1 %v8116_v12  ;;  %v9331_v41 = vmul.f32 0.03125, %v2224_v7  ;;  %v1187_v44 = vpack.c.bf16 %v1182_v33, %v1181_v29 }
 0x21f   : > { %2546 = vmatprep.subr.bf16.mxu1 %v8121_v25  ;;  %v2276_v42 = vpop.xlane.xlu0 %2275  ;;  %v1168_v47 = vmul.f32 %v9258_v32, %v1153_v36  ;;  %v1184_v17 = vadd.f32 %v9271_v15, %v1169_v24  ;;  %v8125_v25 = vld [vmem:[%s11835_s10 + $0x20] ss:$8 sps:$4 sm:$0xff]   ;;  %v8677_v27 = vmov 0   ;;  %v2333_v29 = vsub.f32 %v9161_v11, %v9265_v51  ;;  %v8128_v51 = vld [vmem:[%s11835_s10 + $0x10] ss:$8 sps:$4 sm:$0xff]  }
 0x220   : > { %8186 = vrsqrt.f32 %v2349_v38  ;;  %v2298_v50 = vmul.f32 0.03125, %v2276_v42  ;;  %v2312_v53 = vmul.f32 %v9331_v41, %v9331_v41  ;;  %7812 = vmatprep.mubr.bf16.mxu1 %v1187_v44  ;;  %v8133_v44 = vld [vmem:[%s11835_s10 + $0x4] ss:$8 sps:$4 sm:$0xff]  }
 0x221   : > { %8188 = vrsqrt.f32 %v2348_v31  ;;  %v2278_v59 = vpop.xlane.xlu1 %2277  ;;  %v1183_v54 = vadd.f32 %v9271_v15, %v1168_v47  ;;  %v2334_v15 = vsub.f32 %v9166_v16, %v9276_v0  ;;  %v8130_v31 = vld [vmem:[%s11835_s10 + $0x14] ss:$8 sps:$4 sm:$0xff]  }
 0x222   : > { %v2324_v63 = vsub.f32 %v2298_v50, %v2311_v9  ;;  %2547 = vmatpush1.bf16.msra.mxu1 %v8119_v39  ;;  %v2299_v21 = vmul.f32 0.03125, %v2278_v59  ;;  %v9372_v39 = vld [vmem:[%s12004_s3] ss:$0 sm:$0xff]  ;;  %v2336_v59 = vsub.f32 %v9176_v26, %v9302_v48  ;;  %v2335_v26 = vsub.f32 %v9171_v22, %v9291_v35  ;;  %s8576_s3 = sshll.u32 %s8679_s6, 4  ;;  %s8577_s3 = int_to_ptr.vmem [resolvable:$false] %s8576_s3 }
 0x223   : > { %2548 = vmatprep.subr.bf16.mxu1 %v8124_v45  ;;  %v2226_v32 = vpop.xlane.xlu0 %2225  ;;  %v1188_v5 = vpack.c.bf16 %v1184_v17, %v1183_v54  ;;  %p8579_p12 = scmp.lt.s32.totalorder %s11771_s2, %s8577_s3 }
 0x224   : > { %v2325_v8 = vsub.f32 %v2299_v21, %v2312_v53  ;;  %v9347_v10 = vmul.f32 0.03125, %v2226_v32  ;;  %v2350_v3 = vadd.f32 1e-05, %v2324_v63 }
 0x225   : > { %v8183_v12 = vpop.eup %8182  ;;  %7813 = vmatmul.mubr.bf16.gmra.mxu1 %v1188_v5  ;;  %v2228_v13 = vpop.xlane.xlu1 %2227  ;;  %v8131_v5 = vld [vmem:[%s11835_s10] ss:$8 sps:$4 sm:$0xff]  }
 0x226   : > { %v8185_v18 = vpop.eup %8184  ;;  %v2351_v19 = vadd.f32 1e-05, %v2325_v8  ;;  %v2313_v23 = vmul.f32 %v9347_v10, %v9347_v10  ;;  %2549 = vmatpush1.bf16.msra.mxu1 %v8122_v4  ;;  %2572 = vmatprep.mubr.bf16.mxu1 %v8677_v27  ;;  %v9359_v16 = vmul.f32 0.03125, %v2228_v13  ;;  %v2373_v7 = vmul.f32 %v8183_v12, %v2334_v15 }
 0x227   : > { %2550 = vmatprep.subr.bf16.mxu1 %v8127_v6  ;;  %v2280_v0 = vpop.xlane.xlu0 %2279  ;;  %v2372_v38 = vmul.f32 %v8185_v18, %v2333_v29  ;;  %v9391_v6 = vld [vmem:[%s12005_s23] ss:$0 sm:$0xff] }
 0x228   : > { %8190 = vrsqrt.f32 %v2351_v19  ;;  %v2300_v33 = vmul.f32 0.03125, %v2280_v0  ;;  %v2314_v36 = vmul.f32 %v9359_v16, %v9359_v16  ;;  %v2393_v45 = vmul.f32 %v9372_v39, %v2373_v7 }
 0x229   : > { %8192 = vrsqrt.f32 %v2350_v3  ;;  %v2282_v24 = vpop.xlane.xlu1 %2281  ;;  %v2392_v63 = vmul.f32 %v9372_v39, %v2372_v38 }
 0x22a   : > { %v2326_v9 = vsub.f32 %v2300_v33, %v2313_v23  ;;  %2551 = vmatpush1.bf16.msra.mxu1 %v8125_v25  ;;  %v2301_v11 = vmul.f32 0.03125, %v2282_v24  ;;  %v2413_v12 = vadd.f32 %v9391_v6, %v2393_v45 }
 0x22b   : > { %2552 = vmatprep.subr.bf16.mxu1 %v8130_v31  ;;  %v2230_v42 = vpop.xlane.xlu0 %2229  ;;  %v2412_v19 = vadd.f32 %v9391_v6, %v2392_v63 }
 0x22c   : > { %v2327_v47 = vsub.f32 %v2301_v11, %v2314_v36  ;;  %v9378_v50 = vmul.f32 0.03125, %v2230_v42  ;;  %v2352_v54 = vadd.f32 1e-05, %v2326_v9  ;;  %v2338_v36 = vsub.f32 %v9189_v34, %v9331_v41 }
 0x22d   : > { %v8187_v53 = vpop.eup %8186  ;;  %v2232_v17 = vpop.xlane.xlu1 %2231  ;;  %v2425_v29 = vpack.c.bf16 %v2413_v12, %v2412_v19  ;;  %v2340_v12 = vsub.f32 %v9199_v40, %v9359_v16 }
 0x22e   : > { %v8189_v21 = vpop.eup %8188  ;;  %v2353_v4 = vadd.f32 1e-05, %v2327_v47  ;;  %v2315_v32 = vmul.f32 %v9378_v50, %v9378_v50  ;;  %2553 = vmatpush1.bf16.msra.mxu1 %v8128_v51  ;;  %v9395_v48 = vmul.f32 0.03125, %v2232_v17  ;;  %v2375_v15 = vmul.f32 %v8187_v53, %v2336_v59 }
 0x22f   : > { %2554 = vmatprep.subr.bf16.mxu1 %v8133_v44  ;;  %v2284_v8 = vpop.xlane.xlu0 %2283  ;;  %v2374_v23 = vmul.f32 %v8189_v21, %v2335_v26  ;;  %v2337_v44 = vsub.f32 %v9181_v30, %v9321_v28 }
 0x230   : > { %8194 = vrsqrt.f32 %v2353_v4  ;;  %v2302_v3 = vmul.f32 0.03125, %v2284_v8  ;;  %v2316_v13 = vmul.f32 %v9395_v48, %v9395_v48  ;;  %v2395_v0 = vmul.f32 %v9372_v39, %v2375_v15 }
 0x231   : > { %8196 = vrsqrt.f32 %v2352_v54  ;;  %v2286_v18 = vpop.xlane.xlu1 %2285  ;;  %v2394_v9 = vmul.f32 %v9372_v39, %v2374_v23 }
 0x232   : > { %v2328_v25 = vsub.f32 %v2302_v3, %v2315_v32  ;;  %2555 = vmatpush1.bf16.msra.mxu1 %v8131_v5  ;;  %v2303_v22 = vmul.f32 0.03125, %v2286_v18  ;;  %v2415_v34 = vadd.f32 %v9391_v6, %v2395_v0 }
 0x233   : > { %v2234_v35 = vpop.xlane.xlu0 %2233  ;;  %v2414_v17 = vadd.f32 %v9391_v6, %v2394_v9  ;;  %v2341_v9 = vsub.f32 %v9204_v43, %v9378_v50 }
 0x234   : > { %v2329_v31 = vsub.f32 %v2303_v22, %v2316_v13  ;;  %v9402_v7 = vmul.f32 0.03125, %v2234_v35  ;;  %v2354_v24 = vadd.f32 1e-05, %v2328_v25  ;;  %v2339_v25 = vsub.f32 %v9194_v37, %v9347_v10 }
 0x235   : > { %v8191_v33 = vpop.eup %8190  ;;  %2573 = vmatmul.mubr.bf16.vlgmr.msra.gmra.mxu1 %v2425_v29  ;;  %v2236_v38 = vpop.xlane.xlu1 %2235  ;;  %v2426_v30 = vpack.c.bf16 %v2415_v34, %v2414_v17 }
 0x236   : > { %v8193_v11 = vpop.eup %8192  ;;  %v2355_v51 = vadd.f32 1e-05, %v2329_v31  ;;  %v2317_v42 = vmul.f32 %v9402_v7, %v9402_v7  ;;  %2582 = vmatprep.mubr.bf16.mxu1 %v8677_v27  ;;  %v9412_v45 = vmul.f32 0.03125, %v2236_v38  ;;  %v2377_v41 = vmul.f32 %v8191_v33, %v2338_v36 }
 0x237   : > { %v2288_v47 = vpop.xlane.xlu0 %2287  ;;  %v2376_v63 = vmul.f32 %v8193_v11, %v2337_v44  ;;  %v2342_v38 = vsub.f32 %v9209_v46, %v9395_v48  ;;  %v2343_v43 = vsub.f32 %v9214_v49, %v9402_v7 }
 0x238   : > { %8198 = vrsqrt.f32 %v2355_v51  ;;  %v2304_v53 = vmul.f32 0.03125, %v2288_v47  ;;  %v2318_v59 = vmul.f32 %v9412_v45, %v9412_v45  ;;  %v2397_v28 = vmul.f32 %v9372_v39, %v2377_v41 }
 0x239   : > { %8200 = vrsqrt.f32 %v2354_v24  ;;  %v2290_v54 = vpop.xlane.xlu1 %2289  ;;  %v2396_v13 = vmul.f32 %v9372_v39, %v2376_v63  ;;  %v2344_v48 = vsub.f32 %v9219_v52, %v9412_v45 }
 0x23a   : > { %v2330_v21 = vsub.f32 %v2304_v53, %v2317_v42  ;;  %v2305_v4 = vmul.f32 0.03125, %v2290_v54  ;;  %v2417_v35 = vadd.f32 %v9391_v6, %v2397_v28 }
 0x23b   : > { %v2240_v32 = vpop.xlane.xlu0 %2239  ;;  %v2416_v16 = vadd.f32 %v9391_v6, %v2396_v13 }
 0x23c   : > { %v2331_v5 = vsub.f32 %v2305_v4, %v2318_v59  ;;  %v2253_v26 = vmul.f32 0.03125, %v2240_v32  ;;  %v2356_v15 = vadd.f32 1e-05, %v2330_v21 }
 0x23d   : > { %v8195_v8 = vpop.eup %8194  ;;  %2583 = vmatmul.mubr.bf16.gmra.mxu1 %v2426_v30  ;;  %v2293_v3 = vpop.xlane.xlu1 %2292  ;;  %v2427_v33 = vpack.c.bf16 %v2417_v35, %v2416_v16  ;;  %v2448_v16 = vld [vmem:[%s11836_s11] sm:$0x3] }
 0x23e   : > { %v8197_v18 = vpop.eup %8196  ;;  %v2357_v19 = vadd.f32 1e-05, %v2331_v5  ;;  %v2319_v23 = vmul.f32 %v2253_v26, %v2253_v26  ;;  %2592 = vmatprep.mubr.bf16.mxu1 %v8677_v27  ;;  %v2306_v22 = vmul.f32 0.03125, %v2293_v3  ;;  %v2379_v29 = vmul.f32 %v8195_v8, %v2340_v12 }
 0x23f   : > { %v2378_v0 = vmul.f32 %v8197_v18, %v2339_v25  ;;  %v2345_v52 = vsub.f32 %v9224_v55, %v2253_v26  ;;  %v9457_v55 = vld [vmem:[%s11834_s9] ss:$0 sm:$0xff] }
 0x240   : > { %8202 = vrsqrt.f32 %v2357_v19  ;;  %v2332_v40 = vsub.f32 %v2306_v22, %v2319_v23  ;;  %v2399_v36 = vmul.f32 %v9372_v39, %v2379_v29  ;;  %v2456_v29 = vsub.s32 1, %v8999_v14 }
 0x241   : > { %8204 = vrsqrt.f32 %v2356_v15  ;;  %v2398_v37 = vmul.f32 %v9372_v39, %v2378_v0 }
 0x242   : > { %v2358_v31 = vadd.f32 1e-05, %v2332_v40  ;;  %v2419_v11 = vadd.f32 %v9391_v6, %v2399_v36 }
 0x243   : > { %v2418_v42 = vadd.f32 %v9391_v6, %v2398_v37 }
 0x244   : > { %8206 = vrsqrt.f32 %v2358_v31  ;;  %v9487_v31 = vrot.slane %v2448_v16, %v2456_v29 }
 0x245   : > { %v8199_v24 = vpop.eup %8198  ;;  %2593 = vmatmul.mubr.bf16.gmra.mxu1 %v2427_v33  ;;  %v2428_v47 = vpack.c.bf16 %v2419_v11, %v2418_v42 }
 0x246   : > { %v8201_v10 = vpop.eup %8200  ;;  %2602 = vmatprep.mubr.bf16.mxu1 %v8677_v27  ;;  %v2381_v51 = vmul.f32 %v8199_v24, %v2342_v38  ;;  %12012 = vst [vmem:[#allocation41_spill] sm:$0xff] %v9487_v31 }
 0x247   : > { %v2380_v44 = vmul.f32 %v8201_v10, %v2341_v9 }
 0x248   : > { %v2401_v34 = vmul.f32 %v9372_v39, %v2381_v51 }
 0x249   : > { %v2400_v41 = vmul.f32 %v9372_v39, %v2380_v44 }
 0x24a   : > { %v2421_v50 = vadd.f32 %v9391_v6, %v2401_v34 }
 0x24b   : > { %v2420_v54 = vadd.f32 %v9391_v6, %v2400_v41 }
 0x24d   : > { %v8203_v46 = vpop.eup %8202  ;;  %2603 = vmatmul.mubr.bf16.gmra.mxu1 %v2428_v47  ;;  %v2429_v63 = vpack.c.bf16 %v2421_v50, %v2420_v54 }
 0x24e   : > { %v8205_v53 = vpop.eup %8204  ;;  %2612 = vmatprep.mubr.bf16.mxu1 %v8677_v27  ;;  %v2383_v59 = vmul.f32 %v8203_v46, %v2344_v48 }
 0x24f   : > { %v2382_v17 = vmul.f32 %v8205_v53, %v2343_v43  ;;  %v2452_v43 = vsub.s32 0, %v8999_v14 }
 0x250   : > { %v2403_v21 = vmul.f32 %v9372_v39, %v2383_v59 }
 0x251   : > { %v8207_v4 = vpop.eup %8206  ;;  %v2402_v45 = vmul.f32 %v9372_v39, %v2382_v17 }
 0x252   : > { %v2423_v32 = vadd.f32 %v9391_v6, %v2403_v21  ;;  %v2384_v49 = vmul.f32 %v8207_v4, %v2345_v52 }
 0x253   : > { %v2422_v7 = vadd.f32 %v9391_v6, %v2402_v45  ;;  %v8678_v45 = vmov 1983009808  }
 0x254   : > { %v2404_v28 = vmul.f32 %v9372_v39, %v2384_v49  ;;  %v12017_v49 = vmov 0 }
 0x255   : > { %2613 = vmatmul.mubr.bf16.gmra.mxu1 %v2429_v63  ;;  %v2430_v30 = vpack.c.bf16 %v2423_v32, %v2422_v7  ;;  %v3468_v32 = vunpack.c.l.s4 %v8678_v45  ;;  %v12018_v49 = vsel %vm9521_vm0, 4294967295, %v12017_v49 }
 0x256   : > { %2622 = vmatprep.mubr.bf16.mxu1 %v8677_v27  ;;  %v2424_v5 = vadd.f32 %v9391_v6, %v2404_v28  ;;  %12019 = vst [vmem:[#allocation46_spill] sm:$0xff] %v12018_v49  ;;  %v9527_v28 = vrot.slane %v2448_v16, %v2452_v43 }
 0x258   : > { %v2431_v8 = vpack.c.bf16 %v2424_v5, %v2424_v5 }
 0x25d   : > { %2623 = vmatmul.mubr.bf16.gmra.mxu1 %v2430_v30 }
 0x25e   : > { %2632 = vmatprep.mubr.bf16.mxu1 %v8677_v27 }
 0x265   : > { %2633 = vmatmul.mubr.bf16.gmra.mxu1 %v2431_v8 }
 0x2d5   : > { %v7810_v26 = vpop.f32.mrf.mxu1 }
 0x2d6   : > { %v9460_v12 = vadd.f32 %v7810_v26, %v9457_v55 }
 0x2d7   : > { %v9462_v15 = vpop.f32.mrf.mxu1 }
 0x2d8   : > { %12006 = vst [vmem:[#allocation35_spill] sm:$0xff] %v9460_v12 }
 0x2d9   : > { %v7811_v3 = vpop.f32.mrf.mxu1 }
 0x2da   : > { %v9465_v39 = vadd.f32 %v7811_v3, %v9457_v55 }
 0x2db   : > { %v9467_v27 = vpop.f32.mrf.mxu1 }
 0x2dc   : > { %12007 = vst [vmem:[#allocation36_spill] sm:$0xff] %v9465_v39 }
 0x2e5   : > { %v7814_v6 = vpop.f32.mrf.mxu1 }
 0x2e6   : > { %v9470_v13 = vadd.f32 %v7814_v6, %v9457_v55 }
 0x2e7   : > { %v1310_v18 = vpop.f32.mrf.mxu1 }
 0x2e8   : > { %12008 = vst [vmem:[#allocation37_spill] sm:$0xff] %v9470_v13  ;;  %v9473_v19 = vadd.f32 %v9457_v55, %v1310_v18 }
 0x2e9   : > { %v7815_v23 = vpop.f32.mrf.mxu1 }
 0x2ea   : > { %12009 = vst [vmem:[#allocation38_spill] sm:$0xff] %v9473_v19  ;;  %v9476_v25 = vadd.f32 %v7815_v23, %v9457_v55 }
 0x2eb   : > { %v1313_v22 = vpop.f32.mrf.mxu1 }
 0x2ec   : > { %12010 = vst [vmem:[#allocation39_spill] sm:$0xff] %v9476_v25  ;;  %v9479_v35 = vadd.f32 %v9457_v55, %v1313_v22 }
 0x2ee   : > { %12011 = vst [vmem:[#allocation40_spill] sm:$0xff] %v9479_v35 }
 0x2f5   : > { %v9482_v40 = vpop.f32.mrf.mxu1 }
 0x2f7   : > { %v2576_v0 = vpop.f32.mrf.mxu1 }
 0x2f8   : > { %v2577_v24 = vadd.f32 %v2576_v0, %v9487_v31  ;;  %v3469_v0 = vunpack.c.0.s8 %v3468_v32 }
 0x2f9   : > { %v9489_v33 = vpop.f32.mrf.mxu1 }
 0x2fb   : > { %v2580_v36 = vpop.f32.mrf.mxu1 }
 0x2fc   : > { %v2581_v38 = vadd.f32 %v2580_v36, %v9487_v31 }
 0x2fd   : > { %v2584_v37 = vpop.f32.mrf.mxu1 }
 0x2fe   : > { %v3021_v10 = vpack.c.bf16 %v2581_v38, %v2577_v24  ;;  %v7525_v11 = vpack.c.bf16 %v2581_v38, %v2581_v38 }
 0x2ff   : > { %v2586_v9 = vpop.f32.mrf.mxu1 }
 0x300   : > { %v3042_v51 = vrot.slane %v3021_v10, %v9010_v20  ;;  %v3049_v34 = vrot.slane %v7525_v11, %v9010_v20 }
 0x301   : > { %v2588_v42 = vpop.f32.mrf.mxu1 }
 0x302   : > { %v3050_v44 = vcombine.high %v3042_v51, %v3042_v51  ;;  %v9496_v46 = vrot.slane %v3042_v51, %v9010_v20  ;;  %v3065_v54 = vrot.slane %v3049_v34, %v9010_v20  ;;  %v9541_v29 = vadd.f32 %v2588_v42, %v9527_v28 }
 0x303   : > { %v2590_v47 = vpop.f32.mrf.mxu1  ;;  %v3051_v10 = vcombine.high %v3049_v34, %v3049_v34 }
 0x304   : > { %12013 = vst [vmem:[#allocation42_spill] sm:$0xff] %v9496_v46  ;;  %v9499_v48 = vrot.slane %v3050_v44, %v9010_v20  ;;  %v9505_v53 = vcombine.high %v9496_v46, %v9496_v46  ;;  %v5291_v21 = vshrl.u32 %v9496_v46, 16  ;;  %v5320_v18 = vshll.u32 %v3065_v54, 16 }
 0x305   : > { %v9501_v41 = vpop.f32.mrf.mxu1  ;;  %v9549_v44 = vadd.f32 %v2584_v37, %v9527_v28  ;;  %v9563_v37 = vsub.s32 %v3469_v0, %v8999_v14 }
 0x306   : > { %12014 = vst [vmem:[#allocation43_spill] sm:$0xff] %v9499_v48  ;;  %12015 = vst [vmem:[#allocation44_spill] sm:$0xff] %v9505_v53  ;;  %v9510_v50 = vcombine.high %v9499_v48, %v9499_v48  ;;  %v5296_v17 = vshll.u32 %v9499_v48, 16  ;;  %v5299_v63 = vshrl.u32 %v9499_v48, 16  ;;  %v5304_v4 = vshll.u32 %v9505_v53, 16 }
 0x307   : > { %v9512_v59 = vpop.f32.mrf.mxu1  ;;  %v5307_v7 = vshrl.u32 %v9505_v53, 16  ;;  %v11861_v23 = vunpack.c.l.bf16 %v9499_v48  ;;  %v11862_v22 = vunpack.c.l.bf16 %v9505_v53 }
 0x308   : > { %12016 = vst [vmem:[#allocation45_spill] sm:$0xff] %v9510_v50  ;;  %v5312_v30 = vshll.u32 %v9510_v50, 16  ;;  %v5298_v5 = vsel %vm9521_vm0, %v5291_v21, %v5296_v17  ;;  %v5306_v8 = vsel %vm9521_vm0, %v5299_v63, %v5304_v4  ;;  %v5315_v26 = vshrl.u32 %v9510_v50, 16 }
 0x309   : > { %v9519_v52 = vpop.f32.mrf.mxu1  ;;  %v5586_v24 = vunpack.c.l.bf16 %v5298_v5  ;;  %v5587_v38 = vunpack.c.l.bf16 %v5306_v8  ;;  %v11863_v11 = vunpack.c.l.bf16 %v9510_v50  ;;  %v2591_v63 = vadd.f32 %v2590_v47, %v9487_v31 }
 0x30a   : > { %v5314_v6 = vsel %vm9521_vm0, %v5307_v7, %v5312_v30  ;;  %v5322_v36 = vsel %vm9521_vm0, %v5315_v26, %v5320_v18  ;;  %v5810_v21 = vunpack.c.l.bf16 %v3065_v54  ;;  %v5826_v4 = vcombine.low %v11861_v23, %v11862_v22 }
 0x30b   : > { %v9534_v3 = vpop.f32.mrf.mxu1  ;;  %v5588_v51 = vunpack.c.l.bf16 %v5314_v6  ;;  %v5589_v17 = vunpack.c.l.bf16 %v5322_v36  ;;  %v5650_v42 = vcombine.low %v5586_v24, %v5587_v38  ;;  %v2587_v7 = vadd.f32 %v2586_v9, %v9487_v31 }
 0x30c   : > { %v9567_v30 = vrot.slane %v3051_v10, %v9010_v20  ;;  %v9569_v47 = vcombine.high %v3065_v54, %v3065_v54  ;;  %v5827_v5 = vcombine.low %v11863_v11, %v5810_v21  ;;  %v5834_v14 = vrot.slane %v5826_v4, %v9563_v37 }
 0x30d   : > { %v9543_v16 = vpop.f32.mrf.mxu1  ;;  %v5651_v32 = vcombine.low %v5588_v51, %v5589_v17  ;;  %v5658_v26 = vrot.slane %v5650_v42, %v9563_v37  ;;  %v3022_v18 = vpack.c.bf16 %v2591_v63, %v2587_v7  ;;  %v7526_v9 = vpack.c.bf16 %v2591_v63, %v2591_v63 }
 0x30e   : > { %v5841_v0 = vrot.slane %v5827_v5, %v9563_v37  ;;  %v9586_v38 = vcombine.high %v9567_v30, %v9567_v30  ;;  %v5070_v10 = vunpack.c.l.bf16 %v9567_v30  ;;  %v11864_v51 = vunpack.c.l.bf16 %v9569_v47 }
 0x30f   : > { %v9551_v43 = vpop.f32.mrf.mxu1  ;;  %v5665_v6 = vrot.slane %v5651_v32, %v9563_v37  ;;  %v3091_v54 = vrot.slane %v3022_v18, %v9010_v20  ;;  %v3098_v63 = vrot.slane %v7526_v9, %v9010_v20 }
 0x310   : > { %v9590_v17 = vcombine.low %v5834_v14, %v5841_v0  ;;  %v11868_v5 = vunpack.c.l.bf16 %v9586_v38  ;;  %v5340_v0 = vshrl.u32 %v9586_v38, 16 }
 0x311   : > { %v9560_v45 = vpop.f32.mrf.mxu1  ;;  %v9581_v24 = vcombine.low %v5658_v26, %v5665_v6  ;;  %v3099_v21 = vcombine.high %v3091_v54, %v3091_v54  ;;  %v9596_v4 = vrot.slane %v3091_v54, %v9010_v20  ;;  %v5147_v26 = vcombine.low %v5070_v10, %v11864_v51 }
 0x312   : > { %12022 = vst [vmem:[#allocation49_spill] sm:$0xff] %v9590_v17  ;;  %v9612_v9 = vrot.slane %v3098_v63, %v9010_v20 }
 0x313   : > { %v9573_v8 = vpop.f32.mrf.mxu1  ;;  %12021 = vst [vmem:[#allocation48_spill] sm:$0xff] %v9581_v24  ;;  %v9601_v7 = vrot.slane %v3099_v21, %v9010_v20  ;;  %v11867_v6 = vunpack.c.l.bf16 %v9596_v4  ;;  %v5345_v18 = vshll.u32 %v9596_v4, 16  ;;  %v5348_v22 = vshrl.u32 %v9596_v4, 16 }
 0x314   : > { %v5155_v51 = vrot.slane %v5147_v26, %v9563_v37  ;;  %v9728_v24 = vadd.f32 %v9543_v16, %v9527_v28  ;;  %v2611_v16 = vadd.f32 %v9573_v8, %v9487_v31 }
 0x315   : > { %v9579_v36 = vpop.f32.mrf.mxu1  ;;  %v9616_v54 = vcombine.high %v9601_v7, %v9601_v7  ;;  %v5148_v10 = vcombine.low %v11868_v5, %v11867_v6  ;;  %v5347_v23 = vsel %vm9521_vm0, %v5340_v0, %v5345_v18  ;;  %v5353_v11 = vshll.u32 %v9601_v7, 16 }
 0x316   : > { %12020 = vst [vmem:[#allocation47_spill] sm:$0xff] %v9579_v36  ;;  %v9635_v6 = vadd.f32 %v9489_v33, %v9527_v28  ;;  %v5370_v18 = vshll.u32 %v9612_v9, 16  ;;  %v11873_v33 = vunpack.c.l.bf16 %v9612_v9  ;;  %v5592_v60 = vunpack.c.l.bf16 %v5347_v23 }
 0x317   : > { %v9592_v42 = vpop.f32.mrf.mxu1  ;;  %v5162_v34 = vrot.slane %v5148_v10, %v9563_v37  ;;  %v5365_v2 = vshrl.u32 %v9616_v54, 16  ;;  %v5355_v5 = vsel %vm9521_vm0, %v5348_v22, %v5353_v11  ;;  %v2575_v10 = vadd.f32 %v9482_v40, %v9527_v28 }
 0x318   : > { %v5593_v58 = vunpack.c.l.bf16 %v5355_v5  ;;  %v3100_v23 = vcombine.high %v3098_v63, %v3098_v63  ;;  %v2597_v5 = vadd.f32 %v9512_v59, %v9487_v31  ;;  %v7519_v53 = vpack.c.bf16 %v9635_v6, %v9635_v6 }
 0x319   : > { %v9598_v32 = vpop.f32.mrf.mxu1  ;;  %v9641_v62 = vcombine.low %v5155_v51, %v5162_v34  ;;  %v9649_v61 = vsel %vm9521_vm0, %v5365_v2, %v5370_v18  ;;  %v2641_v11 = vpack.c.bf16 %v9635_v6, %v2575_v10  ;;  %v12031_v34 = vunpack.c.l.bf16 %v9616_v54 }
 0x31a   : > { %12023 = vst [vmem:[#allocation50_spill] sm:$0xff] %v9598_v32  ;;  %12028 = vst [vmem:[#allocation55_spill] sm:$0xff] %v9649_v61  ;;  %v9655_v0 = vcombine.low %v5592_v60, %v5593_v58  ;;  %v9665_v2 = vadd.f32 %v9501_v41, %v9527_v28  ;;  %v9673_v58 = vadd.f32 %v9519_v52, %v9527_v28 }
 0x31b   : > { %v9608_v14 = vpop.f32.mrf.mxu1  ;;  %12026 = vst [vmem:[#allocation53_spill] sm:$0xff] %v9641_v62  ;;  %v9661_v51 = vcombine.low %v12031_v34, %v11873_v33  ;;  %v2601_v60 = vadd.f32 %v9534_v3, %v9487_v31  ;;  %v2662_v10 = vrot.slane %v2641_v11, %v9010_v20  ;;  %v9683_v63 = vrot.slane %v3100_v23, %v9010_v20 }
 0x31c   : > { %12030 = vst [vmem:[#allocation57_spill] sm:$0xff] %v9655_v0  ;;  %v7528_v46 = vpack.c.bf16 %v2611_v16, %v2611_v16  ;;  %v2669_v8 = vrot.slane %v7519_v53, %v9010_v20 }
 0x31d   : > { %v9622_v21 = vpop.f32.mrf.mxu1  ;;  %12032 = vst [vmem:[#allocation58_spill] sm:$0xff] %v9661_v51  ;;  %v3023_v34 = vpack.c.bf16 %v2601_v60, %v2597_v5  ;;  %12035 = vst [vmem:[#allocation61_spill] sm:$0xff] %v9683_v63  ;;  %v2670_v57 = vcombine.high %v2662_v10, %v2662_v10  ;;  %v3132_v3 = vcombine.high %v9683_v63, %v9683_v63 }
 0x31e   : > { %12024 = vst [vmem:[#allocation51_spill] sm:$0xff] %v9622_v21  ;;  %v7527_v41 = vpack.c.bf16 %v2601_v60, %v2601_v60 }
 0x31f   : > { %v9631_v1 = vpop.f32.mrf.mxu1  ;;  %v9686_v59 = vrot.slane %v3023_v34, %v9010_v20  ;;  %v9695_v11 = vrot.slane %v2670_v57, %v9010_v20  ;;  %v5078_v23 = vunpack.c.l.bf16 %v3132_v3  ;;  %v5390_v34 = vshrl.u32 %v3132_v3, 16 }
 0x320   : > { %12025 = vst [vmem:[#allocation52_spill] sm:$0xff] %v9631_v1  ;;  %v3147_v3 = vrot.slane %v7527_v41, %v9010_v20 }
 0x321   : > { %v9643_v26 = vpop.f32.mrf.mxu1  ;;  %v9692_v56 = vrot.slane %v9686_v59, %v9010_v20  ;;  %v9708_v17 = vcombine.high %v9695_v11, %v9695_v11  ;;  %v11880_v60 = vunpack.c.l.bf16 %v9695_v11 }
 0x322   : > { %12027 = vst [vmem:[#allocation54_spill] sm:$0xff] %v9643_v26 }
 0x323   : > { %v9652_v22 = vpop.f32.mrf.mxu1  ;;  %12036 = vst [vmem:[#allocation62_spill] sm:$0xff] %v9692_v56  ;;  %v11877_v5 = vunpack.c.l.bf16 %v9692_v56  ;;  %v5395_v62 = vshll.u32 %v9692_v56, 16 }
 0x324   : > { %12029 = vst [vmem:[#allocation56_spill] sm:$0xff] %v9652_v22 }
 0x325   : > { %v9667_v40 = vpop.f32.mrf.mxu1 }
 0x326   : > { %12033 = vst [vmem:[#allocation59_spill] sm:$0xff] %v9667_v40  ;;  %v9786_v40 = vrot.slane %v2669_v8, %v9010_v20 }
 0x327   : > { %v9677_v18 = vpop.f32.mrf.mxu1 }
 0x328   : > { %12034 = vst [vmem:[#allocation60_spill] sm:$0xff] %v9677_v18  ;;  %v9724_v18 = vadd.f32 %v9560_v45, %v9527_v28  ;;  %v2607_v45 = vadd.f32 %v9551_v43, %v9487_v31  ;;  %v4176_v36 = vunpack.c.l.bf16 %v9786_v40 }
 0x329   : > { %v2638_v33 = vpop.f32.mrf.mxu1 }
 0x32a   : > { %v9698_v33 = vrot.slane %v2662_v10, %v9010_v20  ;;  %v9716_v10 = vsel %vm9521_vm0, %v5390_v34, %v5395_v62  ;;  %v3149_v34 = vcombine.high %v3147_v3, %v3147_v3  ;;  %v3024_v50 = vpack.c.bf16 %v2611_v16, %v2607_v45 }
 0x32b   : > { %v2639_v52 = vpop.f32.mrf.mxu1  ;;  %12038 = vst [vmem:[#allocation64_spill] sm:$0xff] %v9716_v10 }
 0x32c   : > { %v9703_v52 = vcombine.low %v5078_v23, %v11877_v5  ;;  %v9712_v57 = vcombine.high %v9698_v33, %v9698_v33  ;;  %v3401_v23 = vunpack.c.l.bf16 %v9698_v33  ;;  %v11883_v5 = vunpack.c.l.bf16 %v9708_v17 }
 0x32d   : > { %v9752_v1 = vrot.slane %v3149_v34, %v9010_v20  ;;  %v2671_v34 = vcombine.high %v2669_v8, %v2669_v8  ;;  %v12047_v8 = vpack.c.bf16 %v9541_v29, %v9549_v44  ;;  %v9816_v44 = vcombine.high %v9786_v40, %v9786_v40 }
 0x32e   : > { %12037 = vst [vmem:[#allocation63_spill] sm:$0xff] %v9703_v52  ;;  %v11884_v48 = vunpack.c.l.bf16 %v9712_v57  ;;  %v3465_v62 = vcombine.low %v3401_v23, %v11880_v60 }
 0x32f   : > { %12039 = vst [vmem:[#allocation65_spill] sm:$0xff] %v9752_v1  ;;  %v9763_v45 = vcombine.high %v9752_v1, %v9752_v1  ;;  %v12049_v35 = vunpack.c.l.bf16 %v9752_v1 }
 0x330   : > { %v3466_v41 = vcombine.low %v11884_v48, %v11883_v5  ;;  %v3473_v23 = vrot.slane %v3465_v62, %v9563_v37  ;;  %v9749_v5 = vadd.f32 %v9457_v55, %v9462_v15  ;;  %v3189_v48 = vrot.slane %v3024_v50, %v9010_v20 }
 0x331   : > { %v3196_v62 = vrot.slane %v7528_v46, %v9010_v20  ;;  %12041 = vst [vmem:[#allocation67_spill] sm:$0xff] %v9763_v45  ;;  %v11900_v12 = vunpack.c.l.bf16 %v9763_v45 }
 0x332   : > { %v3480_v60 = vrot.slane %v3466_v41, %v9563_v37  ;;  %v9759_v41 = vrot.slane %v3147_v3, %v9010_v20  ;;  %v3197_v15 = vcombine.high %v3189_v48, %v3189_v48  ;;  %v5444_v3 = vshll.u32 %v9763_v45, 16 }
 0x333   : > { %v3198_v16 = vcombine.high %v3196_v62, %v3196_v62  ;;  %v9771_v50 = vrot.slane %v3196_v62, %v9010_v20  ;;  %v9789_v62 = vrot.slane %v2671_v34, %v9010_v20  ;;  %v2711_v34 = vrot.slane %v12047_v8, %v9010_v20 }
 0x334   : > { %v3481_v43 = vcombine.low %v3473_v23, %v3480_v60  ;;  %12040 = vst [vmem:[#allocation66_spill] sm:$0xff] %v9759_v41  ;;  %v3205_v60 = vrot.slane %v3189_v48, %v9010_v20  ;;  %v9768_v53 = vcombine.high %v9759_v41, %v9759_v41  ;;  %v9774_v46 = vrot.slane %v3197_v15, %v9010_v20 }
 0x335   : > { %12043 = vst [vmem:[#allocation69_spill] sm:$0xff] %v9771_v50  ;;  %v9792_v15 = vrot.slane %v3198_v16, %v9010_v20  ;;  %v5089_v52 = vunpack.c.l.bf16 %v9771_v50  ;;  %v5477_v13 = vshll.u32 %v9771_v50, 16  ;;  %v9822_v8 = vcombine.high %v9789_v62, %v9789_v62 }
 0x336   : > { %v3609_v6 = vmul.f32 %v3481_v43, %v9749_v5  ;;  %12042 = vst [vmem:[#allocation68_spill] sm:$0xff] %v9768_v53  ;;  %12044 = vst [vmem:[#allocation70_spill] sm:$0xff] %v9774_v46  ;;  %v9777_v23 = vcombine.high %v3205_v60, %v3205_v60  ;;  %v9781_v43 = vcombine.high %v9774_v46, %v9774_v46  ;;  %v5086_v48 = vunpack.c.l.bf16 %v9774_v46 }
 0x337   : > { %v5452_v22 = vshll.u32 %v3205_v60, 16  ;;  %v5439_v10 = vshrl.u32 %v9768_v53, 16 }
 0x338   : > { %3617 = vadd.xlane.f32.xlu0 %v3609_v6  ;;  %12045 = vst [vmem:[#allocation71_spill] sm:$0xff] %v9777_v23  ;;  %12046 = vst [vmem:[#allocation72_spill] sm:$0xff] %v9781_v43  ;;  %v5447_v6 = vshrl.u32 %v9763_v45, 16  ;;  %v5087_v51 = vunpack.c.l.bf16 %v9777_v23  ;;  %v5088_v21 = vunpack.c.l.bf16 %v9781_v43  ;;  %v5472_v56 = vshrl.u32 %v9781_v43, 16 }
 0x339   : > { %v5446_v25 = vsel %vm9521_vm0, %v5439_v10, %v5444_v3  ;;  %v12048_v43 = vunpack.c.l.bf16 %v9768_v53 }
 0x33a   : > { %v5454_v26 = vsel %vm9521_vm0, %v5447_v6, %v5452_v22  ;;  %v5215_v16 = vcombine.low %v5086_v48, %v5087_v51  ;;  %v5216_v46 = vcombine.low %v5088_v21, %v5089_v52  ;;  %v9812_v22 = vadd.f32 %v9457_v55, %v9467_v27 }
 0x33b   : > { %v5480_v48 = vshrl.u32 %v9771_v50, 16  ;;  %v5485_v6 = vshll.u32 %v9792_v15, 16  ;;  %v5479_v55 = vsel %vm9521_vm0, %v5472_v56, %v5477_v13  ;;  %v9829_v27 = vrot.slane %v2711_v34, %v9010_v20 }
 0x33c   : > { %v5223_v10 = vrot.slane %v5215_v16, %v9563_v37  ;;  %v5230_v3 = vrot.slane %v5216_v46, %v9563_v37  ;;  %v5604_v23 = vunpack.c.l.bf16 %v5446_v25  ;;  %v5605_v50 = vunpack.c.l.bf16 %v5454_v26 }
 0x33d   : > { %v5487_v41 = vsel %vm9521_vm0, %v5480_v48, %v5485_v6  ;;  %v5894_v19 = vcombine.low %v12049_v35, %v12048_v43  ;;  %v5608_v16 = vunpack.c.l.bf16 %v5479_v55  ;;  %v5814_v13 = vunpack.c.l.bf16 %v3205_v60 }
 0x33e   : > { %v9837_v39 = vcombine.low %v5223_v10, %v5230_v3  ;;  %v5609_v46 = vunpack.c.l.bf16 %v5487_v41  ;;  %v9840_v56 = vcombine.low %v5604_v23, %v5605_v50  ;;  %v5815_v25 = vunpack.c.l.bf16 %v9792_v15 }
 0x33f   : > { %v5911_v26 = vcombine.low %v5087_v51, %v5088_v21  ;;  %v12051_v48 = vunpack.c.l.bf16 %v9712_v57  ;;  %v12052_v35 = vunpack.c.l.bf16 %v9695_v11  ;;  %v3649_v6 = vshrl.u32 %v9698_v33, 16 }
 0x340   : > { %12050 = vst [vmem:[#allocation73_spill] sm:$0xff] %v9837_v39  ;;  %v9843_v32 = vcombine.low %v5608_v16, %v5609_v46  ;;  %v2719_v41 = vcombine.high %v2711_v34, %v2711_v34  ;;  %v5895_v50 = vcombine.low %v11900_v12, %v5814_v13  ;;  %v12053_v60 = vunpack.c.l.bf16 %v9708_v17 }
 0x341   : > { %v4192_v43 = vcombine.low %v12052_v35, %v12051_v48  ;;  %v5902_v10 = vrot.slane %v5894_v19, %v9563_v37  ;;  %v5912_v3 = vcombine.low %v5089_v52, %v5815_v25  ;;  %v5919_v55 = vrot.slane %v5911_v26, %v9563_v37 }
 0x342   : > { %v4193_v23 = vcombine.low %v12053_v60, %v4176_v36  ;;  %v5909_v51 = vrot.slane %v5895_v50, %v9563_v37  ;;  %v3405_v33 = vunpack.c.l.bf16 %v9789_v62  ;;  %v3406_v34 = vunpack.c.l.bf16 %v9816_v44 }
 0x343   : > { %v4200_v21 = vrot.slane %v4192_v43, %v9563_v37  ;;  %v3678_v46 = vshll.u32 %v9786_v40, 16  ;;  %v5926_v13 = vrot.slane %v5912_v3, %v9563_v37  ;;  %v3407_v36 = vunpack.c.l.bf16 %v9822_v8 }
 0x344   : > { %v4207_v16 = vrot.slane %v4193_v23, %v9563_v37  ;;  %v3408_v19 = vunpack.c.l.bf16 %v9829_v27  ;;  %v9867_v52 = vrot.slane %v2719_v41, %v9010_v20  ;;  %v9869_v25 = vcombine.low %v5902_v10, %v5909_v51 }
 0x345   : > { %v3482_v48 = vcombine.low %v3405_v33, %v3406_v34  ;;  %v9871_v35 = vcombine.low %v5919_v55, %v5926_v13  ;;  %v3654_v50 = vshll.u32 %v9695_v11, 16  ;;  %v3657_v40 = vshrl.u32 %v9695_v11, 16 }
 0x346   : > { %12054 = vst [vmem:[#allocation74_spill] sm:$0xff] %v9869_v25  ;;  %v4208_v26 = vcombine.low %v4200_v21, %v4207_v16  ;;  %v3483_v43 = vcombine.low %v3407_v36, %v3408_v19  ;;  %v3662_v3 = vshll.u32 %v9712_v57, 16  ;;  %v3665_v41 = vshrl.u32 %v9712_v57, 16 }
 0x347   : > { %12055 = vst [vmem:[#allocation75_spill] sm:$0xff] %v9871_v35  ;;  %v3490_v23 = vrot.slane %v3482_v48, %v9563_v37  ;;  %v3656_v21 = vsel %vm9521_vm0, %v3649_v6, %v3654_v50  ;;  %v3670_v55 = vshll.u32 %v9708_v17, 16  ;;  %v3673_v51 = vshrl.u32 %v9708_v17, 16 }
 0x348   : > { %v4336_v60 = vmul.f32 %v4208_v26, %v9749_v5  ;;  %v3497_v10 = vrot.slane %v3483_v43, %v9563_v37  ;;  %v3664_v11 = vsel %vm9521_vm0, %v3657_v40, %v3662_v3  ;;  %v3944_v16 = vunpack.c.l.bf16 %v3656_v21 }
 0x349   : > { %v4177_v33 = vunpack.c.l.bf16 %v9867_v52  ;;  %v4209_v13 = vcombine.low %v3406_v34, %v3407_v36  ;;  %v3672_v57 = vsel %vm9521_vm0, %v3665_v41, %v3670_v55  ;;  %v3680_v48 = vsel %vm9521_vm0, %v3673_v51, %v3678_v46 }
 0x34a   : > { %4344 = vadd.xlane.f32.xlu0 %v4336_v60  ;;  %v3498_v26 = vcombine.low %v3490_v23, %v3497_v10  ;;  %v3945_v6 = vunpack.c.l.bf16 %v3664_v11  ;;  %v3946_v43 = vunpack.c.l.bf16 %v3672_v57  ;;  %v3947_v50 = vunpack.c.l.bf16 %v3680_v48 }
 0x34b   : > { %v4210_v12 = vcombine.low %v3408_v19, %v4177_v33  ;;  %v2617_v40 = vadd.f32 %v9592_v42, %v9487_v31  ;;  %v9896_v34 = vadd.f32 %v9608_v14, %v9487_v31  ;;  %v4217_v23 = vrot.slane %v4209_v13, %v9563_v37 }
 0x34c   : > { %v3610_v17 = vmul.f32 %v3498_v26, %v9812_v22  ;;  %v4008_v60 = vcombine.low %v3944_v16, %v3945_v6  ;;  %v4009_v36 = vcombine.low %v3946_v43, %v3947_v50  ;;  %v7520_v14 = vpack.c.bf16 %v9541_v29, %v9541_v29 }
 0x34d   : > { %12056 = vst [vmem:[#allocation76_spill] sm:$0xff] %v9896_v34  ;;  %v4224_v3 = vrot.slane %v4210_v12, %v9563_v37  ;;  %v3025_v46 = vpack.c.bf16 %v9896_v34, %v2617_v40  ;;  %v9912_v12 = vcombine.high %v9792_v15, %v9792_v15  ;;  %v4386_v33 = vmul.f32 %v3498_v26, %v9749_v5 }
 0x34e   : > { %3619 = vadd.xlane.f32.xlu1 %v3610_v17  ;;  %v4016_v19 = vrot.slane %v4008_v60, %v9563_v37  ;;  %v4023_v41 = vrot.slane %v4009_v36, %v9563_v37  ;;  %v2718_v16 = vrot.slane %v7520_v14, %v9010_v20  ;;  %v9924_v48 = vcombine.high %v9867_v52, %v9867_v52 }
 0x34f   : > { %v4225_v10 = vcombine.low %v4217_v23, %v4224_v3  ;;  %v9905_v55 = vrot.slane %v3025_v46, %v9010_v20  ;;  %v5497_v13 = vshrl.u32 %v9912_v12, 16  ;;  %v9932_v6 = vcombine.high %v9829_v27, %v9829_v27 }
 0x350   : > { %v4024_v21 = vcombine.low %v4016_v19, %v4023_v41  ;;  %v2720_v57 = vcombine.high %v2718_v16, %v2718_v16  ;;  %v9935_v26 = vrot.slane %v2718_v16, %v9010_v20  ;;  %v5337_v50 = vshll.u32 %v9586_v38, 16 }
 0x351   : > { %v4337_v42 = vmul.f32 %v4225_v10, %v9812_v22  ;;  %v9916_v11 = vrot.slane %v9905_v55, %v9010_v20  ;;  %v3410_v40 = vunpack.c.l.bf16 %v9924_v48  ;;  %v11901_v60 = vunpack.c.l.bf16 %v9912_v12 }
 0x352   : > { %v4152_v51 = vmul.f32 %v4024_v21, %v9749_v5  ;;  %v9940_v17 = vrot.slane %v2720_v57, %v9010_v20  ;;  %v5324_v36 = vshrl.u32 %v9567_v30, 16  ;;  %v5329_v23 = vshll.u32 %v9569_v47, 16 }
 0x353   : > { %4346 = vadd.xlane.f32.xlu1 %v4337_v42  ;;  %v5502_v29 = vshll.u32 %v9916_v11, 16  ;;  %v11902_v43 = vunpack.c.l.bf16 %v9916_v11  ;;  %v5332_v3 = vshrl.u32 %v9569_v47, 16  ;;  %v3409_v46 = vunpack.c.l.bf16 %v9932_v6 }
 0x354   : > { %4160 = vadd.xlane.f32.xlu0 %v4152_v51  ;;  %v3411_v41 = vunpack.c.l.bf16 %v9935_v26  ;;  %v3412_v42 = vunpack.c.l.bf16 %v9940_v17  ;;  %v4517_v14 = vmul.f32 %v4225_v10, %v9749_v5  ;;  %v9961_v51 = vcombine.high %v9935_v26, %v9935_v26 }
 0x355   : > { %v9928_v15 = vsel %vm9521_vm0, %v5497_v13, %v5502_v29  ;;  %v9952_v19 = vcombine.low %v11901_v60, %v11902_v43  ;;  %v5339_v21 = vsel %vm9521_vm0, %v5332_v3, %v5337_v50  ;;  %v3499_v30 = vcombine.low %v3409_v46, %v3410_v40 }
 0x356   : > { %12057 = vst [vmem:[#allocation77_spill] sm:$0xff] %v9928_v15  ;;  %v4226_v16 = vcombine.low %v3410_v40, %v3411_v41  ;;  %v3500_v13 = vcombine.low %v3411_v41, %v3412_v42  ;;  %v5591_v57 = vunpack.c.l.bf16 %v5339_v21  ;;  %v4178_v50 = vunpack.c.l.bf16 %v9961_v51 }
 0x357   : > { %12058 = vst [vmem:[#allocation78_spill] sm:$0xff] %v9952_v19  ;;  %v3507_v29 = vrot.slane %v3499_v30, %v9563_v37  ;;  %v9971_v43 = vcombine.high %v9612_v9, %v9612_v9  ;;  %v7521_v40 = vpack.c.bf16 %v9673_v58, %v9673_v58  ;;  %v12061_v41 = vunpack.c.l.bf16 %v9586_v38 }
 0x358   : > { %4394 = vadd.xlane.f32.xlu0 %v4386_v33  ;;  %v5331_v33 = vsel %vm9521_vm0, %v5324_v36, %v5329_v23  ;;  %v3514_v3 = vrot.slane %v3500_v13, %v9563_v37  ;;  %v4227_v60 = vcombine.low %v3412_v42, %v4178_v50  ;;  %v4234_v10 = vrot.slane %v4226_v16, %v9563_v37 }
 0x359   : > { %v5590_v46 = vunpack.c.l.bf16 %v5331_v33  ;;  %12059 = vst [vmem:[#allocation79_spill] sm:$0xff] %v9971_v43  ;;  %v12062_v21 = vunpack.c.l.bf16 %v9569_v47  ;;  %v3129_v42 = vcombine.high %v9596_v4, %v9596_v4  ;;  %v11903_v16 = vunpack.c.l.bf16 %v9683_v63 }
 0x35a   : > { %v9975_v36 = vcombine.low %v3507_v29, %v3514_v3  ;;  %v5362_v13 = vshll.u32 %v9616_v54, 16  ;;  %v12064_v38 = vpack.c.bf16 %v9673_v58, %v9665_v2  ;;  %v5381_v50 = vshrl.u32 %v9683_v63, 16 }
 0x35b   : > { %v9977_v23 = vcombine.low %v5590_v46, %v5591_v57  ;;  %v9983_v30 = vcombine.low %v12062_v21, %v12061_v41  ;;  %v5378_v57 = vshll.u32 %v9683_v63, 16  ;;  %v2767_v3 = vrot.slane %v7521_v40, %v9010_v20 }
 0x35c   : > { %4525 = vadd.xlane.f32.xlu0 %v4517_v14  ;;  %v4241_v14 = vrot.slane %v4227_v60, %v9563_v37  ;;  %v4387_v33 = vmul.f32 %v9975_v36, %v9812_v22  ;;  %v2760_v29 = vrot.slane %v12064_v38, %v9010_v20  ;;  %v5386_v60 = vshll.u32 %v9971_v43, 16 }
 0x35d   : > { %12060 = vst [vmem:[#allocation80_spill] sm:$0xff] %v9977_v23  ;;  %12063 = vst [vmem:[#allocation81_spill] sm:$0xff] %v9983_v30  ;;  %v3682_v46 = vshrl.u32 %v9789_v62, 16  ;;  %v5357_v58 = vshrl.u32 %v3129_v42, 16  ;;  %v12065_v21 = vunpack.c.l.bf16 %v9612_v9  ;;  %v5373_v40 = vshrl.u32 %v9612_v9, 16 }
 0x35e   : > { %v9996_v47 = vcombine.low %v4234_v10, %v4241_v14  ;;  %4396 = vadd.xlane.f32.xlu1 %v4387_v33  ;;  %v5074_v38 = vunpack.c.l.bf16 %v3129_v42  ;;  %v2768_v41 = vcombine.high %v2760_v29, %v2760_v29  ;;  %v5811_v9 = vunpack.c.l.bf16 %v9601_v7 }
 0x35f   : > { %v10012_v14 = vcombine.low %v12065_v21, %v11903_v16  ;;  %v10020_v2 = vsel %vm9521_vm0, %v5357_v58, %v5362_v13  ;;  %v10024_v10 = vsel %vm9521_vm0, %v5373_v40, %v5378_v57  ;;  %v10028_v21 = vsel %vm9521_vm0, %v5381_v50, %v5386_v60  ;;  %v12073_v57 = vld [vmem:[#allocation50_spill] sm:$0xff] }
 0x360   : > { %v4518_v62 = vmul.f32 %v9996_v47, %v9812_v22  ;;  %12067 = vst [vmem:[#allocation83_spill] sm:$0xff] %v10020_v2  ;;  %12068 = vst [vmem:[#allocation84_spill] sm:$0xff] %v10024_v10  ;;  %v2769_v16 = vcombine.high %v2767_v3, %v2767_v3  ;;  %v3711_v33 = vshll.u32 %v9867_v52, 16  ;;  %v10034_v13 = vrot.slane %v2760_v29, %v9010_v20  ;;  %v12075_v52 = vld [vmem:[#allocation47_spill] sm:$0xff] }
 0x361   : > { %12066 = vst [vmem:[#allocation82_spill] sm:$0xff] %v10012_v14  ;;  %12069 = vst [vmem:[#allocation85_spill] sm:$0xff] %v10028_v21  ;;  %v10037_v58 = vrot.slane %v2767_v3, %v9010_v20  ;;  %v12070_v40 = vunpack.c.l.bf16 %v9616_v54  ;;  %v10051_v3 = vrot.slane %v2768_v41, %v9010_v20  ;;  %v3148_v54 = vcombine.high %v9686_v59, %v9686_v59 }
 0x362   : > { %4527 = vadd.xlane.f32.xlu1 %v4518_v62  ;;  %v10061_v60 = vrot.slane %v2769_v16, %v9010_v20  ;;  %v10065_v62 = vcombine.high %v10034_v13, %v10034_v13  ;;  %v3687_v16 = vshll.u32 %v9816_v44, 16  ;;  %v3703_v42 = vshll.u32 %v9829_v27, 16 }
 0x363   : > { %v10042_v50 = vcombine.low %v5074_v38, %v12070_v40  ;;  %v12071_v38 = vunpack.c.l.bf16 %v9596_v4  ;;  %v10069_v41 = vcombine.high %v10037_v58, %v10037_v58  ;;  %v7522_v59 = vpack.c.bf16 %v9724_v18, %v9724_v18 }
 0x364   : > { %v3690_v35 = vshrl.u32 %v9816_v44, 16  ;;  %v2619_v39 = vadd.f32 %v12073_v57, %v9527_v28  ;;  %v3698_v25 = vshrl.u32 %v9822_v8, 16  ;;  %v3689_v45 = vsel %vm9521_vm0, %v3682_v46, %v3687_v16 }
 0x365   : > { %v10058_v40 = vcombine.low %v12071_v38, %v5811_v9  ;;  %v3695_v38 = vshll.u32 %v9822_v8, 16  ;;  %v12072_v9 = vpack.c.bf16 %v9724_v18, %v9728_v24  ;;  %v3706_v18 = vshrl.u32 %v9829_v27, 16 }
 0x366   : > { %v10102_v44 = vrot.slane %v3148_v54, %v9010_v20  ;;  %v2615_v57 = vadd.f32 %v12075_v52, %v9527_v28  ;;  %v3705_v8 = vsel %vm9521_vm0, %v3698_v25, %v3703_v42  ;;  %v2816_v46 = vrot.slane %v7522_v59, %v9010_v20  ;;  %v12076_v52 = vld [vmem:[#allocation35_spill] sm:$0xff] }
 0x367   : > { %v2809_v4 = vrot.slane %v12072_v9, %v9010_v20  ;;  %v3697_v24 = vsel %vm9521_vm0, %v3690_v35, %v3695_v38  ;;  %v3713_v35 = vsel %vm9521_vm0, %v3706_v18, %v3711_v33  ;;  %v7523_v38 = vpack.c.bf16 %v2619_v39, %v2619_v39 }
 0x368   : > { %12074 = vst [vmem:[#allocation50_spill] sm:$0xff] %v10102_v44  ;;  %v2645_v27 = vpack.c.bf16 %v2619_v39, %v2615_v57  ;;  %v3948_v54 = vunpack.c.l.bf16 %v3689_v45  ;;  %v3949_v7 = vunpack.c.l.bf16 %v3697_v24  ;;  %v3744_v9 = vshll.u32 %v9961_v51, 16 }
 0x369   : > { %v2817_v16 = vcombine.high %v2809_v4, %v2809_v4  ;;  %v3950_v31 = vunpack.c.l.bf16 %v3705_v8  ;;  %v3951_v34 = vunpack.c.l.bf16 %v3713_v35  ;;  %v3611_v19 = vmul.f32 %v9975_v36, %v12076_v52 }
 0x36a   : > { %v3715_v25 = vshrl.u32 %v9932_v6, 16  ;;  %v4025_v42 = vcombine.low %v3948_v54, %v3949_v7  ;;  %v3720_v59 = vshll.u32 %v9924_v48, 16  ;;  %v3723_v29 = vshrl.u32 %v9924_v48, 16 }
 0x36b   : > { %v2818_v63 = vcombine.high %v2816_v46, %v2816_v46  ;;  %v10120_v33 = vrot.slane %v2809_v4, %v9010_v20  ;;  %v4026_v39 = vcombine.low %v3950_v31, %v3951_v34  ;;  %3621 = vadd.xlane.f32.xlu0 %v3611_v19  ;;  %v12077_v45 = vshll.u32 %v9940_v17, 16 }
 0x36c   : > { %v12078_v51 = vshrl.u32 %v9935_v26, 16  ;;  %v10129_v6 = vrot.slane %v2816_v46, %v9010_v20  ;;  %v2858_v7 = vrot.slane %v2645_v27, %v9010_v20  ;;  %v3722_v48 = vsel %vm9521_vm0, %v3715_v25, %v3720_v59 }
 0x36d   : > { %v12079_v4 = vshll.u32 %v9935_v26, 16  ;;  %v2865_v34 = vrot.slane %v7523_v38, %v9010_v20  ;;  %v4033_v19 = vrot.slane %v4025_v42, %v9563_v37  ;;  %v4040_v18 = vrot.slane %v4026_v39, %v9563_v37 }
 0x36e   : > { %v3738_v24 = vsel %vm9521_vm0, %v12078_v51, %v12077_v45  ;;  %v12080_v57 = vshrl.u32 %v9940_v17, 16  ;;  %v3952_v46 = vunpack.c.l.bf16 %v3722_v48  ;;  %v10147_v25 = vrot.slane %v2817_v16, %v9010_v20 }
 0x36f   : > { %v3730_v31 = vsel %vm9521_vm0, %v3723_v29, %v12079_v4  ;;  %v3954_v27 = vunpack.c.l.bf16 %v3738_v24  ;;  %v10151_v29 = vcombine.high %v10120_v33, %v10120_v33  ;;  %v4041_v38 = vcombine.low %v4033_v19, %v4040_v18 }
 0x370   : > { %v3746_v8 = vsel %vm9521_vm0, %v12080_v57, %v3744_v9  ;;  %v3953_v35 = vunpack.c.l.bf16 %v3730_v31  ;;  %v10154_v42 = vrot.slane %v2818_v63, %v9010_v20  ;;  %v2866_v59 = vcombine.high %v2858_v7, %v2858_v7 }
 0x371   : > { %v3955_v54 = vunpack.c.l.bf16 %v3746_v8  ;;  %v4338_v9 = vmul.f32 %v9996_v47, %v12076_v52  ;;  %v4153_v16 = vmul.f32 %v4041_v38, %v9812_v22  ;;  %v2867_v4 = vcombine.high %v2865_v34, %v2865_v34 }
 0x372   : > { %v4042_v39 = vcombine.low %v3952_v46, %v3953_v35  ;;  %v10163_v31 = vrot.slane %v2858_v7, %v9010_v20  ;;  %v10166_v63 = vrot.slane %v2865_v34, %v9010_v20  ;;  %v10170_v19 = vcombine.high %v10147_v25, %v10147_v25 }
 0x373   : > { %v4043_v24 = vcombine.low %v3954_v27, %v3955_v54  ;;  %4348 = vadd.xlane.f32.xlu0 %v4338_v9  ;;  %4162 = vadd.xlane.f32.xlu1 %v4153_v16  ;;  %v10177_v46 = vcombine.high %v10154_v42, %v10154_v42  ;;  %v10182_v35 = vrot.slane %v2866_v59, %v9010_v20  ;;  %v3414_v51 = vunpack.c.l.bf16 %v10034_v13 }
 0x374   : > { %v4050_v8 = vrot.slane %v4042_v39, %v9563_v37  ;;  %v4567_v9 = vmul.f32 %v9975_v36, %v9749_v5  ;;  %v2752_v39 = vcombine.high %v9940_v17, %v9940_v17  ;;  %v10191_v16 = vrot.slane %v2867_v4, %v9010_v20 }
 0x375   : > { %v4057_v54 = vrot.slane %v4043_v24, %v9563_v37  ;;  %v10195_v26 = vcombine.high %v10166_v63, %v10166_v63  ;;  %v3415_v36 = vunpack.c.l.bf16 %v10051_v3  ;;  %v3416_v18 = vunpack.c.l.bf16 %v10065_v62 }
 0x376   : > { %v3413_v48 = vunpack.c.l.bf16 %v2752_v39  ;;  %v2800_v34 = vcombine.high %v10051_v3, %v10051_v3  ;;  %v4473_v27 = vmul.f32 %v4041_v38, %v9749_v5  ;;  %v2801_v7 = vcombine.high %v10061_v60, %v10061_v60 }
 0x377   : > { %v4058_v24 = vcombine.low %v4050_v8, %v4057_v54  ;;  %4575 = vadd.xlane.f32.xlu0 %v4567_v9  ;;  %v4698_v8 = vmul.f32 %v9996_v47, %v9749_v5  ;;  %v3517_v54 = vcombine.low %v3415_v36, %v3416_v18  ;;  %v3748_v9 = vshrl.u32 %v2752_v39, 16 }
 0x378   : > { %v3516_v45 = vcombine.low %v3413_v48, %v3414_v51  ;;  %v4243_v17 = vcombine.low %v3414_v51, %v3415_v36  ;;  %v3418_v48 = vunpack.c.l.bf16 %v10061_v60  ;;  %v4179_v39 = vunpack.c.l.bf16 %v2800_v34 }
 0x379   : > { %v4474_v59 = vmul.f32 %v4058_v24, %v9812_v22  ;;  %v4154_v4 = vmul.f32 %v4058_v24, %v12076_v52  ;;  %v3531_v47 = vrot.slane %v3517_v54, %v9563_v37  ;;  %v3777_v30 = vshll.u32 %v2800_v34, 16 }
 0x37a   : > { %v3524_v57 = vrot.slane %v3516_v45, %v9563_v37  ;;  %v4251_v43 = vrot.slane %v4243_v17, %v9563_v37  ;;  %v3419_v51 = vunpack.c.l.bf16 %v10069_v41  ;;  %v12081_v38 = vunpack.c.l.bf16 %v10037_v58 }
 0x37b   : > { %4483 = vadd.xlane.f32.xlu1 %v4474_v59  ;;  %4706 = vadd.xlane.f32.xlu0 %v4698_v8  ;;  %v3420_v59 = vunpack.c.l.bf16 %v2801_v7  ;;  %v4244_v10 = vcombine.low %v3416_v18, %v4179_v39  ;;  %v4654_v21 = vmul.f32 %v4058_v24, %v9749_v5  ;;  %v12082_v2 = vshll.u32 %v10034_v13, 16 }
 0x37c   : > { %v3533_v36 = vcombine.low %v12081_v38, %v3418_v48  ;;  %v3532_v8 = vcombine.low %v3524_v57, %v3531_v47  ;;  %v12083_v17 = vshll.u32 %v10051_v3, 16  ;;  %v12084_v34 = vshrl.u32 %v10034_v13, 16  ;;  %v12085_v57 = vld [vmem:[#allocation36_spill] sm:$0xff] }
 0x37d   : > { %v3755_v45 = vsel %vm9521_vm0, %v3748_v9, %v12082_v2  ;;  %v3534_v54 = vcombine.low %v3419_v51, %v3420_v59  ;;  %v3769_v38 = vshll.u32 %v10065_v62, 16  ;;  %v3772_v18 = vshrl.u32 %v10065_v62, 16 }
 0x37e   : > { %v3763_v61 = vsel %vm9521_vm0, %v12084_v34, %v12083_v17  ;;  %v3612_v5 = vmul.f32 %v3532_v8, %v12085_v57  ;;  %v4258_v24 = vrot.slane %v4244_v10, %v9563_v37  ;;  %v3541_v47 = vrot.slane %v3533_v36, %v9563_v37 }
 0x37f   : > { %4481 = vadd.xlane.f32.xlu0 %v4473_v27  ;;  %v4388_v2 = vmul.f32 %v3532_v8, %v12076_v52  ;;  %v3548_v27 = vrot.slane %v3534_v54, %v9563_v37  ;;  %v12086_v9 = vshrl.u32 %v10051_v3, 16  ;;  %v3779_v39 = vsel %vm9521_vm0, %v3772_v18, %v3777_v30 }
 0x380   : > { %v3956_v17 = vunpack.c.l.bf16 %v3755_v45  ;;  %3623 = vadd.xlane.f32.xlu1 %v3612_v5  ;;  %v4259_v62 = vcombine.low %v4251_v43, %v4258_v24  ;;  %v3957_v34 = vunpack.c.l.bf16 %v3763_v61  ;;  %v3959_v10 = vunpack.c.l.bf16 %v3779_v39 }
 0x381   : > { %v3771_v13 = vsel %vm9521_vm0, %v12086_v9, %v3769_v38  ;;  %v4568_v36 = vmul.f32 %v3532_v8, %v9812_v22  ;;  %v3549_v23 = vcombine.low %v3541_v47, %v3548_v27  ;;  %v4260_v0 = vcombine.low %v3418_v48, %v3419_v51  ;;  %v12090_v8 = vld [vmem:[#allocation38_spill] sm:$0xff] }
 0x382   : > { %v3958_v14 = vunpack.c.l.bf16 %v3771_v13  ;;  %v12087_v54 = vunpack.c.l.bf16 %v10120_v33  ;;  %v4339_v15 = vmul.f32 %v4259_v62, %v12085_v57  ;;  %v4059_v38 = vcombine.low %v3956_v17, %v3957_v34 }
 0x383   : > { %4164 = vadd.xlane.f32.xlu0 %v4154_v4  ;;  %v12088_v30 = vshll.u32 %v10061_v60, 16  ;;  %v12089_v45 = vshrl.u32 %v10037_v58, 16  ;;  %v4389_v43 = vmul.f32 %v3549_v23, %v12085_v57  ;;  %v3613_v4 = vmul.f32 %v3549_v23, %v12090_v8 }
 0x384   : > { %v4261_v3 = vcombine.low %v3420_v59, %v12087_v54  ;;  %v4060_v9 = vcombine.low %v3958_v14, %v3959_v10  ;;  %v4519_v48 = vmul.f32 %v4259_v62, %v12076_v52  ;;  %v4268_v51 = vrot.slane %v4260_v0, %v9563_v37  ;;  %4577 = vadd.xlane.f32.xlu1 %v4568_v36 }
 0x385   : > { %v3788_v61 = vsel %vm9521_vm0, %v12089_v45, %v12088_v30  ;;  %v4067_v59 = vrot.slane %v4059_v38, %v9563_v37  ;;  %v10264_v58 = vmul.f32 %v3549_v23, %v12076_v52  ;;  %v12091_v5 = vshll.u32 %v10069_v41, 16 }
 0x386   : > { %v4074_v14 = vrot.slane %v4060_v9, %v9563_v37  ;;  %v4275_v18 = vrot.slane %v4261_v3, %v9563_v37  ;;  %v12092_v24 = vshrl.u32 %v10061_v60, 16  ;;  %v3802_v27 = vshll.u32 %v2801_v7, 16 }
 0x387   : > { %4662 = vadd.xlane.f32.xlu0 %v4654_v21  ;;  %v3805_v0 = vshrl.u32 %v2801_v7, 16  ;;  %v3960_v13 = vunpack.c.l.bf16 %v3788_v61  ;;  %v3421_v10 = vunpack.c.l.bf16 %v10147_v25  ;;  %v12093_v23 = vshrl.u32 %v10069_v41, 16 }
 0x388   : > { %v3796_v47 = vsel %vm9521_vm0, %v12092_v24, %v12091_v5  ;;  %v10272_v39 = vcombine.low %v4067_v59, %v4074_v14  ;;  %v4276_v17 = vcombine.low %v4268_v51, %v4275_v18  ;;  %v12094_v36 = vshll.u32 %v10120_v33, 16  ;;  %4350 = vadd.xlane.f32.xlu1 %v4339_v15 }
 0x389   : > { %v3961_v34 = vunpack.c.l.bf16 %v3796_v47  ;;  %v3804_v21 = vsel %vm9521_vm0, %v12093_v23, %v3802_v27  ;;  %v3422_v54 = vunpack.c.l.bf16 %v10151_v29  ;;  %v3423_v7 = vunpack.c.l.bf16 %v10170_v19 }
 0x38a   : > { %v3812_v60 = vsel %vm9521_vm0, %v3805_v0, %v12094_v36  ;;  %v4699_v3 = vmul.f32 %v4259_v62, %v9812_v22  ;;  %v4155_v38 = vmul.f32 %v10272_v39, %v12085_v57  ;;  %v10289_v41 = vmul.f32 %v4276_v17, %v12085_v57 }
 0x38b   : > { %v3962_v9 = vunpack.c.l.bf16 %v3804_v21  ;;  %4398 = vadd.xlane.f32.xlu0 %v4388_v2  ;;  %v3963_v30 = vunpack.c.l.bf16 %v3812_v60  ;;  %v4076_v33 = vcombine.low %v3960_v13, %v3961_v34  ;;  %v10293_v45 = vmul.f32 %v10272_v39, %v12076_v52 }
 0x38c   : > { %v3424_v61 = vunpack.c.l.bf16 %v10129_v6  ;;  %v3550_v51 = vcombine.low %v3421_v10, %v3422_v54  ;;  %v10297_v15 = vmul.f32 %v4276_v17, %v12090_v8  ;;  %v4181_v62 = vunpack.c.l.bf16 %v10154_v42  ;;  %4400 = vadd.xlane.f32.xlu1 %v4389_v43 }
 0x38d   : > { %v4277_v59 = vcombine.low %v3422_v54, %v3423_v7  ;;  %v4077_v14 = vcombine.low %v3962_v9, %v3963_v30  ;;  %v4084_v18 = vrot.slane %v4076_v33, %v9563_v37  ;;  %v10302_v2 = vmul.f32 %v4276_v17, %v12076_v52 }
 0x38e   : > { %v3551_v5 = vcombine.low %v3423_v7, %v3424_v61  ;;  %v3558_v24 = vrot.slane %v3550_v51, %v9563_v37  ;;  %v4278_v47 = vcombine.low %v3424_v61, %v4181_v62  ;;  %v12095_v0 = vshll.u32 %v10151_v29, 16 }
 0x38f   : > { %v4285_v27 = vrot.slane %v4277_v59, %v9563_v37  ;;  %v12096_v13 = vshrl.u32 %v10147_v25, 16  ;;  %3625 = vadd.xlane.f32.xlu0 %v3613_v4  ;;  %v4091_v10 = vrot.slane %v4077_v14, %v9563_v37  ;;  %v3827_v17 = vshll.u32 %v10170_v19, 16 }
 0x390   : > { %v3565_v23 = vrot.slane %v3551_v5, %v9563_v37  ;;  %v3830_v43 = vshrl.u32 %v10170_v19, 16  ;;  %v4292_v21 = vrot.slane %v4278_v47, %v9563_v37  ;;  %v12097_v36 = vshll.u32 %v10154_v42, 16  ;;  %4708 = vadd.xlane.f32.xlu1 %v4699_v3 }
 0x391   : > { %v3821_v34 = vsel %vm9521_vm0, %v12096_v13, %v12095_v0  ;;  %v12098_v60 = vshrl.u32 %v10129_v6, 16  ;;  %v10325_v4 = vcombine.high %v10129_v6, %v10129_v6  ;;  %v4092_v7 = vcombine.low %v4084_v18, %v4091_v10  ;;  %v12101_v18 = vld [vmem:[#allocation40_spill] sm:$0xff] }
 0x392   : > { %v3964_v54 = vunpack.c.l.bf16 %v3821_v34  ;;  %v3566_v9 = vcombine.low %v3558_v24, %v3565_v23  ;;  %v12099_v30 = vshrl.u32 %v10151_v29, 16  ;;  %v12100_v33 = vshll.u32 %v10129_v6, 16 }
 0x393   : > { %v3845_v25 = vsel %vm9521_vm0, %v12098_v60, %v12097_v36  ;;  %v4293_v61 = vcombine.low %v4285_v27, %v4292_v21  ;;  %4529 = vadd.xlane.f32.xlu0 %v4519_v48  ;;  %v10336_v14 = vmul.f32 %v4092_v7, %v12085_v57  ;;  %v10345_v6 = vmul.f32 %v4092_v7, %v12090_v8 }
 0x394   : > { %v3829_v19 = vsel %vm9521_vm0, %v12099_v30, %v3827_v17  ;;  %v3837_v42 = vsel %vm9521_vm0, %v3830_v43, %v12100_v33  ;;  %v3967_v59 = vunpack.c.l.bf16 %v3845_v25  ;;  %v10339_v5 = vmul.f32 %v3566_v9, %v12101_v18  ;;  %4166 = vadd.xlane.f32.xlu1 %v4155_v38 }
 0x395   : > { %v3965_v51 = vunpack.c.l.bf16 %v3829_v19  ;;  %v3966_v62 = vunpack.c.l.bf16 %v3837_v42  ;;  %v10342_v29 = vmul.f32 %v3566_v9, %v12085_v57  ;;  %v10348_v24 = vmul.f32 %v4293_v61, %v12101_v18 }
 0x396   : > { %v10351_v3 = vmul.f32 %v4293_v61, %v12085_v57  ;;  %v10354_v48 = vmul.f32 %v4092_v7, %v12076_v52  ;;  %v10357_v0 = vmul.f32 %v3566_v9, %v12090_v8  ;;  %v10360_v13 = vmul.f32 %v4293_v61, %v12090_v8 }
 0x397   : > { %v4093_v47 = vcombine.low %v3964_v54, %v3965_v51  ;;  %v4094_v27 = vcombine.low %v3966_v62, %v3967_v59  ;;  %v3425_v34 = vunpack.c.l.bf16 %v10325_v4  ;;  %v3426_v23 = vunpack.c.l.bf16 %v10177_v46  ;;  %4579 = vadd.xlane.f32.xlu0 %v10264_v58 }
 0x398   : > { %v3427_v17 = vunpack.c.l.bf16 %v10163_v31  ;;  %v3428_v52 = vunpack.c.l.bf16 %v10182_v35  ;;  %v3893_v43 = vshll.u32 %v10191_v16, 16  ;;  %v2896_v36 = vcombine.high %v10163_v31, %v10163_v31 }
 0x399   : > { %v4101_v10 = vrot.slane %v4093_v47, %v9563_v37  ;;  %v4108_v21 = vrot.slane %v4094_v27, %v9563_v37  ;;  %v10374_v38 = vcombine.high %v10182_v35, %v10182_v35  ;;  %v4655_v60 = vmul.f32 %v10272_v39, %v9812_v22 }
 0x39a   : > { %v3567_v25 = vcombine.low %v3425_v34, %v3426_v23  ;;  %v3568_v54 = vcombine.low %v3427_v17, %v3428_v52  ;;  %v4294_v7 = vcombine.low %v3426_v23, %v3427_v17  ;;  %v3847_v30 = vshrl.u32 %v10325_v4, 16 }
 0x39b   : > { %v4109_v9 = vcombine.low %v4101_v10, %v4108_v21  ;;  %v4182_v19 = vunpack.c.l.bf16 %v2896_v36  ;;  %v3429_v58 = vunpack.c.l.bf16 %v10374_v38  ;;  %4664 = vadd.xlane.f32.xlu1 %v4655_v60  ;;  %v11921_v61 = vunpack.c.l.bf16 %v10166_v63  ;;  %4485 = vadd.xlane.f32.xlu0 %v10293_v45 }
 0x39c   : > { %v3575_v33 = vrot.slane %v3567_v25, %v9563_v37  ;;  %v3582_v42 = vrot.slane %v3568_v54, %v9563_v37  ;;  %v11922_v51 = vunpack.c.l.bf16 %v10191_v16  ;;  %v3876_v47 = vshll.u32 %v2896_v36, 16 }
 0x39d   : > { %v10386_v22 = vmul.f32 %v4109_v9, %v12101_v18  ;;  %v10389_v39 = vmul.f32 %v4109_v9, %v12085_v57  ;;  %v10392_v4 = vmul.f32 %v4109_v9, %v12090_v8  ;;  %v4295_v62 = vcombine.low %v3428_v52, %v4182_v19  ;;  %v12102_v52 = vld [vmem:[#allocation37_spill] sm:$0xff] }
 0x39e   : > { %v3583_v59 = vcombine.low %v3575_v33, %v3582_v42  ;;  %v11923_v27 = vunpack.c.l.bf16 %v10195_v26  ;;  %v3584_v34 = vcombine.low %v3429_v58, %v11921_v61  ;;  %v4302_v10 = vrot.slane %v4294_v7, %v9563_v37 }
 0x39f   : > { %v4309_v45 = vrot.slane %v4295_v62, %v9563_v37  ;;  %v10401_v23 = vcombine.high %v10191_v16, %v10191_v16  ;;  %v3852_v57 = vshll.u32 %v10177_v46, 16  ;;  %4531 = vadd.xlane.f32.xlu1 %v10289_v41  ;;  %v3896_v25 = vshrl.u32 %v10191_v16, 16  ;;  %4352 = vadd.xlane.f32.xlu0 %v10297_v15 }
 0x3a0   : > { %v10406_v17 = vmul.f32 %v3583_v59, %v12101_v18  ;;  %v10409_v21 = vmul.f32 %v3583_v59, %v12102_v52  ;;  %v3585_v36 = vcombine.low %v11922_v51, %v11923_v27  ;;  %v3592_v60 = vrot.slane %v3584_v34, %v9563_v37 }
 0x3a1   : > { %v3901_v54 = vshll.u32 %v10195_v26, 16  ;;  %v4310_v41 = vcombine.low %v4302_v10, %v4309_v45  ;;  %v3880_v7 = vshrl.u32 %v10374_v38, 16  ;;  %v10422_v19 = vmul.f32 %v3583_v59, %v12090_v8 }
 0x3a2   : > { %v3599_v9 = vrot.slane %v3585_v36, %v9563_v37  ;;  %v3854_v58 = vsel %vm9521_vm0, %v3847_v30, %v3852_v57  ;;  %v3855_v33 = vshrl.u32 %v10177_v46, 16  ;;  %v3909_v15 = vshll.u32 %v10401_v23, 16 }
 0x3a3   : > { %v10428_v42 = vmul.f32 %v4310_v41, %v12101_v18  ;;  %v10431_v62 = vmul.f32 %v4310_v41, %v12102_v52  ;;  %v10435_v38 = vmul.f32 %v4310_v41, %v12090_v8  ;;  %4487 = vadd.xlane.f32.xlu1 %v10336_v14  ;;  %v12103_v34 = vshll.u32 %v10163_v31, 16  ;;  %4710 = vadd.xlane.f32.xlu0 %v10302_v2 }
 0x3a4   : > { %v3600_v59 = vcombine.low %v3592_v60, %v3599_v9  ;;  %v12104_v46 = vshll.u32 %v10182_v35, 16  ;;  %v12105_v10 = vshrl.u32 %v10163_v31, 16  ;;  %v12106_v57 = vshrl.u32 %v10182_v35, 16 }
 0x3a5   : > { %v3862_v30 = vsel %vm9521_vm0, %v3855_v33, %v12103_v34  ;;  %v3904_v14 = vshrl.u32 %v10195_v26, 16  ;;  %v3968_v60 = vunpack.c.l.bf16 %v3854_v58  ;;  %v12107_v33 = vld [vmem:[#allocation39_spill] sm:$0xff]  ;;  %v12110_v58 = vshrl.u32 %v10166_v63, 16 }
 0x3a6   : > { %v3870_v45 = vsel %vm9521_vm0, %v12105_v10, %v12104_v46  ;;  %v3878_v36 = vsel %vm9521_vm0, %v12106_v57, %v3876_v47  ;;  %v3969_v41 = vunpack.c.l.bf16 %v3862_v30  ;;  %v10455_v34 = vmul.f32 %v3600_v59, %v12107_v33  ;;  %v12108_v10 = vld [vmem:[#allocation72_spill] sm:$0xff] }
 0x3a7   : > { %v3970_v9 = vunpack.c.l.bf16 %v3870_v45  ;;  %v10458_v31 = vmul.f32 %v3600_v59, %v12101_v18  ;;  %v10461_v46 = vmul.f32 %v3600_v59, %v12102_v52  ;;  %v3971_v35 = vunpack.c.l.bf16 %v3878_v36  ;;  %3627 = vadd.xlane.f32.xlu1 %v10339_v5  ;;  %4168 = vadd.xlane.f32.xlu0 %v10345_v6 }
 0x3a8   : > { %v5469_v61 = vshll.u32 %v12108_v10, 16  ;;  %v4110_v47 = vcombine.low %v3968_v60, %v3969_v41  ;;  %v12109_v57 = vshll.u32 %v10166_v63, 16  ;;  %v3895_v30 = vsel %vm9521_vm0, %v12110_v58, %v3893_v43  ;;  %v12111_v41 = vld [vmem:[#allocation70_spill] sm:$0xff] }
 0x3a9   : > { %v4111_v59 = vcombine.low %v3970_v9, %v3971_v35  ;;  %v3903_v45 = vsel %vm9521_vm0, %v3896_v25, %v3901_v54  ;;  %v3911_v36 = vsel %vm9521_vm0, %v3904_v14, %v3909_v15  ;;  %v5456_v10 = vshrl.u32 %v12111_v41, 16  ;;  %v12113_v25 = vld [vmem:[#allocation62_spill] sm:$0xff] }
 0x3aa   : > { %v3887_v2 = vsel %vm9521_vm0, %v3880_v7, %v12109_v57  ;;  %v12112_v7 = vld [vmem:[#allocation71_spill] sm:$0xff]  ;;  %v4118_v43 = vrot.slane %v4110_v47, %v9563_v37  ;;  %v3973_v9 = vunpack.c.l.bf16 %v3895_v30  ;;  %v3974_v35 = vunpack.c.l.bf16 %v3903_v45 }
 0x3ab   : > { %v3972_v60 = vunpack.c.l.bf16 %v3887_v2  ;;  %v5461_v57 = vshll.u32 %v12112_v7, 16  ;;  %v5464_v51 = vshrl.u32 %v12112_v7, 16  ;;  %v4125_v5 = vrot.slane %v4111_v59, %v9563_v37  ;;  %v12116_v2 = vld [vmem:[#allocation66_spill] sm:$0xff]  ;;  %4354 = vadd.xlane.f32.xlu1 %v10348_v24  ;;  %4666 = vadd.xlane.f32.xlu0 %v10354_v48 }
 0x3ac   : > { %v3975_v58 = vunpack.c.l.bf16 %v3911_v36  ;;  %v10487_v54 = vcombine.high %v12113_v25, %v12113_v25  ;;  %v10491_v15 = vcombine.high %v10102_v44, %v10102_v44  ;;  %v5423_v41 = vshrl.u32 %v12116_v2, 16 }
 0x3ad   : > { %v5471_v6 = vsel %vm9521_vm0, %v5464_v51, %v5469_v61  ;;  %v4126_v47 = vcombine.low %v4118_v43, %v4125_v5  ;;  %v4127_v30 = vcombine.low %v3972_v60, %v3973_v9  ;;  %v12117_v45 = vshll.u32 %v9752_v1, 16 }
 0x3ae   : > { %12114 = vst [vmem:[#allocation47_spill] sm:$0xff] %v10487_v54  ;;  %12115 = vst [vmem:[#allocation35_spill] sm:$0xff] %v10491_v15  ;;  %v4128_v59 = vcombine.low %v3974_v35, %v3975_v58  ;;  %v12118_v7 = vshll.u32 %v9768_v53, 16  ;;  %v12119_v27 = vshrl.u32 %v9752_v1, 16  ;;  %v5463_v61 = vsel %vm9521_vm0, %v5456_v10, %v5461_v57 }
 0x3af   : > { %v5430_v36 = vsel %vm9521_vm0, %v5423_v41, %v12117_v45  ;;  %v3246_v24 = vcombine.high %v9905_v55, %v9905_v55  ;;  %v10514_v51 = vmul.f32 %v4126_v47, %v12101_v18  ;;  %v4135_v60 = vrot.slane %v4127_v30, %v9563_v37  ;;  %4581 = vadd.xlane.f32.xlu1 %v10342_v29 }
 0x3b0   : > { %v5438_v14 = vsel %vm9521_vm0, %v12119_v27, %v12118_v7  ;;  %v4142_v43 = vrot.slane %v4128_v59, %v9563_v37  ;;  %v10519_v5 = vmul.f32 %v4126_v47, %v12102_v52  ;;  %v11925_v27 = vunpack.c.l.bf16 %v10487_v54  ;;  %4402 = vadd.xlane.f32.xlu0 %v10357_v0 }
 0x3b1   : > { %v5398_v9 = vshrl.u32 %v12113_v25, 16  ;;  %v5607_v10 = vunpack.c.l.bf16 %v5471_v6  ;;  %v10524_v57 = vmul.f32 %v4126_v47, %v12090_v8  ;;  %v5403_v55 = vshll.u32 %v10102_v44, 16  ;;  %v12120_v6 = vld [vmem:[#allocation69_spill] sm:$0xff] }
 0x3b2   : > { %v5602_v48 = vunpack.c.l.bf16 %v5430_v36  ;;  %v5603_v35 = vunpack.c.l.bf16 %v5438_v14  ;;  %v4143_v58 = vcombine.low %v4135_v60, %v4142_v43  ;;  %v5406_v41 = vshrl.u32 %v10102_v44, 16  ;;  %v12124_v43 = vld [vmem:[#allocation63_spill] sm:$0xff] }
 0x3b3   : > { %v5411_v30 = vshll.u32 %v10487_v54, 16  ;;  %v5606_v59 = vunpack.c.l.bf16 %v5463_v61  ;;  %v10531_v45 = vrot.slane %v3246_v24, %v9010_v20  ;;  %v3228_v8 = vcombine.high %v12120_v6, %v12120_v6  ;;  %v12123_v24 = vld [vmem:[#allocation54_spill] sm:$0xff]  ;;  %4712 = vadd.xlane.f32.xlu1 %v10351_v3 }
 0x3b4   : > { %v10537_v47 = vmul.f32 %v4143_v58, %v12107_v33  ;;  %v10540_v14 = vmul.f32 %v4143_v58, %v12101_v18  ;;  %v10543_v29 = vmul.f32 %v4143_v58, %v12102_v52  ;;  %v12122_v7 = vunpack.c.l.bf16 %v10102_v44  ;;  %4533 = vadd.xlane.f32.xlu0 %v10360_v13 }
 0x3b5   : > { %v5735_v61 = vcombine.low %v5606_v59, %v5607_v10  ;;  %v10553_v60 = vadd.f32 %v12123_v24, %v9527_v28  ;;  %v5189_v6 = vrot.slane %v12124_v43, %v9563_v37  ;;  %v5405_v58 = vsel %vm9521_vm0, %v5398_v9, %v5403_v55  ;;  %v12125_v24 = vld [vmem:[#allocation51_spill] sm:$0xff] }
 0x3b6   : > { %12121 = vst [vmem:[#allocation36_spill] sm:$0xff] %v10540_v14  ;;  %v5182_v0 = vcombine.low %v12122_v7, %v11925_v27  ;;  %v5718_v25 = vcombine.low %v5602_v48, %v5603_v35  ;;  %v10561_v36 = vcombine.high %v9916_v11, %v9916_v11  ;;  %v5414_v7 = vshrl.u32 %v10487_v54, 16  ;;  %v12126_v54 = vld [vmem:[#allocation64_spill] sm:$0xff] }
 0x3b7   : > { %v5494_v10 = vshll.u32 %v9912_v12, 16  ;;  %v2625_v27 = vadd.f32 %v12125_v24, %v9527_v28  ;;  %v5413_v9 = vsel %vm9521_vm0, %v5406_v41, %v5411_v30  ;;  %v5419_v55 = vshll.u32 %v10491_v15, 16  ;;  %4170 = vadd.xlane.f32.xlu1 %v10386_v22 }
 0x3b8   : > { %v5489_v48 = vshrl.u32 %v3228_v8, 16  ;;  %v5733_v3 = vrot.slane %v9840_v56, %v9563_v37  ;;  %v5743_v35 = vrot.slane %v5735_v61, %v9563_v37  ;;  %v5750_v43 = vrot.slane %v9843_v32, %v9563_v37  ;;  %4489 = vadd.xlane.f32.xlu0 %v10392_v4 }
 0x3b9   : > { %v5510_v59 = vshll.u32 %v10531_v45, 16  ;;  %v2646_v24 = vpack.c.bf16 %v10553_v60, %v2625_v27  ;;  %v5598_v13 = vunpack.c.l.bf16 %v12126_v54  ;;  %v5726_v44 = vrot.slane %v5718_v25, %v9563_v37 }
 0x3ba   : > { %v5513_v41 = vshrl.u32 %v10531_v45, 16  ;;  %v5518_v30 = vshll.u32 %v10561_v36, 16  ;;  %v5090_v56 = vunpack.c.l.bf16 %v3228_v8  ;;  %v5496_v61 = vsel %vm9521_vm0, %v5489_v48, %v5494_v10 }
 0x3bb   : > { %v12127_v32 = vunpack.c.l.bf16 %v10531_v45  ;;  %v12128_v15 = vunpack.c.l.bf16 %v9916_v11  ;;  %v5505_v27 = vshrl.u32 %v9916_v11, 16  ;;  %v5599_v25 = vunpack.c.l.bf16 %v5405_v58  ;;  %4668 = vadd.xlane.f32.xlu1 %v10389_v39 }
 0x3bc   : > { %v5600_v54 = vunpack.c.l.bf16 %v5413_v9  ;;  %v4183_v53 = vunpack.c.l.bf16 %v10401_v23  ;;  %v10594_v2 = vcombine.low %v5726_v44, %v5733_v3  ;;  %v12130_v22 = vunpack.c.l.bf16 %v9912_v12  ;;  %v12132_v23 = vld [vmem:[#allocation77_spill] sm:$0xff]  ;;  %3629 = vadd.xlane.f32.xlu0 %v10409_v21 }
 0x3bd   : > { %v5233_v1 = vcombine.low %v12128_v15, %v12127_v32  ;;  %v5512_v10 = vsel %vm9521_vm0, %v5505_v27, %v5510_v59  ;;  %v2907_v48 = vrot.slane %v2646_v24, %v9010_v20  ;;  %v10601_v14 = vcombine.low %v5743_v35, %v5750_v43  ;;  %v12133_v9 = vld [vmem:[#allocation57_spill] sm:$0xff]  ;;  %v12135_v35 = vld [vmem:[#allocation80_spill] sm:$0xff]  ;;  %v12143_v27 = vld [vmem:[#allocation55_spill] sm:$0xff] }
 0x3be   : > { %12129 = vst [vmem:[#allocation38_spill] sm:$0xff] %v10594_v2  ;;  %v5232_v8 = vcombine.low %v5090_v56, %v12130_v22  ;;  %v5610_v15 = vunpack.c.l.bf16 %v5496_v61  ;;  %v5520_v11 = vsel %vm9521_vm0, %v5513_v41, %v5518_v30  ;;  %v5172_v44 = vrot.slane %v10042_v50, %v9563_v37 }
 0x3bf   : > { %12131 = vst [vmem:[#allocation40_spill] sm:$0xff] %v10601_v14  ;;  %v5196_v4 = vrot.slane %v5182_v0, %v9563_v37  ;;  %v5247_v12 = vrot.slane %v5233_v1, %v9563_v37  ;;  %v5611_v58 = vunpack.c.l.bf16 %v12132_v23  ;;  %v5421_v59 = vsel %vm9521_vm0, %v5414_v7, %v5419_v55  ;;  %v12138_v1 = vld [vmem:[#allocation82_spill] sm:$0xff]  ;;  %4404 = vadd.xlane.f32.xlu1 %v10406_v17 }
 0x3c0   : > { %v12134_v3 = vrot.slane %v12133_v9, %v9563_v37  ;;  %v12136_v39 = vrot.slane %v12135_v35, %v9563_v37  ;;  %v5612_v50 = vunpack.c.l.bf16 %v5512_v10  ;;  %v12137_v0 = vunpack.c.l.bf16 %v10195_v26  ;;  %v12145_v10 = vld [vmem:[#allocation83_spill] sm:$0xff]  ;;  %4356 = vadd.xlane.f32.xlu0 %v10431_v62 }
 0x3c1   : > { %v12139_v41 = vrot.slane %v12138_v1, %v9563_v37  ;;  %v10629_v21 = vcombine.low %v5189_v6, %v5196_v4  ;;  %v5613_v7 = vunpack.c.l.bf16 %v5520_v11  ;;  %v7524_v55 = vpack.c.bf16 %v10553_v60, %v10553_v60  ;;  %v12147_v6 = vld [vmem:[#allocation85_spill] sm:$0xff]  ;;  %v12149_v11 = vld [vmem:[#allocation84_spill] sm:$0xff] }
 0x3c2   : > { %v10620_v43 = vcombine.low %v12136_v39, %v12134_v3  ;;  %v4312_v24 = vcombine.low %v12137_v0, %v4183_v53  ;;  %v2915_v56 = vcombine.high %v2907_v48, %v2907_v48  ;;  %v5601_v61 = vunpack.c.l.bf16 %v5421_v59  ;;  %v12154_v0 = vld [vmem:[#allocation79_spill] sm:$0xff] }
 0x3c3   : > { %v10627_v30 = vcombine.low %v5172_v44, %v12139_v41  ;;  %12140 = vst [vmem:[#allocation37_spill] sm:$0xff] %v10629_v21  ;;  %v12141_v32 = vunpack.c.l.bf16 %v10191_v16  ;;  %v12142_v26 = vunpack.c.l.bf16 %v10166_v63  ;;  %v12144_v22 = vunpack.c.l.bf16 %v12143_v27  ;;  %v12152_v16 = vld [vmem:[#allocation81_spill] sm:$0xff]  ;;  %4535 = vadd.xlane.f32.xlu1 %v10428_v42  ;;  %v12161_v42 = vld [vmem:[#allocation59_spill] sm:$0xff] }
 0x3c4   : > { %v12146_v44 = vunpack.c.l.bf16 %v12145_v10  ;;  %v12148_v4 = vunpack.c.l.bf16 %v12147_v6  ;;  %v12150_v9 = vunpack.c.l.bf16 %v12149_v11  ;;  %v5701_v60 = vcombine.low %v5598_v13, %v5599_v25  ;;  %v12156_v41 = vld [vmem:[#allocation61_spill] sm:$0xff]  ;;  %v12158_v25 = vld [vmem:[#allocation58_spill] sm:$0xff]  ;;  %4583 = vadd.xlane.f32.xlu0 %v10422_v19 }
 0x3c5   : > { %v4311_v53 = vcombine.low %v12142_v26, %v12141_v32  ;;  %v5816_v59 = vunpack.c.l.bf16 %v10561_v36  ;;  %v5702_v17 = vcombine.low %v5600_v54, %v5601_v61  ;;  %v12151_v63 = vrot.slane %v10058_v40, %v9563_v37 }
 0x3c6   : > { %v5684_v23 = vcombine.low %v12146_v44, %v12144_v22  ;;  %v5685_v3 = vcombine.low %v12150_v9, %v12148_v4  ;;  %v12153_v35 = vrot.slane %v12152_v16, %v9563_v37  ;;  %v12155_v1 = vunpack.c.l.bf16 %v12154_v0 }
 0x3c7   : > { %v12157_v32 = vunpack.c.l.bf16 %v12156_v41  ;;  %v4326_v13 = vrot.slane %v4312_v24, %v9563_v37  ;;  %v5868_v54 = vrot.slane %v12158_v25, %v9563_v37  ;;  %v2914_v40 = vrot.slane %v7524_v55, %v9010_v20  ;;  %3631 = vadd.xlane.f32.xlu1 %v10455_v34 }
 0x3c8   : > { %v10654_v39 = vcombine.low %v12153_v35, %v12151_v63  ;;  %v5692_v36 = vrot.slane %v5684_v23, %v9563_v37  ;;  %v5699_v62 = vrot.slane %v5685_v3, %v9563_v37  ;;  %v5709_v61 = vrot.slane %v5701_v60, %v9563_v37  ;;  %4714 = vadd.xlane.f32.xlu0 %v10435_v38 }
 0x3c9   : > { %v5861_v26 = vcombine.low %v12157_v32, %v12155_v1  ;;  %v5716_v27 = vrot.slane %v5702_v17, %v9563_v37  ;;  %v10670_v10 = vrot.slane %v2915_v56, %v9010_v20  ;;  %v4319_v24 = vrot.slane %v4311_v53, %v9563_v37 }
 0x3ca   : > { %v10674_v44 = vcombine.low %v5692_v36, %v5699_v62  ;;  %v5240_v23 = vrot.slane %v5232_v8, %v9563_v37  ;;  %v2923_v4 = vrot.slane %v2907_v48, %v9010_v20  ;;  %v5752_v56 = vcombine.low %v5610_v15, %v5611_v58 }
 0x3cb   : > { %v5875_v22 = vrot.slane %v5861_v26, %v9563_v37  ;;  %v10678_v55 = vcombine.low %v5709_v61, %v5716_v27  ;;  %v4327_v11 = vcombine.low %v4319_v24, %v4326_v13  ;;  %v2635_v3 = vadd.f32 %v12161_v42, %v9527_v28 }
 0x3cc   : > { %v10683_v9 = vcombine.low %v5240_v23, %v5247_v12  ;;  %v5753_v53 = vcombine.low %v5612_v50, %v5613_v7  ;;  %v12162_v60 = vunpack.c.l.bf16 %v10531_v45  ;;  %v2930_v8 = vrot.slane %v2914_v40, %v9010_v20  ;;  %v12163_v12 = vld [vmem:[#allocation78_spill] sm:$0xff]  ;;  %4406 = vadd.xlane.f32.xlu0 %v10461_v46 }
 0x3cd   : > { %12159 = vst [vmem:[#allocation39_spill] sm:$0xff] %v10678_v55  ;;  %v10680_v6 = vcombine.low %v5868_v54, %v5875_v22  ;;  %v2947_v19 = vcombine.high %v10670_v10, %v10670_v10  ;;  %v5760_v48 = vrot.slane %v5752_v56, %v9563_v37  ;;  %v5936_v28 = vrot.slane %v12163_v12, %v9563_v37 }
 0x3ce   : > { %12160 = vst [vmem:[#allocation72_spill] sm:$0xff] %v10683_v9  ;;  %v5929_v17 = vcombine.low %v12162_v60, %v5816_v59  ;;  %v5767_v15 = vrot.slane %v5753_v53, %v9563_v37  ;;  %v2945_v50 = vcombine.high %v2923_v4, %v2923_v4  ;;  %v4343_v7 = vmul.f32 %v4327_v11, %v12107_v33 }
 0x3cf   : > { %v2647_v59 = vpack.c.bf16 %v2635_v3, %v2635_v3  ;;  %v4432_v16 = vshll.u32 %v2947_v19, 16  ;;  %v4435_v38 = vshrl.u32 %v2947_v19, 16  ;;  %v2916_v35 = vcombine.high %v2914_v40, %v2914_v40 }
 0x3d0   : > { %v5943_v58 = vrot.slane %v5929_v17, %v9563_v37  ;;  %v10700_v63 = vcombine.low %v5760_v48, %v5767_v15  ;;  %4358 = vadd.xlane.f32.xlu1 %v4343_v7  ;;  %v4440_v0 = vshll.u32 %v2930_v8, 16  ;;  %v4416_v1 = vshll.u32 %v10670_v10, 16 }
 0x3d1   : > { %v4419_v41 = vshrl.u32 %v10670_v10, 16  ;;  %v4424_v32 = vshll.u32 %v2945_v50, 16  ;;  %v4427_v26 = vshrl.u32 %v2945_v50, 16  ;;  %v2955_v13 = vrot.slane %v2647_v59, %v9010_v20 }
 0x3d2   : > { %12164 = vst [vmem:[#allocation70_spill] sm:$0xff] %v10700_v63  ;;  %v10702_v34 = vcombine.low %v5936_v28, %v5943_v58  ;;  %v4523_v36 = vmul.f32 %v4327_v11, %v12102_v52  ;;  %v4363_v62 = vunpack.c.l.bf16 %v2947_v19  ;;  %v4411_v25 = vshrl.u32 %v2923_v4, 16  ;;  %v10740_v58 = vpop.xlane.xlu0 %3617 }
 0x3d3   : > { %v4434_v54 = vsel %vm9521_vm0, %v4427_v26, %v4432_v16  ;;  %v4442_v46 = vsel %vm9521_vm0, %v4435_v38, %v4440_v0  ;;  %v10715_v40 = vrot.slane %v2916_v35, %v9010_v20  ;;  %v4361_v61 = vunpack.c.l.bf16 %v10670_v10 }
 0x3d4   : > { %12165 = vst [vmem:[#allocation71_spill] sm:$0xff] %v10702_v34  ;;  %4585 = vadd.xlane.f32.xlu1 %v10458_v31  ;;  %4537 = vadd.xlane.f32.xlu0 %v4523_v36  ;;  %v4362_v27 = vunpack.c.l.bf16 %v2945_v50  ;;  %v4360_v22 = vunpack.c.l.bf16 %v2923_v4  ;;  %v4703_v24 = vmul.f32 %v4327_v11, %v12101_v18  ;;  %v4418_v23 = vsel %vm9521_vm0, %v4411_v25, %v4416_v1 }
 0x3d5   : > { %v4426_v31 = vsel %vm9521_vm0, %v4419_v41, %v4424_v32  ;;  %v2956_v56 = vcombine.high %v2955_v13, %v2955_v13  ;;  %v4449_v3 = vunpack.c.l.bf16 %v4434_v54  ;;  %v4450_v53 = vunpack.c.l.bf16 %v4442_v46 }
 0x3d6   : > { %v4369_v42 = vcombine.low %v4362_v27, %v4363_v62  ;;  %v4368_v60 = vcombine.low %v4360_v22, %v4361_v61  ;;  %v4447_v17 = vunpack.c.l.bf16 %v4418_v23  ;;  %v4448_v10 = vunpack.c.l.bf16 %v4426_v31 }
 0x3d7   : > { %v10726_v4 = vcombine.high %v10715_v40, %v10715_v40  ;;  %v10729_v18 = vrot.slane %v2955_v13, %v9010_v20  ;;  %v10732_v11 = vrot.slane %v2956_v56, %v9010_v20  ;;  %v4456_v48 = vcombine.low %v4449_v3, %v4450_v53 }
 0x3d8   : > { %4716 = vadd.xlane.f32.xlu1 %v4703_v24  ;;  %4172 = vadd.xlane.f32.xlu0 %v10519_v5  ;;  %v4383_v19 = vrot.slane %v4369_v42, %v9563_v37  ;;  %v10735_v15 = vcombine.high %v2930_v8, %v2930_v8  ;;  %v4497_v12 = vunpack.c.l.bf16 %v2930_v8  ;;  %v4376_v5 = vrot.slane %v4368_v60, %v9563_v37 }
 0x3d9   : > { %v4455_v28 = vcombine.low %v4447_v17, %v4448_v10  ;;  %v4544_v50 = vunpack.c.l.bf16 %v10729_v18  ;;  %v4543_v59 = vunpack.c.l.bf16 %v10726_v4  ;;  %v4621_v16 = vshll.u32 %v10732_v11, 16 }
 0x3da   : > { %v4500_v7 = vcombine.low %v4363_v62, %v4497_v12  ;;  %v4384_v38 = vcombine.low %v4376_v5, %v4383_v19  ;;  %v4470_v35 = vrot.slane %v4456_v48, %v9563_v37  ;;  %v4613_v8 = vshll.u32 %v10729_v18, 16 }
 0x3db   : > { %v4542_v0 = vunpack.c.l.bf16 %v10735_v15  ;;  %v4616_v1 = vshrl.u32 %v10729_v18, 16  ;;  %v4463_v41 = vrot.slane %v4455_v28, %v9563_v37  ;;  %v4605_v32 = vshll.u32 %v10726_v4, 16 }
 0x3dc   : > { %4491 = vadd.xlane.f32.xlu1 %v10514_v51  ;;  %4670 = vadd.xlane.f32.xlu0 %v10524_v57  ;;  %v4499_v51 = vcombine.low %v4361_v61, %v4362_v27  ;;  %v4541_v57 = vunpack.c.l.bf16 %v10715_v40  ;;  %v4608_v26 = vshrl.u32 %v10726_v4, 16  ;;  %v4592_v13 = vshrl.u32 %v10715_v40, 16  ;;  %v10762_v61 = vpop.xlane.xlu0 %4344  ;;  %v12166_v27 = vld [vmem:[#allocation36_spill] sm:$0xff] }
 0x3dd   : > { %v4597_v36 = vshll.u32 %v10735_v15, 16  ;;  %v4550_v62 = vcombine.low %v4543_v59, %v4544_v50  ;;  %v4600_v25 = vshrl.u32 %v10735_v15, 16  ;;  %v4573_v54 = vmul.f32 %v4384_v38, %v12102_v52 }
 0x3de   : > { %v4471_v46 = vcombine.low %v4463_v41, %v4470_v35  ;;  %v4507_v22 = vrot.slane %v4499_v51, %v9563_v37  ;;  %v4549_v40 = vcombine.low %v4541_v57, %v4542_v0  ;;  %v4615_v23 = vsel %vm9521_vm0, %v4608_v26, %v4613_v8  ;;  %v8135_v41 = vld [vmem:[#allocation7 + $0x30] sm:$0xff]  }
 0x3df   : > { %v4607_v24 = vsel %vm9521_vm0, %v4600_v25, %v4605_v32  ;;  %v4393_v31 = vmul.f32 %v4384_v38, %v12107_v33  ;;  %v4564_v42 = vrot.slane %v4550_v62, %v9563_v37  ;;  %v4599_v60 = vsel %vm9521_vm0, %v4592_v13, %v4597_v36 }
 0x3e0   : > { %4174 = vadd.xlane.f32.xlu1 %v10537_v47  ;;  %4493 = vadd.xlane.f32.xlu0 %v10543_v29  ;;  %v4514_v47 = vrot.slane %v4500_v7, %v9563_v37  ;;  %v4623_v29 = vsel %vm9521_vm0, %v4616_v1, %v4621_v16  ;;  %v4660_v53 = vmul.f32 %v4471_v46, %v12102_v52  ;;  %v4629_v10 = vunpack.c.l.bf16 %v4607_v24  ;;  %v10777_v19 = vpop.xlane.xlu0 %4160  ;;  %v10781_v16 = vpop.xlane.xlu1 %3619  ;;  %v8134_v1 = vld [vmem:[#allocation7 + $0x38] sm:$0xff]  }
 0x3e1   : > { %v4631_v3 = vunpack.c.l.bf16 %v4623_v29  ;;  %v4557_v17 = vrot.slane %v4549_v40, %v9563_v37  ;;  %v4630_v4 = vunpack.c.l.bf16 %v4615_v23  ;;  %v4678_v18 = vunpack.c.l.bf16 %v10732_v11  ;;  %7860 = vmatprep.subr.bf16.mxu0 %v8134_v1 }
 0x3e2   : > { %v4515_v56 = vcombine.low %v4507_v22, %v4514_v47  ;;  %v4628_v12 = vunpack.c.l.bf16 %v4599_v60  ;;  %v4680_v57 = vcombine.low %v4542_v0, %v4543_v59  ;;  %7861 = vmatpush3.bf16.msra.mxu0 %v8134_v1  ;;  %v8136_v47 = vld [vmem:[#allocation7 + $0x28] sm:$0xff]   ;;  %v4722_v40 = vmax.f32 %v10740_v58, %v10777_v19  ;;  %v12168_v60 = vld [vmem:[#allocation41_spill] sm:$0xff] }
 0x3e3   : > { %v4565_v15 = vcombine.low %v4557_v17, %v4564_v42  ;;  %v4637_v5 = vcombine.low %v4630_v4, %v4631_v3  ;;  %v4681_v11 = vcombine.low %v4544_v50, %v4678_v18  ;;  %7862 = vmatprep.subr.bf16.mxu0 %v8135_v41  ;;  %v12169_v17 = vld [vmem:[#allocation56_spill] sm:$0xff]  ;;  %v12170_v18 = vld [vmem:[#allocation42_spill] sm:$0xff] }
 0x3e4   : > { %4672 = vadd.xlane.f32.xlu1 %v12166_v27  ;;  %4587 = vadd.xlane.f32.xlu0 %v4573_v54  ;;  %v4524_v48 = vmul.f32 %v4515_v56, %v12107_v33  ;;  %v4704_v28 = vmul.f32 %v4515_v56, %v12102_v52  ;;  %v4636_v7 = vcombine.low %v4628_v12, %v4629_v10  ;;  %v10785_v8 = vpop.xlane.xlu0 %4394  ;;  %v10790_v13 = vpop.xlane.xlu1 %4346  ;;  %v12167_v27 = vld [vmem:[#allocation76_spill] sm:$0xff] }
 0x3e5   : > { %v4574_v38 = vmul.f32 %v4565_v15, %v12107_v33  ;;  %v4651_v35 = vrot.slane %v4637_v5, %v9563_v37  ;;  %v4480_v52 = vmul.f32 %v4471_v46, %v12107_v33  ;;  %v4695_v26 = vrot.slane %v4681_v11, %v9563_v37  ;;  %v12171_v15 = vld [vmem:[#allocation45_spill] sm:$0xff]  ;;  %v12173_v5 = vld [vmem:[#allocation44_spill] sm:$0xff]  ;;  %v12175_v11 = vld [vmem:[#allocation66_spill] sm:$0xff] }
 0x3e6   : > { %v4644_v51 = vrot.slane %v4636_v7, %v9563_v37  ;;  %v4688_v36 = vrot.slane %v4680_v57, %v9563_v37  ;;  %7863 = vmatpush3.bf16.msra.mxu0 %v8135_v41  ;;  %v7529_v22 = vpack.c.bf16 %v12167_v27, %v12167_v27  ;;  %v10824_v10 = vadd.f32 %v12169_v17, %v12168_v60  ;;  %v12176_v57 = vld [vmem:[#allocation67_spill] sm:$0xff]  ;;  %v12178_v41 = vld [vmem:[#allocation68_spill] sm:$0xff] }
 0x3e7   : > { %7864 = vmatprep.subr.bf16.mxu0 %v8136_v47  ;;  %v12172_v12 = vunpack.c.l.bf16 %v12171_v15  ;;  %v12177_v1 = vunpack.c.l.bf16 %v12176_v57 }
 0x3e8   : > { %4408 = vadd.xlane.f32.xlu1 %v4393_v31  ;;  %4674 = vadd.xlane.f32.xlu0 %v4660_v53  ;;  %v4652_v32 = vcombine.low %v4644_v51, %v4651_v35  ;;  %v10793_v50 = vpop.xlane.xlu0 %4525  ;;  %v4696_v0 = vcombine.low %v4688_v36, %v4695_v26  ;;  %v10796_v62 = vpop.xlane.xlu1 %4396  ;;  %v4730_v31 = vmax.f32 %v4722_v40, %v10762_v61  ;;  %v5082_v51 = vunpack.c.l.bf16 %v12175_v11  ;;  %v12180_v26 = vld [vmem:[#allocation52_spill] sm:$0xff] }
 0x3e9   : > { %v2627_v36 = vadd.f32 %v12180_v26, %v12168_v60  ;;  %v8138_v26 = vld [vmem:[#allocation7 + $0x18] sm:$0xff]  }
 0x3ea   : > { %v4661_v59 = vmul.f32 %v4652_v32, %v12107_v33  ;;  %v4705_v25 = vmul.f32 %v4696_v0, %v12107_v33  ;;  %7865 = vmatpush3.bf16.msra.mxu0 %v8136_v47  ;;  %v3245_v33 = vrot.slane %v7529_v22, %v9010_v20  ;;  %v4738_v4 = vmax.f32 %v4730_v31, %v10785_v8  ;;  %v12184_v22 = vld [vmem:[#allocation65_spill] sm:$0xff] }
 0x3eb   : > { %v12185_v40 = vunpack.c.l.bf16 %v12184_v22  ;;  %v3026_v31 = vpack.c.bf16 %v10824_v10, %v2627_v36  ;;  %v12190_v22 = vld [vmem:[#allocation62_spill] sm:$0xff] }
 0x3ec   : > { %4539 = vadd.xlane.f32.xlu1 %v4524_v48  ;;  %4718 = vadd.xlane.f32.xlu0 %v4704_v28  ;;  %v10801_v46 = vpop.xlane.xlu1 %4527  ;;  %v3247_v3 = vcombine.high %v3245_v33, %v3245_v33  ;;  %v10820_v53 = vrot.slane %v3245_v33, %v9010_v20  ;;  %v5066_v48 = vunpack.c.l.bf16 %v12170_v18  ;;  %v12174_v28 = vunpack.c.l.bf16 %v12173_v5 }
 0x3ed   : > { %v5198_v33 = vcombine.low %v5082_v51, %v12185_v40  ;;  %v3287_v57 = vrot.slane %v3026_v31, %v9010_v20  ;;  %v12191_v40 = vunpack.c.l.bf16 %v12190_v22 }
 0x3ee   : > { %v5131_v7 = vcombine.low %v12174_v28, %v12172_v12  ;;  %v10847_v27 = vrot.slane %v3247_v3, %v9010_v20  ;;  %v11933_v5 = vunpack.c.l.bf16 %v10820_v53 }
 0x3ef   : > { %v5206_v51 = vrot.slane %v5198_v33, %v9563_v37  ;;  %v3295_v22 = vcombine.high %v3287_v57, %v3287_v57 }
 0x3f0   : > { %4589 = vadd.xlane.f32.xlu1 %v4574_v38  ;;  %v3278_v38 = vcombine.high %v10531_v45, %v10531_v45  ;;  %v10851_v45 = vcombine.high %v10820_v53, %v10820_v53  ;;  %v11934_v28 = vunpack.c.l.bf16 %v10847_v27 }
 0x3f1   : > { %v10941_v14 = vrot.slane %v3295_v22, %v9010_v20 }
 0x3f2   : > { %12183 = vst [vmem:[#allocation69_spill] sm:$0xff] %v10851_v45  ;;  %v5094_v15 = vunpack.c.l.bf16 %v3278_v38  ;;  %v11932_v11 = vunpack.c.l.bf16 %v10851_v45 }
 0x3f3   : > { %12197 = vst [vmem:[#allocation80_spill] sm:$0xff] %v10941_v14  ;;  %v10967_v22 = vcombine.high %v10941_v14, %v10941_v14  ;;  %v12201_v2 = vunpack.c.l.bf16 %v10941_v14 }
 0x3f4   : > { %4495 = vadd.xlane.f32.xlu1 %v4480_v52  ;;  %v10799_v54 = vpop.xlane.xlu0 %3621  ;;  %v12179_v52 = vunpack.c.l.bf16 %v12178_v41  ;;  %v8137_v41 = vld [vmem:[#allocation7 + $0x20] sm:$0xff]   ;;  %v10877_v36 = vcombine.low %v5094_v15, %v11933_v5  ;;  %v10900_v15 = vcombine.low %v11934_v28, %v11932_v11  ;;  %v8139_v11 = vld [vmem:[#allocation7 + $0x10] sm:$0xff]   ;;  %v5538_v5 = vshrl.u32 %v10847_v27, 16 }
 0x3f5   : > { %7866 = vmatprep.subr.bf16.mxu0 %v8137_v41 }
 0x3f6   : > { %v5199_v32 = vcombine.low %v12179_v52, %v12177_v1  ;;  %12187 = vst [vmem:[#allocation54_spill] sm:$0xff] %v10877_v36  ;;  %12194 = vst [vmem:[#allocation64_spill] sm:$0xff] %v10900_v15  ;;  %7867 = vmatpush3.bf16.msra.mxu0 %v8137_v41  ;;  %v5543_v41 = vshll.u32 %v10851_v45, 16 }
 0x3f7   : > { %7868 = vmatprep.subr.bf16.mxu0 %v8138_v26 }
 0x3f8   : > { %4676 = vadd.xlane.f32.xlu1 %v4661_v59  ;;  %v12181_v59 = vld [vmem:[#allocation43_spill] sm:$0xff]  ;;  %v5213_v3 = vrot.slane %v5199_v32, %v9563_v37 }
 0x3f9   : > { %v12182_v0 = vunpack.c.l.bf16 %v12181_v59  ;;  %v12186_v32 = vld [vmem:[#allocation35_spill] sm:$0xff] }
 0x3fa   : > { %v10889_v31 = vcombine.low %v5206_v51, %v5213_v3  ;;  %v5530_v3 = vshrl.u32 %v10820_v53, 16  ;;  %v7530_v51 = vpack.c.bf16 %v10824_v10, %v10824_v10  ;;  %v10920_v10 = vrot.slane %v3287_v57, %v9010_v20  ;;  %7869 = vmatpush3.bf16.msra.mxu0 %v8138_v26 }
 0x3fb   : > { %7870 = vmatprep.subr.bf16.mxu0 %v8139_v11 }
 0x3fc   : > { %4720 = vadd.xlane.f32.xlu1 %v4705_v25  ;;  %v10803_v29 = vpop.xlane.xlu0 %4348  ;;  %v10809_v24 = vpop.xlane.xlu1 %4162  ;;  %v5130_v25 = vcombine.low %v5066_v48, %v12182_v0  ;;  %v12188_v0 = vld [vmem:[#allocation50_spill] sm:$0xff]  ;;  %12192 = vst [vmem:[#allocation63_spill] sm:$0xff] %v10889_v31 }
 0x3fe   : > { %v5138_v12 = vrot.slane %v5130_v25, %v9563_v37  ;;  %v12189_v25 = vunpack.c.l.bf16 %v12188_v0  ;;  %v5527_v0 = vshll.u32 %v10820_v53, 16  ;;  %7871 = vmatpush3.bf16.msra.mxu0 %v8139_v11 }
 0x400   : > { %v10811_v23 = vpop.xlane.xlu0 %4575  ;;  %v10887_v33 = vcombine.low %v12191_v40, %v12189_v25  ;;  %v5535_v25 = vshll.u32 %v10847_v27, 16 }
 0x404   : > { %v10815_v56 = vpop.xlane.xlu0 %4706  ;;  %v10817_v42 = vpop.xlane.xlu1 %4483 }
 0x408   : > { %v10834_v35 = vpop.xlane.xlu0 %4481 }
 0x409   : > { %v4746_v47 = vmax.f32 %v4738_v4, %v10834_v35  ;;  %v10856_v17 = vpop.xlane.xlu1 %3623  ;;  %v5145_v4 = vrot.slane %v5131_v7, %v9563_v37 }
 0x40b   : > { %v4754_v18 = vmax.f32 %v4746_v47, %v10793_v50  ;;  %v10872_v52 = vcombine.low %v5138_v12, %v5145_v4  ;;  %v4723_v47 = vmax.f32 %v10781_v16, %v10809_v24  ;;  %v5522_v12 = vshrl.u32 %v3278_v38, 16 }
 0x40c   : > { %v10860_v48 = vpop.xlane.xlu0 %4164 }
 0x40d   : > { %v10869_v1 = vpop.xlane.xlu1 %4577  ;;  %v4762_v7 = vmax.f32 %v4754_v18, %v10811_v23  ;;  %v10893_v18 = vcombine.high %v10847_v27, %v10847_v27  ;;  %v4731_v28 = vmax.f32 %v4723_v47, %v10790_v13  ;;  %v10930_v9 = vsel %vm9521_vm0, %v5522_v12, %v5527_v0  ;;  %v8140_v0 = vld [vmem:[#allocation7 + $0x8] sm:$0xff]  }
 0x40e   : > { %12195 = vst [vmem:[#allocation77_spill] sm:$0xff] %v10930_v9  ;;  %v10934_v47 = vsel %vm9521_vm0, %v5530_v3, %v5535_v25  ;;  %v10947_v25 = vsel %vm9521_vm0, %v5538_v5, %v5543_v41  ;;  %7872 = vmatprep.subr.bf16.mxu0 %v8140_v0  ;;  %v6037_v5 = vshrl.u32 %v10941_v14, 16 }
 0x40f   : > { %12193 = vst [vmem:[#allocation51_spill] sm:$0xff] %v10893_v18  ;;  %12196 = vst [vmem:[#allocation57_spill] sm:$0xff] %v10934_v47  ;;  %v4739_v3 = vmax.f32 %v4731_v28, %v10796_v62  ;;  %7873 = vmatpush3.bf16.msra.mxu0 %v8140_v0 }
 0x410   : > { %v10881_v59 = vpop.xlane.xlu0 %4662  ;;  %12198 = vst [vmem:[#allocation82_spill] sm:$0xff] %v10947_v25  ;;  %v5986_v25 = vunpack.c.l.bf16 %v10920_v10 }
 0x411   : > { %v4770_v4 = vmax.f32 %v4762_v7, %v10881_v59  ;;  %v10907_v7 = vpop.xlane.xlu1 %4350 }
 0x413   : > { %v10910_v40 = vmax.f32 %v4770_v4, %v10815_v56 }
 0x414   : > { %v10917_v34 = vpop.xlane.xlu0 %4398 }
 0x415   : > { %v4786_v4 = vsub.f32 %v10740_v58, %v10910_v40  ;;  %v4810_v63 = vsub.f32 %v10777_v19, %v10910_v40  ;;  %v4834_v38 = vsub.f32 %v10762_v61, %v10910_v40  ;;  %v4858_v58 = vsub.f32 %v10785_v8, %v10910_v40  ;;  %v10943_v61 = vpop.xlane.xlu1 %4400 }
 0x416   : > { %v3294_v19 = vrot.slane %v7530_v51, %v9010_v20  ;;  %v4882_v8 = vsub.f32 %v10834_v35, %v10910_v40  ;;  %v4906_v28 = vsub.f32 %v10793_v50, %v10910_v40 }
 0x417   : > { %v4794_v36 = vmul.f32 1.442695, %v4786_v4  ;;  %v4818_v12 = vmul.f32 1.442695, %v4810_v63  ;;  %v4842_v57 = vmul.f32 1.442695, %v4834_v38  ;;  %v10958_v63 = vcombine.high %v10920_v10, %v10920_v10 }
 0x418   : > { %v10952_v26 = vpop.xlane.xlu0 %3625  ;;  %v4866_v41 = vmul.f32 1.442695, %v4858_v58  ;;  %v3296_v4 = vcombine.high %v3294_v19, %v3294_v19  ;;  %v4747_v58 = vmax.f32 %v4739_v3, %v10817_v42  ;;  %v4890_v50 = vmul.f32 1.442695, %v4882_v8 }
 0x419   : > { %12199 = vst [vmem:[#allocation55_spill] sm:$0xff] %v10958_v63  ;;  %8208 = vpow2.f32 %v4794_v36  ;;  %v10969_v51 = vpop.xlane.xlu1 %4708  ;;  %v8141_v36 = vld [vmem:[#allocation7] sm:$0xff]   ;;  %v10976_v35 = vrot.slane %v3294_v19, %v9010_v20  ;;  %v6034_v38 = vshll.u32 %v10941_v14, 16  ;;  %v6042_v15 = vshll.u32 %v10958_v63, 16 }
 0x41a   : > { %8210 = vpow2.f32 %v4818_v12  ;;  %v4914_v9 = vmul.f32 1.442695, %v4906_v28  ;;  %v4930_v3 = vsub.f32 %v10811_v23, %v10910_v40  ;;  %v6029_v12 = vshrl.u32 %v10920_v10, 16  ;;  %7874 = vmatprep.subr.bf16.mxu0 %v8141_v36 }
 0x41b   : > { %8212 = vpow2.f32 %v4842_v57  ;;  %v10985_v57 = vrot.slane %v3296_v4, %v9010_v20  ;;  %v6050_v28 = vshll.u32 %v10967_v22, 16  ;;  %v4755_v23 = vmax.f32 %v4747_v58, %v10801_v46  ;;  %7875 = vmatpush3.bf16.msra.mxu0 %v8141_v36 }
 0x41c   : > { %v10973_v11 = vpop.xlane.xlu0 %4529  ;;  %8214 = vpow2.f32 %v4866_v41  ;;  %v10994_v41 = vcombine.low %v5986_v25, %v12201_v2  ;;  %v6036_v4 = vsel %vm9521_vm0, %v6029_v12, %v6034_v38  ;;  %v6044_v10 = vsel %vm9521_vm0, %v6037_v5, %v6042_v15 }
 0x41d   : > { %12200 = vst [vmem:[#allocation83_spill] sm:$0xff] %v10985_v57  ;;  %v10990_v47 = vpop.xlane.xlu1 %4166  ;;  %8216 = vpow2.f32 %v4890_v50  ;;  %v6045_v19 = vshrl.u32 %v10958_v63, 16  ;;  %v6053_v8 = vshrl.u32 %v10967_v22, 16  ;;  %v4763_v2 = vmax.f32 %v4755_v23, %v10869_v1 }
 0x41e   : > { %12202 = vst [vmem:[#allocation85_spill] sm:$0xff] %v10994_v41  ;;  %8218 = vpow2.f32 %v4914_v9  ;;  %v4938_v25 = vmul.f32 1.442695, %v4930_v3  ;;  %v4954_v58 = vsub.f32 %v10881_v59, %v10910_v40  ;;  %v12203_v50 = vunpack.c.l.bf16 %v10847_v27 }
 0x41f   : > { %v12204_v14 = vunpack.c.l.bf16 %v10820_v53  ;;  %v11017_v15 = vcombine.high %v10976_v35, %v10976_v35  ;;  %v11021_v5 = vcombine.high %v10985_v57, %v10985_v57  ;;  %v4724_v9 = vmax.f32 %v10799_v54, %v10860_v48 }
 0x420   : > { %v10998_v0 = vpop.xlane.xlu0 %4579  ;;  %v12208_v59 = vunpack.c.l.bf16 %v10967_v22  ;;  %v12209_v27 = vunpack.c.l.bf16 %v10958_v63  ;;  %v6058_v36 = vshll.u32 %v10976_v35, 16  ;;  %v6066_v31 = vunpack.c.l.bf16 %v6044_v10 }
 0x421   : > { %v11013_v38 = vcombine.low %v12204_v14, %v12203_v50  ;;  %12206 = vst [vmem:[#allocation81_spill] sm:$0xff] %v11017_v15  ;;  %12207 = vst [vmem:[#allocation79_spill] sm:$0xff] %v11021_v5  ;;  %v11035_v14 = vsel %vm9521_vm0, %v6045_v19, %v6050_v28  ;;  %v4978_v63 = vsub.f32 %v10815_v56, %v10910_v40  ;;  %8220 = vpow2.f32 %v4938_v25 }
 0x422   : > { %v11031_v53 = vcombine.low %v12209_v27, %v12208_v59  ;;  %v11047_v27 = vsel %vm9521_vm0, %v6053_v8, %v6058_v36  ;;  %v4962_v19 = vmul.f32 1.442695, %v4954_v58  ;;  %v6107_v50 = vunpack.c.l.bf16 %v10976_v35 }
 0x423   : > { %12205 = vst [vmem:[#allocation84_spill] sm:$0xff] %v11013_v38  ;;  %v6065_v38 = vunpack.c.l.bf16 %v6036_v4  ;;  %v4732_v10 = vmax.f32 %v4724_v9, %v10803_v29  ;;  %v4986_v4 = vmul.f32 1.442695, %v4978_v63 }
 0x424   : > { %v11025_v12 = vpop.xlane.xlu1 %4664  ;;  %12210 = vst [vmem:[#allocation61_spill] sm:$0xff] %v11031_v53  ;;  %v11039_v23 = vpop.xlane.xlu0 %4485  ;;  %8222 = vpow2.f32 %v4962_v19 }
 0x425   : > { %v4771_v3 = vmax.f32 %v4763_v2, %v11025_v12  ;;  %v4740_v9 = vmax.f32 %v4732_v10, %v10917_v34 }
 0x426   : > { %v8209_v59 = vpop.eup %8208 }
 0x427   : > { %v11050_v28 = vmax.f32 %v4771_v3, %v10969_v51  ;;  %v8211_v2 = vpop.eup %8210  ;;  %v4748_v63 = vmax.f32 %v4740_v9, %v11039_v23  ;;  %v5274_v19 = vmul.f32 %v8209_v59, %v10872_v52 }
 0x428   : > { %v11056_v56 = vpop.xlane.xlu1 %4531  ;;  %v5002_v40 = vadd.f32 %v8211_v2, %v8209_v59  ;;  %v11064_v36 = vpop.xlane.xlu0 %4352 }
 0x429   : > { %v4787_v8 = vsub.f32 %v10781_v16, %v11050_v28  ;;  %v4811_v25 = vsub.f32 %v10809_v24, %v11050_v28  ;;  %v4835_v58 = vsub.f32 %v10790_v13, %v11050_v28  ;;  %v8213_v3 = vpop.eup %8212  ;;  %v4859_v53 = vsub.f32 %v10796_v62, %v11050_v28 }
 0x42a   : > { %v5010_v41 = vadd.f32 %v8213_v3, %v5002_v40  ;;  %v8215_v18 = vpop.eup %8214  ;;  %v11070_v24 = vcombine.low %v6065_v38, %v6066_v31  ;;  %v4883_v13 = vsub.f32 %v10817_v42, %v11050_v28  ;;  %v4907_v42 = vsub.f32 %v10801_v46, %v11050_v28  ;;  %v12215_v46 = vld [vmem:[#allocation60_spill] sm:$0xff] }
 0x42b   : > { %v4796_v16 = vmul.f32 1.442695, %v4787_v8  ;;  %v4820_v45 = vmul.f32 1.442695, %v4811_v25  ;;  %v4844_v55 = vmul.f32 1.442695, %v4835_v58  ;;  %v8217_v40 = vpop.eup %8216  ;;  %v12212_v8 = vunpack.c.l.bf16 %v10967_v22 }
 0x42c   : > { %12211 = vst [vmem:[#allocation58_spill] sm:$0xff] %v11070_v24  ;;  %v11074_v21 = vpop.xlane.xlu1 %4487  ;;  %v5018_v35 = vadd.f32 %v8215_v18, %v5010_v41  ;;  %v11078_v62 = vpop.xlane.xlu0 %4710  ;;  %v4868_v38 = vmul.f32 1.442695, %v4859_v53  ;;  %v12214_v41 = vld [vmem:[#allocation48_spill] sm:$0xff]  ;;  %v4892_v10 = vmul.f32 1.442695, %v4883_v13  ;;  %v4931_v52 = vsub.f32 %v10869_v1, %v11050_v28 }
 0x42d   : > { %8224 = vpow2.f32 %v4796_v16  ;;  %v11086_v25 = vcombine.low %v12212_v8, %v6107_v50  ;;  %v5794_v9 = vmul.f32 %v8211_v2, %v12214_v41  ;;  %v8219_v16 = vpop.eup %8218  ;;  %v2637_v59 = vadd.f32 %v12215_v46, %v12168_v60  ;;  %v12252_v24 = vld [vmem:[#allocation40_spill] sm:$0xff] }
 0x42e   : > { %8226 = vpow2.f32 %v4820_v45  ;;  %v5026_v58 = vadd.f32 %v8217_v40, %v5018_v35  ;;  %v4756_v45 = vmax.f32 %v4748_v63, %v10973_v11  ;;  %v12216_v35 = vld [vmem:[#allocation49_spill] sm:$0xff]  ;;  %v4955_v1 = vsub.f32 %v11025_v12, %v11050_v28  ;;  %v11107_v46 = vpop.eup %8220 }
 0x42f   : > { %12213 = vst [vmem:[#allocation59_spill] sm:$0xff] %v11086_v25  ;;  %8228 = vpow2.f32 %v4986_v4  ;;  %v5802_v4 = vadd.f32 %v5794_v9, %v5274_v19  ;;  %v5970_v8 = vmul.f32 %v8213_v3, %v12216_v35  ;;  %v4725_v13 = vmax.f32 %v10856_v17, %v10990_v47 }
 0x430   : > { %8230 = vpow2.f32 %v4844_v55  ;;  %v11092_v53 = vpop.xlane.xlu1 %3627  ;;  %v5034_v22 = vadd.f32 %v8219_v16, %v5026_v58  ;;  %v11096_v50 = vpop.xlane.xlu0 %4168  ;;  %v4916_v55 = vmul.f32 1.442695, %v4907_v42  ;;  %v4979_v63 = vsub.f32 %v10969_v51, %v11050_v28  ;;  %v12217_v58 = vld [vmem:[#allocation53_spill] sm:$0xff] }
 0x431   : > { %8232 = vpow2.f32 %v4868_v38  ;;  %v5978_v60 = vadd.f32 %v5970_v8, %v5802_v4  ;;  %v6012_v41 = vmul.f32 %v8215_v18, %v12217_v58  ;;  %v6194_v3 = vshrl.u32 %v11017_v15, 16 }
 0x432   : > { %8234 = vpow2.f32 %v4892_v10  ;;  %v4940_v19 = vmul.f32 1.442695, %v4931_v52  ;;  %v4764_v42 = vmax.f32 %v4756_v45, %v10998_v0  ;;  %v3027_v12 = vpack.c.bf16 %v2637_v59, %v2637_v59  ;;  %v11121_v59 = vpop.eup %8222 }
 0x433   : > { %v5042_v9 = vadd.f32 %v11107_v46, %v5034_v22  ;;  %v6020_v31 = vadd.f32 %v6012_v41, %v5978_v60  ;;  %v6091_v51 = vmul.f32 %v8217_v40, %v10620_v43  ;;  %v6199_v18 = vshll.u32 %v11021_v5, 16 }
 0x434   : > { %v11110_v38 = vpop.xlane.xlu1 %4354  ;;  %v11114_v35 = vpop.xlane.xlu0 %4666  ;;  %8236 = vpow2.f32 %v4916_v55  ;;  %v4964_v28 = vmul.f32 1.442695, %v4955_v1  ;;  %v4733_v10 = vmax.f32 %v4725_v13, %v10907_v7  ;;  %v4988_v52 = vmul.f32 1.442695, %v4979_v63 }
 0x435   : > { %v4772_v4 = vmax.f32 %v4764_v42, %v11114_v35  ;;  %v6099_v8 = vadd.f32 %v6091_v51, %v6020_v31  ;;  %v6127_v45 = vmul.f32 %v8219_v16, %v10654_v39  ;;  %v12218_v22 = vunpack.c.l.bf16 %v11047_v27 }
 0x436   : > { %v12219_v60 = vunpack.c.l.bf16 %v11035_v14  ;;  %v12220_v40 = vunpack.c.l.bf16 %v11017_v15  ;;  %v12221_v55 = vunpack.c.l.bf16 %v10985_v57  ;;  %8238 = vpow2.f32 %v4940_v19 }
 0x437   : > { %v11138_v31 = vmax.f32 %v4772_v4, %v11078_v62  ;;  %v11142_v27 = vrot.slane %v3027_v12, %v9010_v20  ;;  %v5050_v14 = vadd.f32 %v11121_v59, %v5042_v9  ;;  %v6135_v42 = vadd.f32 %v6127_v45, %v6099_v8 }
 0x438   : > { %v11127_v41 = vcombine.low %v12219_v60, %v12218_v22  ;;  %v11133_v1 = vcombine.low %v12221_v55, %v12220_v40  ;;  %v11135_v13 = vpop.xlane.xlu1 %4581  ;;  %8240 = vpow2.f32 %v4964_v28  ;;  %v11155_v12 = vsel %vm9521_vm0, %v6194_v3, %v6199_v18 }
 0x439   : > { %v11145_v63 = vpop.xlane.xlu0 %4402  ;;  %v4788_v19 = vsub.f32 %v10799_v54, %v11138_v31  ;;  %v4812_v22 = vsub.f32 %v10860_v48, %v11138_v31  ;;  %v4836_v4 = vsub.f32 %v10803_v29, %v11138_v31  ;;  %12223 = vst [vmem:[#allocation36_spill] sm:$0xff] %v11155_v12  ;;  %8242 = vpow2.f32 %v4988_v52 }
 0x43a   : > { %12222 = vst [vmem:[#allocation78_spill] sm:$0xff] %v11133_v1  ;;  %v8225_v51 = vpop.eup %8224  ;;  %v4741_v9 = vmax.f32 %v4733_v10, %v10943_v61  ;;  %v4860_v28 = vsub.f32 %v10917_v34, %v11138_v31  ;;  %v4884_v10 = vsub.f32 %v11039_v23, %v11138_v31  ;;  %v3336_v34 = vcombine.high %v11142_v27, %v11142_v27 }
 0x43b   : > { %v8227_v60 = vpop.eup %8226  ;;  %v4798_v48 = vmul.f32 1.442695, %v4788_v19  ;;  %v4822_v40 = vmul.f32 1.442695, %v4812_v22  ;;  %v4846_v55 = vmul.f32 1.442695, %v4836_v4  ;;  %v12224_v19 = vunpack.c.l.bf16 %v12186_v32 }
 0x43c   : > { %v11160_v8 = vpop.eup %8228  ;;  %v5003_v54 = vadd.f32 %v8227_v60, %v8225_v51  ;;  %v11162_v45 = vpop.xlane.xlu1 %4712  ;;  %v4749_v18 = vmax.f32 %v4741_v9, %v11074_v21  ;;  %v12225_v22 = vld [vmem:[#allocation47_spill] sm:$0xff]  ;;  %v4908_v9 = vsub.f32 %v10973_v11, %v11138_v31  ;;  %v5275_v23 = vmul.f32 %v8225_v51, %v12217_v58 }
 0x43d   : > { %v8231_v29 = vpop.eup %8230  ;;  %v5058_v3 = vadd.f32 %v11160_v8, %v5050_v14  ;;  %v11169_v52 = vpop.xlane.xlu0 %4533  ;;  %8244 = vpow2.f32 %v4798_v48  ;;  %v12226_v4 = vunpack.c.l.bf16 %v12225_v22  ;;  %v4870_v14 = vmul.f32 1.442695, %v4860_v28 }
 0x43e   : > { %v5011_v16 = vadd.f32 %v8231_v29, %v5003_v54  ;;  %v8233_v2 = vpop.eup %8232  ;;  %8246 = vpow2.f32 %v4822_v40  ;;  %v4932_v54 = vsub.f32 %v10998_v0, %v11138_v31  ;;  %v5795_v32 = vmul.f32 %v8227_v60, %v10620_v43 }
 0x43f   : > { %v11177_v1 = vcombine.low %v12226_v4, %v12224_v19  ;;  %8248 = vpow2.f32 %v4846_v55  ;;  %v8235_v22 = vpop.eup %8234  ;;  %v4757_v19 = vmax.f32 %v4749_v18, %v11056_v56  ;;  %v4894_v40 = vmul.f32 1.442695, %v4884_v10 }
 0x440   : > { %v5019_v12 = vadd.f32 %v8233_v2, %v5011_v16  ;;  %v11184_v48 = vpop.xlane.xlu1 %4170  ;;  %8250 = vrcp.f32 %v5058_v3  ;;  %v6169_v11 = vmul.f32 %v11107_v46, %v10627_v30  ;;  %v4956_v16 = vsub.f32 %v11114_v35, %v11138_v31 }
 0x441   : > { %v11188_v28 = vpop.xlane.xlu0 %4489  ;;  %v5803_v51 = vadd.f32 %v5795_v32, %v5275_v23  ;;  %v5971_v0 = vmul.f32 %v8231_v29, %v10654_v39  ;;  %v11195_v55 = vpop.eup %8236  ;;  %v4765_v43 = vmax.f32 %v4757_v19, %v11135_v13  ;;  %8252 = vpow2.f32 %v4870_v14 }
 0x442   : > { %v5027_v58 = vadd.f32 %v8235_v22, %v5019_v12  ;;  %v4918_v60 = vmul.f32 1.442695, %v4908_v9  ;;  %v4980_v3 = vsub.f32 %v11078_v62, %v11138_v31  ;;  %v4942_v10 = vmul.f32 1.442695, %v4932_v54 }
 0x443   : > { %v5979_v12 = vadd.f32 %v5971_v0, %v5803_v51  ;;  %v6013_v35 = vmul.f32 %v8233_v2, %v10627_v30  ;;  %v11204_v4 = vpop.eup %8238  ;;  %8254 = vpow2.f32 %v4894_v40  ;;  %v6177_v14 = vadd.f32 %v6169_v11, %v6135_v42 }
 0x444   : > { %v5035_v18 = vadd.f32 %v11195_v55, %v5027_v58  ;;  %v11201_v46 = vpop.xlane.xlu1 %4668  ;;  %v6248_v9 = vmul.f32 %v11121_v59, %v10674_v44  ;;  %v4966_v31 = vmul.f32 1.442695, %v4956_v16  ;;  %v6092_v54 = vmul.f32 %v8235_v22, %v10674_v44 }
 0x445   : > { %v4773_v39 = vmax.f32 %v4765_v43, %v11201_v46  ;;  %v11207_v29 = vpop.xlane.xlu0 %3629  ;;  %v6021_v23 = vadd.f32 %v6013_v35, %v5979_v12  ;;  %v11213_v32 = vpop.eup %8240  ;;  %8256 = vpow2.f32 %v4918_v60  ;;  %v4990_v2 = vmul.f32 1.442695, %v4980_v3 }
 0x446   : > { %v5043_v62 = vadd.f32 %v11204_v4, %v5035_v18  ;;  %v6256_v40 = vadd.f32 %v6248_v9, %v6177_v14  ;;  %v11218_v58 = vpop.eup %8242  ;;  %v4726_v59 = vmax.f32 %v10952_v26, %v11096_v50  ;;  %8258 = vpow2.f32 %v4942_v10 }
 0x447   : > { %v11216_v19 = vmax.f32 %v4773_v39, %v11162_v45  ;;  %v6100_v16 = vadd.f32 %v6092_v54, %v6021_v23  ;;  %v11237_v3 = vrot.slane %v11142_v27, %v9010_v20  ;;  %8260 = vpow2.f32 %v4966_v31 }
 0x448   : > { %v5051_v42 = vadd.f32 %v11213_v32, %v5043_v62  ;;  %v11223_v11 = vpop.xlane.xlu1 %4404  ;;  %8262 = vpow2.f32 %v4990_v2  ;;  %v5885_v9 = vrot.slane %v10887_v33, %v9563_v37  ;;  %v11253_v31 = vmax.f32 %v4726_v59, %v11064_v36 }
 0x449   : > { %v4789_v22 = vsub.f32 %v10856_v17, %v11216_v19  ;;  %v4813_v51 = vsub.f32 %v10990_v47, %v11216_v19  ;;  %v4837_v0 = vsub.f32 %v10907_v7, %v11216_v19  ;;  %v4861_v43 = vsub.f32 %v10943_v61, %v11216_v19  ;;  %v11233_v60 = vpop.xlane.xlu0 %4356 }
 0x44a   : > { %v5059_v18 = vadd.f32 %v11218_v58, %v5051_v42  ;;  %v4885_v17 = vsub.f32 %v11074_v21, %v11216_v19  ;;  %v8245_v10 = vpop.eup %8244  ;;  %v11246_v61 = vrot.slane %v3336_v34, %v9010_v20  ;;  %v5892_v27 = vrot.slane %v11177_v1, %v9563_v37 }
 0x44b   : > { %v4800_v47 = vmul.f32 1.442695, %v4789_v22  ;;  %v4824_v12 = vmul.f32 1.442695, %v4813_v51  ;;  %v4848_v7 = vmul.f32 1.442695, %v4837_v0  ;;  %v8247_v35 = vpop.eup %8246  ;;  %v4909_v54 = vsub.f32 %v11056_v56, %v11216_v19 }
 0x44c   : > { %12227 = vst [vmem:[#allocation76_spill] sm:$0xff] %v11246_v61  ;;  %8264 = vrcp.f32 %v5059_v18  ;;  %v4872_v39 = vmul.f32 1.442695, %v4861_v43  ;;  %v11248_v14 = vpop.xlane.xlu1 %4535  ;;  %v8249_v21 = vpop.eup %8248  ;;  %v5004_v62 = vadd.f32 %v8247_v35, %v8245_v10  ;;  %v4896_v34 = vmul.f32 1.442695, %v4885_v17 }
 0x44d   : > { %8266 = vpow2.f32 %v4800_v47  ;;  %v11255_v23 = vpop.xlane.xlu0 %4583  ;;  %v11259_v20 = vpop.eup %8250  ;;  %v6284_v33 = vmul.f32 %v11160_v8, %v10680_v6  ;;  %v5276_v42 = vmul.f32 %v8245_v10, %v10627_v30  ;;  %v5796_v59 = vmul.f32 %v8247_v35, %v10674_v44  ;;  %v12228_v44 = vld [vmem:[#allocation37_spill] sm:$0xff] }
 0x44e   : > { %8268 = vpow2.f32 %v4824_v12  ;;  %v5012_v2 = vadd.f32 %v8249_v21, %v5004_v62  ;;  %v8253_v22 = vpop.eup %8252  ;;  %v4933_v1 = vsub.f32 %v11135_v13, %v11216_v19  ;;  %v5972_v0 = vmul.f32 %v8249_v21, %v10680_v6 }
 0x44f   : > { %8270 = vpow2.f32 %v4848_v7  ;;  %v6128_v56 = vmul.f32 %v11195_v55, %v10680_v6  ;;  %v4957_v8 = vsub.f32 %v11201_v46, %v11216_v19  ;;  %v5804_v30 = vadd.f32 %v5796_v59, %v5276_v42  ;;  %v12229_v42 = vld [vmem:[#allocation39_spill] sm:$0xff] }
 0x450   : > { %8272 = vpow2.f32 %v4872_v39  ;;  %v11269_v51 = vpop.xlane.xlu1 %3631  ;;  %v5020_v43 = vadd.f32 %v8253_v22, %v5012_v2  ;;  %v6170_v17 = vmul.f32 %v11204_v4, %v12228_v44  ;;  %v8255_v10 = vpop.eup %8254  ;;  %v4920_v13 = vmul.f32 1.442695, %v4909_v54 }
 0x451   : > { %v11276_v18 = vpop.xlane.xlu0 %4714  ;;  %8274 = vpow2.f32 %v4896_v34  ;;  %v6136_v47 = vadd.f32 %v6128_v56, %v6100_v16  ;;  %v6292_v12 = vadd.f32 %v6284_v33, %v6256_v40  ;;  %v4981_v35 = vsub.f32 %v11162_v45, %v11216_v19 }
 0x452   : > { %v5028_v7 = vadd.f32 %v8255_v10, %v5020_v43  ;;  %v5980_v6 = vadd.f32 %v5972_v0, %v5804_v30  ;;  %v6014_v55 = vmul.f32 %v8253_v22, %v12228_v44  ;;  %v8257_v39 = vpop.eup %8256  ;;  %v4944_v46 = vmul.f32 1.442695, %v4933_v1 }
 0x453   : > { %v5893_v62 = vcombine.low %v5885_v9, %v5892_v27  ;;  %v6178_v2 = vadd.f32 %v6170_v17, %v6136_v47  ;;  %v6249_v4 = vmul.f32 %v11213_v32, %v12229_v42  ;;  %v8259_v34 = vpop.eup %8258  ;;  %v4742_v40 = vmax.f32 %v11253_v31, %v11145_v63  ;;  %v12230_v17 = vld [vmem:[#allocation51_spill] sm:$0xff]  ;;  %v12232_v47 = vld [vmem:[#allocation69_spill] sm:$0xff] }
 0x454   : > { %v5036_v54 = vadd.f32 %v8257_v39, %v5028_v7  ;;  %v6022_v16 = vadd.f32 %v6014_v55, %v5980_v6  ;;  %v6093_v45 = vmul.f32 %v8255_v10, %v12229_v42  ;;  %8276 = vpow2.f32 %v4920_v13  ;;  %v8261_v9 = vpop.eup %8260 }
 0x455   : > { %v11290_v19 = vpop.xlane.xlu0 %4406  ;;  %v4968_v33 = vmul.f32 1.442695, %v4957_v8  ;;  %v6257_v59 = vadd.f32 %v6249_v4, %v6178_v2  ;;  %v6285_v22 = vmul.f32 %v11218_v58, %v5893_v62  ;;  %v4992_v1 = vmul.f32 1.442695, %v4981_v35  ;;  %v8263_v56 = vpop.eup %8262  ;;  %v12235_v4 = vld [vmem:[#allocation38_spill] sm:$0xff] }
 0x456   : > { %v5044_v27 = vadd.f32 %v8259_v34, %v5036_v54  ;;  %v6101_v0 = vadd.f32 %v6093_v45, %v6022_v16  ;;  %v6129_v32 = vmul.f32 %v8257_v39, %v5893_v62  ;;  %8278 = vpow2.f32 %v4944_v46  ;;  %v12234_v39 = vld [vmem:[#allocation63_spill] sm:$0xff] }
 0x457   : > { %v6293_v30 = vadd.f32 %v6285_v22, %v6257_v59  ;;  %v12231_v10 = vshll.u32 %v12230_v17, 16  ;;  %v12233_v13 = vshrl.u32 %v12232_v47, 16  ;;  %v4727_v7 = vmax.f32 %v11092_v53, %v11184_v48 }
 0x458   : > { %v4750_v35 = vmax.f32 %v4742_v40, %v11188_v28  ;;  %v6137_v6 = vadd.f32 %v6129_v32, %v6101_v0  ;;  %v6171_v46 = vmul.f32 %v8259_v34, %v12234_v39  ;;  %v6250_v54 = vmul.f32 %v8261_v9, %v12235_v4 }
 0x459   : > { %v11283_v21 = vpop.xlane.xlu1 %4358  ;;  %v5553_v8 = vsel %vm9521_vm0, %v12233_v13, %v12231_v10  ;;  %v8265_v58 = vpop.eup %8264  ;;  %8280 = vpow2.f32 %v4968_v33  ;;  %v6308_v16 = vmul.f32 %v11259_v20, %v6292_v12  ;;  %v5052_v22 = vadd.f32 %v8261_v9, %v5044_v27  ;;  %v12236_v9 = vld [vmem:[#allocation74_spill] sm:$0xff] }
 0x45a   : > { %v8267_v2 = vpop.eup %8266  ;;  %v6309_v45 = vmul.f32 %v8265_v58, %v6293_v30  ;;  %8282 = vpow2.f32 %v4992_v1  ;;  %v6179_v13 = vadd.f32 %v6171_v46, %v6137_v6  ;;  %v6210_v40 = vshrl.u32 %v11237_v3, 16 }
 0x45b   : > { %v8269_v59 = vpop.eup %8268  ;;  %v5277_v10 = vmul.f32 %v8267_v2, %v12228_v44  ;;  %v4735_v33 = vmax.f32 %v4727_v7, %v11110_v38  ;;  %v6286_v27 = vmul.f32 %v8263_v56, %v12236_v9  ;;  %v5617_v1 = vunpack.c.l.bf16 %v5553_v8 }
 0x45c   : > { %v8271_v43 = vpop.eup %8270  ;;  %v5005_v0 = vadd.f32 %v8269_v59, %v8267_v2  ;;  %v5797_v34 = vmul.f32 %v8269_v59, %v12229_v42  ;;  %v6316_v25 = vpack.c.bf16 %v6309_v45, %v6308_v16  ;;  %v6258_v12 = vadd.f32 %v6250_v54, %v6179_v13 }
 0x45d   : > { %v11294_v31 = vpop.xlane.xlu1 %4585  ;;  %v11305_v55 = vpop.xlane.xlu0 %4537  ;;  %v4758_v30 = vmax.f32 %v4750_v35, %v11169_v52  ;;  %v5973_v6 = vmul.f32 %v8271_v43, %v5893_v62  ;;  %v6215_v2 = vshll.u32 %v11246_v61, 16  ;;  %v5060_v42 = vadd.f32 %v8263_v56, %v5052_v22  ;;  %v12237_v56 = vld [vmem:[#allocation57_spill] sm:$0xff] }
 0x45e   : > { %v8273_v57 = vpop.eup %8272  ;;  %v5013_v44 = vadd.f32 %v8271_v43, %v5005_v0  ;;  %v5805_v58 = vadd.f32 %v5797_v34, %v5277_v10  ;;  %7876 = vmatprep.mubr.bf16.mxu0 %v6316_v25  ;;  %v4743_v16 = vmax.f32 %v4735_v33, %v11223_v11  ;;  %v11322_v45 = vadd.f32 %v6286_v27, %v6258_v12  ;;  %v12239_v22 = vld [vmem:[#allocation77_spill] sm:$0xff]  ;;  %v12241_v34 = vld [vmem:[#allocation82_spill] sm:$0xff] }
 0x45f   : > { %v8275_v46 = vpop.eup %8274  ;;  %v4766_v54 = vmax.f32 %v4758_v30, %v11255_v23  ;;  %v6015_v8 = vmul.f32 %v8273_v57, %v12234_v39  ;;  %v12238_v43 = vunpack.c.l.bf16 %v12237_v56  ;;  %v12240_v10 = vunpack.c.l.bf16 %v12239_v22 }
 0x460   : > { %v5021_v7 = vadd.f32 %v8273_v57, %v5013_v44  ;;  %v5981_v59 = vadd.f32 %v5973_v6, %v5805_v58  ;;  %v12242_v33 = vunpack.c.l.bf16 %v12241_v34  ;;  %v6094_v30 = vmul.f32 %v8275_v46, %v12235_v4 }
 0x461   : > { %v11312_v32 = vpop.xlane.xlu1 %4716  ;;  %v11316_v20 = vpop.xlane.xlu0 %4172  ;;  %v5769_v0 = vcombine.low %v12240_v10, %v12238_v43  ;;  %8284 = vrcp.f32 %v5060_v42  ;;  %v12244_v56 = vunpack.c.l.bf16 %v12230_v17  ;;  %v12245_v43 = vunpack.c.l.bf16 %v12232_v47  ;;  %v12247_v17 = vld [vmem:[#allocation54_spill] sm:$0xff] }
 0x462   : > { %v4728_v25 = vmax.f32 %v11207_v29, %v11316_v20  ;;  %v5770_v12 = vcombine.low %v12242_v33, %v5617_v1  ;;  %v5029_v27 = vadd.f32 %v8275_v46, %v5021_v7  ;;  %v6023_v44 = vadd.f32 %v6015_v8, %v5981_v59  ;;  %v8277_v58 = vpop.eup %8276 }
 0x463   : > { %v11348_v22 = vcombine.low %v12245_v43, %v12244_v56  ;;  %v11358_v8 = vsel %vm9521_vm0, %v6210_v40, %v6215_v2  ;;  %v12248_v47 = vrot.slane %v12247_v17, %v9563_v37  ;;  %v5777_v34 = vrot.slane %v5769_v0, %v9563_v37 }
 0x464   : > { %v5037_v7 = vadd.f32 %v8277_v58, %v5029_v27  ;;  %v6102_v42 = vadd.f32 %v6094_v30, %v6023_v44  ;;  %12246 = vst [vmem:[#allocation41_spill] sm:$0xff] %v11358_v8  ;;  %v5784_v33 = vrot.slane %v5770_v12, %v9563_v37  ;;  %v12250_v12 = vld [vmem:[#allocation61_spill] sm:$0xff] }
 0x465   : > { %v11326_v13 = vpop.xlane.xlu1 %4491  ;;  %v11331_v62 = vpop.xlane.xlu0 %4670 }
 0x466   : > { %v4751_v35 = vmax.f32 %v4743_v16, %v11326_v13  ;;  %v4774_v57 = vmax.f32 %v4766_v54, %v11331_v62  ;;  %v12243_v16 = vld [vmem:[#allocation64_spill] sm:$0xff]  ;;  %v8279_v54 = vpop.eup %8278  ;;  %v11387_v15 = vcombine.low %v5777_v34, %v5784_v33 }
 0x467   : > { %v5264_v61 = vrot.slane %v12243_v16, %v9563_v37  ;;  %v5045_v27 = vadd.f32 %v8279_v54, %v5037_v7  ;;  %v8281_v2 = vpop.eup %8280  ;;  %v12249_v16 = vld [vmem:[#allocation84_spill] sm:$0xff] }
 0x468   : > { %v4759_v6 = vmax.f32 %v4751_v35, %v11248_v14  ;;  %v11354_v46 = vmax.f32 %v4774_v57, %v11276_v18  ;;  %v4736_v57 = vmax.f32 %v4728_v25, %v11233_v60  ;;  %v8283_v43 = vpop.eup %8282  ;;  %v6251_v56 = vmul.f32 %v8281_v2, %v12252_v24 }
 0x469   : > { %v11351_v59 = vpop.xlane.xlu1 %4174  ;;  %v11360_v35 = vpop.xlane.xlu0 %4493  ;;  %v11365_v10 = vcombine.low %v12248_v47, %v5264_v61  ;;  %v5053_v25 = vadd.f32 %v8281_v2, %v5045_v27  ;;  %v12251_v61 = vld [vmem:[#allocation73_spill] sm:$0xff] }
 0x46a   : > { %v4790_v44 = vsub.f32 %v10952_v26, %v11354_v46  ;;  %v4814_v40 = vsub.f32 %v11096_v50, %v11354_v46  ;;  %v4767_v30 = vmax.f32 %v4759_v6, %v11294_v31  ;;  %v4838_v50 = vsub.f32 %v11064_v36, %v11354_v46 }
 0x46b   : > { %v6130_v6 = vmul.f32 %v8277_v58, %v12236_v9  ;;  %v6172_v8 = vmul.f32 %v8279_v54, %v12251_v61  ;;  %v5061_v0 = vadd.f32 %v8283_v43, %v5053_v25  ;;  %v4744_v27 = vmax.f32 %v4736_v57, %v11290_v19 }
 0x46c   : > { %v4802_v17 = vmul.f32 1.442695, %v4790_v44  ;;  %v4826_v26 = vmul.f32 1.442695, %v4814_v40  ;;  %v4729_v44 = vmax.f32 %v11269_v51, %v11351_v59  ;;  %v12253_v40 = vld [vmem:[#allocation75_spill] sm:$0xff]  ;;  %v4862_v58 = vsub.f32 %v11145_v63, %v11354_v46 }
 0x46d   : > { %v4673_v7 = vpop.xlane.xlu1 %4672  ;;  %v11383_v1 = vpop.xlane.xlu0 %4587  ;;  %v4850_v49 = vmul.f32 1.442695, %v4838_v50  ;;  %v4886_v54 = vsub.f32 %v11188_v28, %v11354_v46  ;;  %v6138_v33 = vadd.f32 %v6130_v6, %v6102_v42  ;;  %v4752_v63 = vmax.f32 %v4744_v27, %v11360_v35 }
 0x46e   : > { %v4775_v47 = vmax.f32 %v4767_v30, %v4673_v7  ;;  %8286 = vpow2.f32 %v4802_v17  ;;  %v6287_v30 = vmul.f32 %v8283_v43, %v12253_v40  ;;  %v4958_v27 = vsub.f32 %v11331_v62, %v11354_v46 }
 0x46f   : > { %8288 = vpow2.f32 %v4826_v26  ;;  %v4737_v62 = vmax.f32 %v4729_v44, %v11283_v21 }
 0x470   : > { %v4783_v36 = vmax.f32 %v4775_v47, %v11312_v32  ;;  %8290 = vrcp.f32 %v5061_v0  ;;  %v4934_v0 = vsub.f32 %v11255_v23, %v11354_v46 }
 0x471   : > { %v11399_v34 = vpop.xlane.xlu1 %4408  ;;  %v11409_v6 = vpop.xlane.xlu0 %4674  ;;  %8292 = vpow2.f32 %v4850_v49 }
 0x472   : > { %v4791_v57 = vsub.f32 %v11092_v53, %v4783_v36  ;;  %v4815_v2 = vsub.f32 %v11184_v48, %v4783_v36  ;;  %v4839_v25 = vsub.f32 %v11110_v38, %v4783_v36  ;;  %v4863_v17 = vsub.f32 %v11223_v11, %v4783_v36  ;;  %v8285_v53 = vpop.eup %8284 }
 0x473   : > { %v4887_v43 = vsub.f32 %v11326_v13, %v4783_v36  ;;  %v4911_v26 = vsub.f32 %v11248_v14, %v4783_v36  ;;  %v4935_v42 = vsub.f32 %v11294_v31, %v4783_v36  ;;  %v4959_v5 = vsub.f32 %v4673_v7, %v4783_v36 }
 0x474   : > { %v4804_v50 = vmul.f32 1.442695, %v4791_v57  ;;  %v4828_v28 = vmul.f32 1.442695, %v4815_v2  ;;  %v4852_v47 = vmul.f32 1.442695, %v4839_v25  ;;  %v4910_v38 = vsub.f32 %v11169_v52, %v11354_v46 }
 0x475   : > { %v4876_v48 = vmul.f32 1.442695, %v4863_v17  ;;  %v11413_v11 = vpop.xlane.xlu1 %4539  ;;  %v4900_v14 = vmul.f32 1.442695, %v4887_v43  ;;  %v4983_v13 = vsub.f32 %v11312_v32, %v4783_v36  ;;  %v4924_v31 = vmul.f32 1.442695, %v4911_v26  ;;  %v11430_v17 = vpop.xlane.xlu0 %4718 }
 0x476   : > { %8294 = vpow2.f32 %v4804_v50  ;;  %v4760_v7 = vmax.f32 %v4752_v63, %v11305_v55  ;;  %v4948_v49 = vmul.f32 1.442695, %v4935_v42  ;;  %v6180_v57 = vadd.f32 %v6172_v8, %v6138_v33 }
 0x477   : > { %8296 = vpow2.f32 %v4828_v28  ;;  %v11422_v52 = vmul.f32 %v8285_v53, %v11322_v45  ;;  %v4972_v2 = vmul.f32 1.442695, %v4959_v5  ;;  %v4982_v32 = vsub.f32 %v11276_v18, %v11354_v46 }
 0x478   : > { %8298 = vpow2.f32 %v4852_v47  ;;  %v4768_v23 = vmax.f32 %v4760_v7, %v11383_v1  ;;  %v4996_v25 = vmul.f32 1.442695, %v4983_v13  ;;  %v6259_v43 = vadd.f32 %v6251_v56, %v6180_v57 }
 0x479   : > { %8300 = vpow2.f32 %v4876_v48  ;;  %v11427_v36 = vpop.xlane.xlu1 %4589  ;;  %v4874_v8 = vmul.f32 1.442695, %v4862_v58  ;;  %v4898_v45 = vmul.f32 1.442695, %v4886_v54  ;;  %v4922_v26 = vmul.f32 1.442695, %v4910_v38 }
 0x47a   : > { %8302 = vpow2.f32 %v4900_v14  ;;  %v4776_v33 = vmax.f32 %v4768_v23, %v11409_v6  ;;  %v4745_v18 = vmax.f32 %v4737_v62, %v11399_v34  ;;  %v6295_v46 = vadd.f32 %v6287_v30, %v6259_v43 }
 0x47b   : > { %8304 = vpow2.f32 %v4924_v31  ;;  %v8287_v5 = vpop.eup %8286  ;;  %v4946_v50 = vmul.f32 1.442695, %v4934_v0  ;;  %v4970_v28 = vmul.f32 1.442695, %v4958_v27  ;;  %v4994_v56 = vmul.f32 1.442695, %v4982_v32 }
 0x47c   : > { %8306 = vpow2.f32 %v4948_v49  ;;  %v8289_v63 = vpop.eup %8288  ;;  %v4784_v44 = vmax.f32 %v4776_v33, %v11430_v17  ;;  %v5278_v27 = vmul.f32 %v8287_v5, %v12234_v39 }
 0x47d   : > { %8308 = vpow2.f32 %v4972_v2  ;;  %v11434_v47 = vpop.xlane.xlu1 %4495  ;;  %v5006_v58 = vadd.f32 %v8289_v63, %v8287_v5  ;;  %v8291_v48 = vpop.eup %8290 }
 0x47e   : > { %8310 = vpow2.f32 %v4996_v25  ;;  %v4753_v54 = vmax.f32 %v4745_v18, %v11434_v47  ;;  %v4792_v42 = vsub.f32 %v11207_v29, %v4784_v44  ;;  %v4816_v53 = vsub.f32 %v11316_v20, %v4784_v44  ;;  %v11448_v7 = vpop.eup %8292 }
 0x47f   : > { %8312 = vpow2.f32 %v4874_v8  ;;  %v4840_v30 = vsub.f32 %v11233_v60, %v4784_v44  ;;  %v4864_v14 = vsub.f32 %v11290_v19, %v4784_v44  ;;  %v4888_v13 = vsub.f32 %v11360_v35, %v4784_v44 }
 0x480   : > { %8314 = vpow2.f32 %v4898_v45  ;;  %v4761_v38 = vmax.f32 %v4753_v54, %v11413_v11  ;;  %v4806_v0 = vmul.f32 1.442695, %v4792_v42  ;;  %v5798_v29 = vmul.f32 %v8289_v63, %v12235_v4 }
 0x481   : > { %8316 = vpow2.f32 %v4922_v26  ;;  %v11444_v31 = vpop.xlane.xlu1 %4676  ;;  %v4830_v60 = vmul.f32 1.442695, %v4816_v53  ;;  %v4854_v20 = vmul.f32 1.442695, %v4840_v30  ;;  %v4912_v49 = vsub.f32 %v11305_v55, %v4784_v44 }
 0x482   : > { %8318 = vpow2.f32 %v4946_v50  ;;  %v4878_v19 = vmul.f32 1.442695, %v4864_v14  ;;  %v4936_v35 = vsub.f32 %v11383_v1, %v4784_v44  ;;  %v4960_v2 = vsub.f32 %v11409_v6, %v4784_v44 }
 0x483   : > { %v8295_v57 = vpop.eup %8294  ;;  %8320 = vpow2.f32 %v4970_v28  ;;  %v5014_v39 = vadd.f32 %v11448_v7, %v5006_v58  ;;  %v4902_v23 = vmul.f32 1.442695, %v4888_v13  ;;  %v4769_v4 = vmax.f32 %v4761_v38, %v11427_v36 }
 0x484   : > { %v8297_v32 = vpop.eup %8296  ;;  %8322 = vpow2.f32 %v4994_v56  ;;  %v4926_v43 = vmul.f32 1.442695, %v4912_v49  ;;  %v4984_v55 = vsub.f32 %v11430_v17, %v4784_v44  ;;  %v4950_v1 = vmul.f32 1.442695, %v4936_v35 }
 0x485   : > { %v11455_v25 = vpop.eup %8298  ;;  %v5007_v62 = vadd.f32 %v8297_v32, %v8295_v57  ;;  %8324 = vpow2.f32 %v4806_v0  ;;  %v11458_v8 = vpop.xlane.xlu1 %4720  ;;  %v4777_v6 = vmax.f32 %v4769_v4, %v11444_v31  ;;  %v6311_v33 = vmul.f32 %v8291_v48, %v6295_v46 }
 0x486   : > { %v11460_v45 = vpop.eup %8300  ;;  %8326 = vpow2.f32 %v4830_v60  ;;  %v4974_v18 = vmul.f32 1.442695, %v4960_v2  ;;  %v5279_v63 = vmul.f32 %v8295_v57, %v12251_v61  ;;  %v5799_v50 = vmul.f32 %v8297_v32, %v12252_v24 }
 0x487   : > { %v11463_v5 = vpop.eup %8302  ;;  %v5015_v26 = vadd.f32 %v11455_v25, %v5007_v62  ;;  %8328 = vpow2.f32 %v4854_v20  ;;  %v6317_v17 = vpack.c.bf16 %v6311_v33, %v11422_v52  ;;  %v4785_v44 = vmax.f32 %v4777_v6, %v11458_v8 }
 0x488   : > { %v11468_v28 = vpop.eup %8304  ;;  %v5806_v56 = vadd.f32 %v5798_v29, %v5278_v27  ;;  %8330 = vpow2.f32 %v4878_v19  ;;  %v4998_v54 = vmul.f32 1.442695, %v4984_v55  ;;  %v5807_v42 = vadd.f32 %v5799_v50, %v5279_v63 }
 0x489   : > { %v11472_v58 = vpop.eup %8306  ;;  %v5023_v46 = vadd.f32 %v11460_v45, %v5015_v26  ;;  %8332 = vpow2.f32 %v4902_v23  ;;  %7877 = vmatmul.mubr.bf16.vlgmr.msra.gmra.mxu0 %v6317_v17  ;;  %v4793_v30 = vsub.f32 %v11269_v51, %v4785_v44  ;;  %v4817_v48 = vsub.f32 %v11351_v59, %v4785_v44 }
 0x48a   : > { %v11475_v53 = vpop.eup %8308  ;;  %v4841_v52 = vsub.f32 %v11283_v21, %v4785_v44  ;;  %8334 = vpow2.f32 %v4926_v43  ;;  %v4865_v13 = vsub.f32 %v11399_v34, %v4785_v44  ;;  %v4889_v0 = vsub.f32 %v11434_v47, %v4785_v44 }
 0x48b   : > { %v11480_v38 = vpop.eup %8310  ;;  %v5031_v14 = vadd.f32 %v11463_v5, %v5023_v46  ;;  %8336 = vpow2.f32 %v4950_v1  ;;  %v4808_v29 = vmul.f32 1.442695, %v4793_v30  ;;  %v4832_v60 = vmul.f32 1.442695, %v4817_v48 }
 0x48c   : > { %v8313_v27 = vpop.eup %8312  ;;  %v4856_v20 = vmul.f32 1.442695, %v4841_v52  ;;  %8338 = vpow2.f32 %v4974_v18  ;;  %v4880_v21 = vmul.f32 1.442695, %v4865_v13  ;;  %v4904_v19 = vmul.f32 1.442695, %v4889_v0 }
 0x48d   : > { %v8315_v49 = vpop.eup %8314  ;;  %v5039_v51 = vadd.f32 %v11468_v28, %v5031_v14  ;;  %v5022_v59 = vadd.f32 %v8313_v27, %v5014_v39  ;;  %8340 = vpow2.f32 %v4808_v29  ;;  %v4913_v35 = vsub.f32 %v11413_v11, %v4785_v44 }
 0x48e   : > { %v8317_v57 = vpop.eup %8316  ;;  %v4937_v34 = vsub.f32 %v11427_v36, %v4785_v44  ;;  %8342 = vpow2.f32 %v4832_v60  ;;  %v4961_v23 = vsub.f32 %v11444_v31, %v4785_v44  ;;  %v4985_v39 = vsub.f32 %v11458_v8, %v4785_v44 }
 0x48f   : > { %v8319_v2 = vpop.eup %8318  ;;  %v5047_v47 = vadd.f32 %v11472_v58, %v5039_v51  ;;  %v5030_v32 = vadd.f32 %v8315_v49, %v5022_v59  ;;  %8344 = vpow2.f32 %v4856_v20  ;;  %v4928_v62 = vmul.f32 1.442695, %v4913_v35 }
 0x490   : > { %v8321_v4 = vpop.eup %8320  ;;  %v5974_v43 = vmul.f32 %v11448_v7, %v12236_v9  ;;  %8346 = vpow2.f32 %v4998_v54  ;;  %v4952_v1 = vmul.f32 1.442695, %v4937_v34  ;;  %v12254_v31 = vrot.slane %v11348_v22, %v9563_v37 }
 0x491   : > { %v11493_v55 = vpop.eup %8322  ;;  %v5055_v11 = vadd.f32 %v11475_v53, %v5047_v47  ;;  %v5038_v36 = vadd.f32 %v8317_v57, %v5030_v32  ;;  %8348 = vpow2.f32 %v4880_v21  ;;  %v12255_v33 = vrot.slane %v12249_v16, %v9563_v37  ;;  %v12256_v16 = vld [vmem:[#allocation72_spill] sm:$0xff]  ;;  %v12258_v21 = vld [vmem:[#allocation71_spill] sm:$0xff] }
 0x492   : > { %v8325_v6 = vpop.eup %8324  ;;  %v5975_v9 = vmul.f32 %v11455_v25, %v12253_v40  ;;  %v5982_v7 = vadd.f32 %v5974_v43, %v5806_v56  ;;  %8350 = vpow2.f32 %v4904_v19  ;;  %v4976_v50 = vmul.f32 1.442695, %v4961_v23  ;;  %v12257_v56 = vld [vmem:[#allocation70_spill] sm:$0xff] }
 0x493   : > { %v11502_v26 = vcombine.low %v12255_v33, %v12254_v31  ;;  %v8327_v8 = vpop.eup %8326  ;;  %v5063_v18 = vadd.f32 %v11480_v38, %v5055_v11  ;;  %v5046_v63 = vadd.f32 %v8319_v2, %v5038_v36  ;;  %8352 = vpow2.f32 %v4928_v62 }
 0x494   : > { %v5008_v17 = vadd.f32 %v8327_v8, %v8325_v6  ;;  %v5000_v44 = vmul.f32 1.442695, %v4985_v39  ;;  %v5983_v46 = vadd.f32 %v5975_v9, %v5807_v42  ;;  %v8329_v22 = vpop.eup %8328  ;;  %8354 = vpow2.f32 %v4952_v1 }
 0x495   : > { %v5054_v54 = vadd.f32 %v8321_v4, %v5046_v63  ;;  %v5280_v30 = vmul.f32 %v8325_v6, %v12256_v16  ;;  %v6016_v48 = vmul.f32 %v8313_v27, %v12251_v61  ;;  %v8331_v52 = vpop.eup %8330  ;;  %8356 = vrcp.f32 %v5063_v18 }
 0x496   : > { %v5016_v25 = vadd.f32 %v8329_v22, %v5008_v17  ;;  %v5800_v14 = vmul.f32 %v8327_v8, %v12257_v56  ;;  %v6017_v13 = vmul.f32 %v11460_v45, %v12256_v16  ;;  %v8333_v0 = vpop.eup %8332  ;;  %8358 = vpow2.f32 %v4976_v50 }
 0x497   : > { %v5062_v29 = vadd.f32 %v11493_v55, %v5054_v54  ;;  %v6024_v42 = vadd.f32 %v6016_v48, %v5982_v7  ;;  %v6095_v60 = vmul.f32 %v8315_v49, %v12252_v24  ;;  %v11514_v20 = vpop.eup %8334  ;;  %8360 = vpow2.f32 %v5000_v44 }
 0x498   : > { %v5024_v51 = vadd.f32 %v8331_v52, %v5016_v25  ;;  %v6025_v61 = vadd.f32 %v6017_v13, %v5983_v46  ;;  %v6096_v27 = vmul.f32 %v11463_v5, %v12257_v56  ;;  %v11518_v59 = vpop.eup %8336  ;;  %v5976_v45 = vmul.f32 %v8329_v22, %v12258_v21 }
 0x499   : > { %8362 = vrcp.f32 %v5062_v29  ;;  %v6103_v19 = vadd.f32 %v6095_v60, %v6024_v42  ;;  %v6131_v35 = vmul.f32 %v8317_v57, %v12253_v40  ;;  %v11522_v34 = vpop.eup %8338  ;;  %v6132_v49 = vmul.f32 %v11468_v28, %v12258_v21  ;;  %v12263_v42 = vld [vmem:[#allocation79_spill] sm:$0xff] }
 0x49a   : > { %v5032_v47 = vadd.f32 %v8333_v0, %v5024_v51  ;;  %v6104_v24 = vadd.f32 %v6096_v27, %v6025_v61  ;;  %v6173_v32 = vmul.f32 %v8319_v2, %v12256_v16  ;;  %v8341_v23 = vpop.eup %8340  ;;  %v6174_v5 = vmul.f32 %v11472_v58, %v11365_v10  ;;  %v12267_v27 = vld [vmem:[#allocation55_spill] sm:$0xff] }
 0x49b   : > { %v6139_v62 = vadd.f32 %v6131_v35, %v6103_v19  ;;  %v6252_v39 = vmul.f32 %v8321_v4, %v12257_v56  ;;  %v5808_v43 = vadd.f32 %v5800_v14, %v5280_v30  ;;  %v8343_v11 = vpop.eup %8342  ;;  %v5281_v57 = vmul.f32 %v8341_v23, %v11365_v10 }
 0x49c   : > { %v5040_v40 = vadd.f32 %v11514_v20, %v5032_v47  ;;  %v6140_v36 = vadd.f32 %v6132_v49, %v6104_v24  ;;  %v6253_v1 = vmul.f32 %v11475_v53, %v11387_v15  ;;  %v8345_v28 = vpop.eup %8344  ;;  %v5009_v6 = vadd.f32 %v8343_v11, %v8341_v23 }
 0x49d   : > { %v5801_v2 = vmul.f32 %v8343_v11, %v11387_v15  ;;  %v6181_v31 = vadd.f32 %v6173_v32, %v6139_v62  ;;  %v5984_v33 = vadd.f32 %v5976_v45, %v5808_v43  ;;  %v11535_v9 = vpop.eup %8346  ;;  %v6288_v7 = vmul.f32 %v11493_v55, %v12258_v21  ;;  %v12269_v45 = vld [vmem:[#allocation80_spill] sm:$0xff]  ;;  %v12271_v62 = vld [vmem:[#allocation81_spill] sm:$0xff] }
 0x49e   : > { %v5048_v58 = vadd.f32 %v11518_v59, %v5040_v40  ;;  %v6182_v4 = vadd.f32 %v6174_v5, %v6140_v36  ;;  %v6018_v8 = vmul.f32 %v8331_v52, %v11365_v10  ;;  %v8349_v18 = vpop.eup %8348  ;;  %v5017_v63 = vadd.f32 %v8345_v28, %v5009_v6  ;;  %v12260_v52 = vld [vmem:[#allocation85_spill] sm:$0xff] }
 0x49f   : > { %v5977_v53 = vmul.f32 %v8345_v28, %v11502_v26  ;;  %v6260_v50 = vadd.f32 %v6252_v39, %v6181_v31  ;;  %v5809_v17 = vadd.f32 %v5801_v2, %v5281_v57  ;;  %v8351_v44 = vpop.eup %8350  ;;  %v6088_v54 = vrot.slane %v11127_v41, %v9563_v37  ;;  %v12273_v39 = vld [vmem:[#allocation83_spill] sm:$0xff] }
 0x4a0   : > { %v6261_v46 = vadd.f32 %v6253_v1, %v6182_v4  ;;  %v6026_v22 = vadd.f32 %v6018_v8, %v5984_v33  ;;  %v6097_v16 = vmul.f32 %v8333_v0, %v11387_v15  ;;  %v8353_v30 = vpop.eup %8352  ;;  %v5025_v48 = vadd.f32 %v8349_v18, %v5017_v63  ;;  %v12266_v15 = vld [vmem:[#allocation58_spill] sm:$0xff]  ;;  %v12277_v1 = vld [vmem:[#allocation41_spill] sm:$0xff] }
 0x4a1   : > { %v6296_v25 = vadd.f32 %v6288_v7, %v6260_v50  ;;  %v5985_v55 = vadd.f32 %v5977_v53, %v5809_v17  ;;  %v12259_v10 = vrot.slane %v12250_v12, %v9563_v37  ;;  %v12261_v56 = vrot.slane %v12260_v52, %v9563_v37  ;;  %v8355_v13 = vpop.eup %8354  ;;  %v12279_v53 = vld [vmem:[#allocation36_spill] sm:$0xff] }
 0x4a2   : > { %v12262_v29 = vshll.u32 %v11237_v3, 16  ;;  %v12264_v60 = vshrl.u32 %v12263_v42, 16  ;;  %v6081_v0 = vrot.slane %v12266_v15, %v9563_v37  ;;  %v6105_v61 = vadd.f32 %v6097_v16, %v6026_v22  ;;  %v8357_v35 = vpop.eup %8356 }
 0x4a3   : > { %v6010_v14 = vcombine.low %v12261_v56, %v12259_v10  ;;  %v12268_v21 = vunpack.c.l.bf16 %v12267_v27  ;;  %v12270_v12 = vunpack.c.l.bf16 %v12269_v45  ;;  %v5056_v47 = vadd.f32 %v11522_v34, %v5048_v58  ;;  %v8359_v23 = vpop.eup %8358  ;;  %v12278_v58 = vld [vmem:[#allocation59_spill] sm:$0xff] }
 0x4a4   : > { %v6209_v41 = vsel %vm9521_vm0, %v12264_v60, %v12262_v29  ;;  %v5033_v24 = vadd.f32 %v8351_v44, %v5025_v48  ;;  %v6289_v49 = vmul.f32 %v11480_v38, %v11502_v26  ;;  %v12272_v5 = vshll.u32 %v12271_v62, 16  ;;  %v8361_v2 = vpop.eup %8360 }
 0x4a5   : > { %v6109_v19 = vcombine.low %v12270_v12, %v12268_v21  ;;  %v6019_v32 = vmul.f32 %v8349_v18, %v6010_v14  ;;  %v12274_v43 = vshrl.u32 %v12273_v39, 16  ;;  %v12275_v40 = vunpack.c.l.bf16 %v11237_v3 }
 0x4a6   : > { %v12276_v57 = vunpack.c.l.bf16 %v12263_v42  ;;  %v6225_v28 = vunpack.c.l.bf16 %v12277_v1  ;;  %v6089_v6 = vcombine.low %v6081_v0, %v6088_v54  ;;  %v5041_v31 = vadd.f32 %v8353_v30, %v5033_v24  ;;  %v8363_v7 = vpop.eup %8362 }
 0x4a7   : > { %v6193_v11 = vsel %vm9521_vm0, %v12274_v43, %v12272_v5  ;;  %v6297_v38 = vadd.f32 %v6289_v49, %v6261_v46  ;;  %v6027_v33 = vadd.f32 %v6019_v32, %v5985_v55  ;;  %v6124_v4 = vrot.slane %v12278_v58, %v9563_v37  ;;  %v12280_v55 = vld [vmem:[#allocation76_spill] sm:$0xff]  ;;  %v12285_v58 = vld [vmem:[#allocation27_spill] sm:$0xff] }
 0x4a8   : > { %v6152_v36 = vcombine.low %v12276_v57, %v12275_v40  ;;  %v6224_v8 = vunpack.c.l.bf16 %v6209_v41  ;;  %v6098_v18 = vmul.f32 %v8351_v44, %v6089_v6  ;;  %v6117_v63 = vrot.slane %v6109_v19, %v9563_v37  ;;  %v12281_v44 = vld [vmem:[#allocation78_spill] sm:$0xff] }
 0x4a9   : > { %v6223_v50 = vunpack.c.l.bf16 %v12279_v53  ;;  %v5064_v17 = vadd.f32 %v11535_v9, %v5056_v47  ;;  %v5049_v22 = vadd.f32 %v8355_v13, %v5041_v31  ;;  %v6312_v16 = vmul.f32 %v8363_v7, %v6296_v25  ;;  %v12287_v53 = vld [vmem:[#allocation29_spill] sm:$0xff] }
 0x4aa   : > { %v6313_v48 = vmul.f32 %v8357_v35, %v6297_v38  ;;  %v6222_v54 = vunpack.c.l.bf16 %v6193_v11  ;;  %v6166_v10 = vrot.slane %v6152_v36, %v9563_v37  ;;  %v6231_v46 = vcombine.low %v6224_v8, %v6225_v28 }
 0x4ab   : > { %v6264_v52 = vunpack.c.l.bf16 %v12280_v55  ;;  %v5057_v56 = vadd.f32 %v8359_v23, %v5049_v22  ;;  %v6106_v60 = vadd.f32 %v6098_v18, %v6027_v33  ;;  %v6125_v51 = vcombine.low %v6117_v63, %v6124_v4  ;;  %v12286_v18 = vld [vmem:[#allocation28_spill] sm:$0xff]  ;;  %v12288_v22 = vld [vmem:[#allocation30_spill] sm:$0xff] }
 0x4ac   : > { %v6318_v29 = vpack.c.bf16 %v6313_v48, %v6312_v16  ;;  %v6159_v41 = vrot.slane %v12281_v44, %v9563_v37  ;;  %v6230_v15 = vcombine.low %v6222_v54, %v6223_v50  ;;  %8364 = vrcp.f32 %v5064_v17  ;;  %v8142_v55 = vld [vmem:[#allocation8 + $0x38] sm:$0xff]   ;;  %v12289_v44 = vld [vmem:[#allocation31_spill] sm:$0xff] }
 0x4ad   : > { %v5065_v0 = vadd.f32 %v8361_v2, %v5057_v56  ;;  %v6133_v25 = vmul.f32 %v11514_v20, %v11502_v26  ;;  %v6134_v27 = vmul.f32 %v8353_v30, %v6125_v51  ;;  %v12282_v45 = vmov %v12275_v40  ;;  %7884 = vmatprep.subr.bf16.mxu1 %v8142_v55  ;;  %v8144_v56 = vld [vmem:[#allocation8 + $0x28] sm:$0xff]  }
 0x4ae   : > { %7880 = vmatprep.mubr.bf16.mxu0 %v6318_v29  ;;  %v6167_v21 = vcombine.low %v6159_v41, %v6166_v10  ;;  %v6267_v12 = vcombine.low %v12282_v45, %v6264_v52  ;;  %v6245_v47 = vrot.slane %v6231_v46, %v9563_v37  ;;  %v12283_v24 = vmov %v12276_v57  ;;  %v8143_v52 = vld [vmem:[#allocation8 + $0x30] sm:$0xff]   ;;  %v12290_v45 = vld [vmem:[#allocation32_spill] sm:$0xff] }
 0x4af   : > { %8366 = vrcp.f32 %v5065_v0  ;;  %v6141_v19 = vadd.f32 %v6133_v25, %v6105_v61  ;;  %v6142_v35 = vadd.f32 %v6134_v27, %v6106_v60  ;;  %v12284_v49 = vunpack.c.l.bf16 %v12271_v62  ;;  %7885 = vmatpush3.bf16.msra.mxu1 %v8142_v55  ;;  %v8145_v0 = vld [vmem:[#allocation8 + $0x20] sm:$0xff]  }
 0x4b0   : > { %v6175_v5 = vmul.f32 %v11518_v59, %v6010_v14  ;;  %v6176_v39 = vmul.f32 %v8355_v13, %v6167_v21  ;;  %v6238_v26 = vrot.slane %v6230_v15, %v9563_v37  ;;  %v6281_v20 = vrot.slane %v6267_v12, %v9563_v37  ;;  %7886 = vmatprep.subr.bf16.mxu1 %v8143_v52 }
 0x4b1   : > { %v6266_v32 = vcombine.low %v12284_v49, %v12283_v24  ;;  %v6254_v61 = vmul.f32 %v11522_v34, %v6089_v6  ;;  %v6290_v62 = vmul.f32 %v11535_v9, %v6125_v51  ;;  %v7611_v34 = vld [vmem:[%s11838_s13] ss:$0 sm:$0xff]  ;;  %v8146_v24 = vld [vmem:[#allocation8 + $0x18] sm:$0xff]  }
 0x4b2   : > { %v6183_v30 = vadd.f32 %v6175_v5, %v6141_v19  ;;  %v6184_v3 = vadd.f32 %v6176_v39, %v6142_v35  ;;  %v6246_v43 = vcombine.low %v6238_v26, %v6245_v47  ;;  %v12291_v19 = vld [vmem:[#allocation33_spill] sm:$0xff]  ;;  %v12292_v49 = vld [vmem:[#allocation34_spill] sm:$0xff] }
 0x4b3   : > { %v6274_v40 = vrot.slane %v6266_v32, %v9563_v37  ;;  %7887 = vmatpush3.bf16.msra.mxu1 %v8143_v52  ;;  %v8147_v39 = vld [vmem:[#allocation8 + $0x10] sm:$0xff]  }
 0x4b4   : > { %v6255_v11 = vmul.f32 %v8359_v23, %v6246_v43  ;;  %v6262_v57 = vadd.f32 %v6254_v61, %v6183_v30  ;;  %7888 = vmatprep.subr.bf16.mxu1 %v8144_v56  ;;  %v8148_v30 = vld [vmem:[#allocation8 + $0x8] sm:$0xff]   ;;  %v8149_v43 = vld [vmem:[#allocation8] sm:$0xff]  }
 0x4b5   : > { %v6282_v36 = vcombine.low %v6274_v40, %v6281_v20 }
 0x4b6   : > { %v6263_v42 = vadd.f32 %v6255_v11, %v6184_v3  ;;  %v6298_v14 = vadd.f32 %v6290_v62, %v6262_v57 }
 0x4b7   : > { %v6291_v1 = vmul.f32 %v8361_v2, %v6282_v36  ;;  %7889 = vmatpush3.bf16.msra.mxu1 %v8144_v56 }
 0x4b8   : > { %7890 = vmatprep.subr.bf16.mxu1 %v8145_v0 }
 0x4b9   : > { %v8365_v59 = vpop.eup %8364  ;;  %v6299_v13 = vadd.f32 %v6291_v1, %v6263_v42 }
 0x4ba   : > { %v6314_v31 = vmul.f32 %v8365_v59, %v6298_v14 }
 0x4bb   : > { %7891 = vmatpush3.bf16.msra.mxu1 %v8145_v0 }
 0x4bc   : > { %v8367_v28 = vpop.eup %8366  ;;  %7892 = vmatprep.subr.bf16.mxu1 %v8146_v24 }
 0x4bd   : > { %v6315_v38 = vmul.f32 %v8367_v28, %v6299_v13 }
 0x4bf   : > { %v6319_v33 = vpack.c.bf16 %v6315_v38, %v6314_v31  ;;  %7893 = vmatpush3.bf16.msra.mxu1 %v8146_v24 }
 0x4c0   : > { %7894 = vmatprep.subr.bf16.mxu1 %v8147_v39 }
 0x4c1   : > { %7881 = vmatmul.mubr.bf16.gmra.mxu0 %v6319_v33 }
 0x4c3   : > { %7895 = vmatpush3.bf16.msra.mxu1 %v8147_v39 }
 0x4c4   : > { %7896 = vmatprep.subr.bf16.mxu1 %v8148_v30 }
 0x4c7   : > { %7897 = vmatpush3.bf16.msra.mxu1 %v8148_v30 }
 0x4c8   : > { %7898 = vmatprep.subr.bf16.mxu1 %v8149_v43 }
 0x4cb   : > { %7899 = vmatpush3.bf16.msra.mxu1 %v8149_v43 }
 0x549   : > { %v7878_v23 = vpop.f32.mrf.mxu0 }
 0x54a   : > { %v6434_v37 = vadd.f32 %v7878_v23, %v7611_v34 }
 0x54b   : > { %v6425_v6 = vpop.f32.mrf.mxu0 }
 0x54c   : > { %v11605_v4 = vadd.f32 %v12285_v58, %v6434_v37  ;;  %v6426_v9 = vadd.f32 %v7611_v34, %v6425_v6 }
 0x54d   : > { %v7879_v2 = vpop.f32.mrf.mxu0 }
 0x54e   : > { %v6437_v7 = vadd.f32 %v7879_v2, %v7611_v34  ;;  %6468 = vadd.xlane.f32.xlu0 %v11605_v4  ;;  %v11609_v63 = vadd.f32 %v6426_v9, %v12286_v18  ;;  %v6490_v48 = vmul.f32 %v11605_v4, %v11605_v4 }
 0x54f   : > { %v6428_v8 = vpop.f32.mrf.mxu0 }
 0x550   : > { %v11612_v50 = vadd.f32 %v12287_v53, %v6437_v7  ;;  %v6429_v17 = vadd.f32 %v7611_v34, %v6428_v8  ;;  %v6488_v10 = vmul.f32 %v11609_v63, %v11609_v63 }
 0x552   : > { %6470 = vadd.xlane.f32.xlu1 %v11612_v50  ;;  %6464 = vadd.xlane.f32.xlu0 %v11609_v63  ;;  %v11617_v16 = vadd.f32 %v6429_v17, %v12288_v22  ;;  %v6491_v54 = vmul.f32 %v11612_v50, %v11612_v50 }
 0x554   : > { %v6489_v46 = vmul.f32 %v11617_v16, %v11617_v16 }
 0x556   : > { %6466 = vadd.xlane.f32.xlu1 %v11617_v16  ;;  %6500 = vadd.xlane.f32.xlu0 %v6490_v48 }
 0x55a   : > { %6502 = vadd.xlane.f32.xlu1 %v6491_v54  ;;  %6496 = vadd.xlane.f32.xlu0 %v6488_v10 }
 0x55e   : > { %6498 = vadd.xlane.f32.xlu1 %v6489_v46 }
 0x581   : > { %v7882_v29 = vpop.f32.mrf.mxu0 }
 0x582   : > { %v6450_v60 = vadd.f32 %v7882_v29, %v7611_v34 }
 0x583   : > { %v6441_v51 = vpop.f32.mrf.mxu0 }
 0x584   : > { %v11629_v41 = vadd.f32 %v12289_v44, %v6450_v60  ;;  %v6442_v15 = vadd.f32 %v7611_v34, %v6441_v51  ;;  %v11659_v44 = vld [vmem:[%s11839_s14] ss:$0 sm:$0xff] }
 0x585   : > { %v7883_v25 = vpop.f32.mrf.mxu0 }
 0x586   : > { %v6453_v27 = vadd.f32 %v7883_v25, %v7611_v34  ;;  %6476 = vadd.xlane.f32.xlu0 %v11629_v41  ;;  %v11633_v12 = vadd.f32 %v6442_v15, %v12290_v45  ;;  %v6494_v20 = vmul.f32 %v11629_v41, %v11629_v41 }
 0x587   : > { %v6444_v21 = vpop.f32.mrf.mxu0 }
 0x588   : > { %v11636_v35 = vadd.f32 %v12291_v19, %v6453_v27  ;;  %v6445_v47 = vadd.f32 %v7611_v34, %v6444_v21  ;;  %v6492_v5 = vmul.f32 %v11633_v12, %v11633_v12  ;;  %v7621_v19 = vld [vmem:[%s11840_s15] ss:$0 sm:$0xff] }
 0x58a   : > { %6478 = vadd.xlane.f32.xlu1 %v11636_v35  ;;  %6472 = vadd.xlane.f32.xlu0 %v11633_v12  ;;  %v11641_v32 = vadd.f32 %v6445_v47, %v12292_v49  ;;  %v6495_v3 = vmul.f32 %v11636_v35, %v11636_v35 }
 0x58c   : > { %v6493_v26 = vmul.f32 %v11641_v32, %v11641_v32 }
 0x58e   : > { %6474 = vadd.xlane.f32.xlu1 %v11641_v32  ;;  %6504 = vadd.xlane.f32.xlu0 %v6492_v5 }
 0x592   : > { %6506 = vadd.xlane.f32.xlu1 %v6493_v26  ;;  %6508 = vadd.xlane.f32.xlu0 %v6494_v20 }
 0x596   : > { %6510 = vadd.xlane.f32.xlu1 %v6495_v3 }
 0x5d7   : > { %v6469_v61 = vpop.xlane.xlu0 %6468 }
 0x5d8   : > { %v6482_v57 = vmul.f32 0.03125, %v6469_v61 }
 0x5da   : > { %v6522_v1 = vmul.f32 %v6482_v57, %v6482_v57  ;;  %v6538_v46 = vsub.f32 %v11605_v4, %v6482_v57 }
 0x5db   : > { %v6465_v11 = vpop.xlane.xlu0 %6464  ;;  %v6471_v40 = vpop.xlane.xlu1 %6470 }
 0x5dc   : > { %v6480_v42 = vmul.f32 0.03125, %v6465_v11  ;;  %v6483_v59 = vmul.f32 0.03125, %v6471_v40 }
 0x5de   : > { %v6520_v28 = vmul.f32 %v6480_v42, %v6480_v42  ;;  %v6523_v33 = vmul.f32 %v6483_v59, %v6483_v59  ;;  %v6536_v54 = vsub.f32 %v11609_v63, %v6480_v42  ;;  %v6539_v55 = vsub.f32 %v11612_v50, %v6483_v59 }
 0x5df   : > { %v6501_v36 = vpop.xlane.xlu0 %6500  ;;  %v6467_v62 = vpop.xlane.xlu1 %6466 }
 0x5e0   : > { %v6514_v14 = vmul.f32 0.03125, %v6501_v36  ;;  %v6481_v34 = vmul.f32 0.03125, %v6467_v62 }
 0x5e2   : > { %v6530_v13 = vsub.f32 %v6514_v14, %v6522_v1  ;;  %v6521_v7 = vmul.f32 %v6481_v34, %v6481_v34  ;;  %v6537_v51 = vsub.f32 %v11617_v16, %v6481_v34 }
 0x5e3   : > { %v6497_v31 = vpop.xlane.xlu0 %6496  ;;  %v6503_v38 = vpop.xlane.xlu1 %6502 }
 0x5e4   : > { %v6512_v23 = vmul.f32 0.03125, %v6497_v31  ;;  %v6515_v37 = vmul.f32 0.03125, %v6503_v38  ;;  %v6546_v6 = vadd.f32 1e-05, %v6530_v13 }
 0x5e6   : > { %v6528_v58 = vsub.f32 %v6512_v23, %v6520_v28  ;;  %v6531_v9 = vsub.f32 %v6515_v37, %v6523_v33  ;;  %8368 = vrsqrt.f32 %v6546_v6 }
 0x5e7   : > { %v6499_v2 = vpop.xlane.xlu1 %6498 }
 0x5e8   : > { %v6544_v8 = vadd.f32 1e-05, %v6528_v58  ;;  %v6547_v18 = vadd.f32 1e-05, %v6531_v9  ;;  %v6513_v53 = vmul.f32 0.03125, %v6499_v2 }
 0x5ea   : > { %8370 = vrsqrt.f32 %v6544_v8  ;;  %v6529_v17 = vsub.f32 %v6513_v53, %v6521_v7 }
 0x5eb   : > { %8372 = vrsqrt.f32 %v6547_v18 }
 0x5ec   : > { %v6545_v22 = vadd.f32 1e-05, %v6529_v17 }
 0x5ee   : > { %8374 = vrsqrt.f32 %v6545_v22 }
 0x5f3   : > { %v8369_v48 = vpop.eup %8368 }
 0x5f4   : > { %v6562_v29 = vmul.f32 %v8369_v48, %v6538_v46 }
 0x5f6   : > { %v6577_v21 = vmul.f32 %v11659_v44, %v6562_v29 }
 0x5f7   : > { %v8371_v10 = vpop.eup %8370 }
 0x5f8   : > { %v8373_v52 = vpop.eup %8372  ;;  %v6560_v56 = vmul.f32 %v8371_v10, %v6536_v54  ;;  %v6592_v5 = vadd.f32 %v7621_v19, %v6577_v21 }
 0x5f9   : > { %v6563_v60 = vmul.f32 %v8373_v52, %v6539_v55 }
 0x5fa   : > { %v6575_v27 = vmul.f32 %v11659_v44, %v6560_v56 }
 0x5fb   : > { %v8375_v15 = vpop.eup %8374  ;;  %v6578_v0 = vmul.f32 %v11659_v44, %v6563_v60 }
 0x5fc   : > { %v6561_v25 = vmul.f32 %v8375_v15, %v6537_v51  ;;  %v6590_v24 = vadd.f32 %v7621_v19, %v6575_v27 }
 0x5fd   : > { %v6593_v47 = vadd.f32 %v7621_v19, %v6578_v0 }
 0x5fe   : > { %v6576_v45 = vmul.f32 %v11659_v44, %v6561_v25 }
 0x5ff   : > { %v6599_v26 = vpack.c.bf16 %v6593_v47, %v6592_v5  ;;  %v8151_v5 = vld [vmem:[#allocation10 + $0x30] sm:$0xff]  }
 0x600   : > { %v6591_v49 = vadd.f32 %v7621_v19, %v6576_v45 }
 0x602   : > { %v6598_v39 = vpack.c.bf16 %v6591_v49, %v6590_v24  ;;  %v8150_v49 = vld [vmem:[#allocation10 + $0x38] sm:$0xff]  }
 0x603   : > { %7908 = vmatprep.subr.bf16.mxu0 %v8150_v49 }
 0x604   : > { %7900 = vmatprep.mubr.bf16.mxu1 %v6598_v39  ;;  %7909 = vmatpush3.bf16.msra.mxu0 %v8150_v49  ;;  %v8152_v39 = vld [vmem:[#allocation10 + $0x28] sm:$0xff]  }
 0x605   : > { %7901 = vmatmul.mubr.bf16.vlgmr.msra.gmra.mxu1 %v6599_v26  ;;  %7910 = vmatprep.subr.bf16.mxu0 %v8151_v5  ;;  %v8153_v26 = vld [vmem:[#allocation10 + $0x20] sm:$0xff]  }
 0x608   : > { %7911 = vmatpush3.bf16.msra.mxu0 %v8151_v5 }
 0x609   : > { %7912 = vmatprep.subr.bf16.mxu0 %v8152_v39 }
 0x60c   : > { %7913 = vmatpush3.bf16.msra.mxu0 %v8152_v39 }
 0x60d   : > { %7914 = vmatprep.subr.bf16.mxu0 %v8153_v26 }
 0x60f   : > { %v6477_v20 = vpop.xlane.xlu0 %6476 }
 0x610   : > { %v6486_v61 = vmul.f32 0.03125, %v6477_v20  ;;  %v8154_v20 = vld [vmem:[#allocation10 + $0x18] sm:$0xff]   ;;  %7915 = vmatpush3.bf16.msra.mxu0 %v8153_v26 }
 0x611   : > { %7916 = vmatprep.subr.bf16.mxu0 %v8154_v20 }
 0x612   : > { %v6526_v1 = vmul.f32 %v6486_v61, %v6486_v61  ;;  %v6542_v22 = vsub.f32 %v11629_v41, %v6486_v61 }
 0x613   : > { %v6473_v30 = vpop.xlane.xlu0 %6472  ;;  %v6479_v3 = vpop.xlane.xlu1 %6478 }
 0x614   : > { %v6484_v43 = vmul.f32 0.03125, %v6473_v30  ;;  %v6487_v59 = vmul.f32 0.03125, %v6479_v3  ;;  %7917 = vmatpush3.bf16.msra.mxu0 %v8154_v20  ;;  %v8157_v30 = vld [vmem:[#allocation10] sm:$0xff]  }
 0x615   : > { %v11679_v3 = vld [vmem:[%s11842_s17] ss:$0 sm:$0xff] }
 0x616   : > { %v6524_v57 = vmul.f32 %v6484_v43, %v6484_v43  ;;  %v6527_v6 = vmul.f32 %v6487_v59, %v6487_v59  ;;  %v6540_v53 = vsub.f32 %v11633_v12, %v6484_v43  ;;  %v6543_v56 = vsub.f32 %v11636_v35, %v6487_v59 }
 0x617   : > { %v6505_v11 = vpop.xlane.xlu0 %6504  ;;  %v6475_v40 = vpop.xlane.xlu1 %6474 }
 0x618   : > { %v6516_v42 = vmul.f32 0.03125, %v6505_v11  ;;  %v6485_v36 = vmul.f32 0.03125, %v6475_v40 }
 0x61a   : > { %v6532_v62 = vsub.f32 %v6516_v42, %v6524_v57  ;;  %v6525_v31 = vmul.f32 %v6485_v36, %v6485_v36  ;;  %v6541_v54 = vsub.f32 %v11641_v32, %v6485_v36 }
 0x61b   : > { %v6509_v14 = vpop.xlane.xlu0 %6508  ;;  %v6507_v13 = vpop.xlane.xlu1 %6506 }
 0x61c   : > { %v6548_v28 = vadd.f32 1e-05, %v6532_v62  ;;  %v6518_v38 = vmul.f32 0.03125, %v6509_v14  ;;  %v6517_v33 = vmul.f32 0.03125, %v6507_v13 }
 0x61e   : > { %8376 = vrsqrt.f32 %v6548_v28  ;;  %v6534_v34 = vsub.f32 %v6518_v38, %v6526_v1  ;;  %v6533_v23 = vsub.f32 %v6517_v33, %v6525_v31 }
 0x61f   : > { %v6511_v37 = vpop.xlane.xlu1 %6510 }
 0x620   : > { %v6550_v58 = vadd.f32 1e-05, %v6534_v34  ;;  %v6549_v9 = vadd.f32 1e-05, %v6533_v23  ;;  %v6519_v2 = vmul.f32 0.03125, %v6511_v37 }
 0x622   : > { %8378 = vrsqrt.f32 %v6550_v58  ;;  %v6535_v7 = vsub.f32 %v6519_v2, %v6527_v6 }
 0x623   : > { %8380 = vrsqrt.f32 %v6549_v9 }
 0x624   : > { %v6551_v8 = vadd.f32 1e-05, %v6535_v7 }
 0x626   : > { %8382 = vrsqrt.f32 %v6551_v8 }
 0x62b   : > { %v8377_v18 = vpop.eup %8376 }
 0x62c   : > { %v6564_v17 = vmul.f32 %v8377_v18, %v6540_v53 }
 0x62e   : > { %v6579_v52 = vmul.f32 %v11659_v44, %v6564_v17 }
 0x62f   : > { %v8379_v48 = vpop.eup %8378 }
 0x630   : > { %v8381_v10 = vpop.eup %8380  ;;  %v6566_v46 = vmul.f32 %v8379_v48, %v6542_v22  ;;  %v6594_v0 = vadd.f32 %v7621_v19, %v6579_v52 }
 0x631   : > { %v6565_v55 = vmul.f32 %v8381_v10, %v6541_v54 }
 0x632   : > { %v6581_v15 = vmul.f32 %v11659_v44, %v6566_v46 }
 0x633   : > { %v8383_v29 = vpop.eup %8382  ;;  %v6580_v60 = vmul.f32 %v11659_v44, %v6565_v55 }
 0x634   : > { %v6567_v51 = vmul.f32 %v8383_v29, %v6543_v56  ;;  %v6596_v45 = vadd.f32 %v7621_v19, %v6581_v15 }
 0x635   : > { %v6595_v25 = vadd.f32 %v7621_v19, %v6580_v60 }
 0x636   : > { %v6582_v27 = vmul.f32 %v11659_v44, %v6567_v51  ;;  %v8155_v44 = vld [vmem:[#allocation10 + $0x10] sm:$0xff]  }
 0x637   : > { %v6600_v21 = vpack.c.bf16 %v6595_v25, %v6594_v0  ;;  %7918 = vmatprep.subr.bf16.mxu0 %v8155_v44 }
 0x638   : > { %v6597_v47 = vadd.f32 %v7621_v19, %v6582_v27  ;;  %v8156_v19 = vld [vmem:[#allocation10 + $0x8] sm:$0xff]   ;;  %7919 = vmatpush3.bf16.msra.mxu0 %v8155_v44 }
 0x639   : > { %7904 = vmatprep.mubr.bf16.mxu1 %v6600_v21  ;;  %7920 = vmatprep.subr.bf16.mxu0 %v8156_v19 }
 0x63a   : > { %v6601_v24 = vpack.c.bf16 %v6597_v47, %v6596_v45 }
 0x63c   : > { %7905 = vmatmul.mubr.bf16.gmra.mxu1 %v6601_v24  ;;  %7921 = vmatpush3.bf16.msra.mxu0 %v8156_v19 }
 0x63d   : > { %7922 = vmatprep.subr.bf16.mxu0 %v8157_v30 }
 0x640   : > { %7923 = vmatpush3.bf16.msra.mxu0 %v8157_v30 }
 0x6c5   : > { %v7902_v43 = vpop.f32.mrf.mxu1 }
 0x6c6   : > { %v6716_v61 = vadd.f32 %v7902_v43, %v11679_v3 }
 0x6c7   : > { %v6707_v11 = vpop.f32.mrf.mxu1 }
 0x6c8   : > { %v6740_v40 = vmul.f32 %v6716_v61, %v6716_v61  ;;  %v6708_v57 = vadd.f32 %v11679_v3, %v6707_v11 }
 0x6c9   : > { %v7903_v42 = vpop.f32.mrf.mxu1 }
 0x6ca   : > { %v6748_v36 = vmul.f32 %v6740_v40, %v6716_v61  ;;  %v6738_v62 = vmul.f32 %v6708_v57, %v6708_v57  ;;  %v6719_v1 = vadd.f32 %v7903_v42, %v11679_v3 }
 0x6cb   : > { %v6710_v59 = vpop.f32.mrf.mxu1 }
 0x6cc   : > { %v6756_v14 = vmul.f32 0.044715, %v6748_v36  ;;  %v6746_v13 = vmul.f32 %v6738_v62, %v6708_v57  ;;  %v6741_v28 = vmul.f32 %v6719_v1, %v6719_v1  ;;  %v6711_v31 = vadd.f32 %v11679_v3, %v6710_v59 }
 0x6ce   : > { %v6764_v38 = vadd.f32 %v6756_v14, %v6716_v61  ;;  %v6754_v33 = vmul.f32 0.044715, %v6746_v13  ;;  %v6749_v34 = vmul.f32 %v6741_v28, %v6719_v1  ;;  %v6739_v23 = vmul.f32 %v6711_v31, %v6711_v31 }
 0x6d0   : > { %v6772_v37 = vmul.f32 0.7978846, %v6764_v38  ;;  %v6762_v6 = vadd.f32 %v6754_v33, %v6708_v57  ;;  %v6757_v58 = vmul.f32 0.044715, %v6749_v34  ;;  %v6747_v9 = vmul.f32 %v6739_v23, %v6711_v31 }
 0x6d2   : > { %v6770_v2 = vmul.f32 0.7978846, %v6762_v6  ;;  %v6765_v7 = vadd.f32 %v6757_v58, %v6719_v1  ;;  %v6755_v8 = vmul.f32 0.044715, %v6747_v9  ;;  %8384 = vtanh.f32 %v6772_v37 }
 0x6d4   : > { %8386 = vtanh.f32 %v6770_v2  ;;  %v6773_v18 = vmul.f32 0.7978846, %v6765_v7  ;;  %v6763_v53 = vadd.f32 %v6755_v8, %v6711_v31 }
 0x6d6   : > { %8388 = vtanh.f32 %v6773_v18  ;;  %v6771_v17 = vmul.f32 0.7978846, %v6763_v53 }
 0x6d8   : > { %8390 = vtanh.f32 %v6771_v17 }
 0x6df   : > { %v8385_v22 = vpop.eup %8384 }
 0x6e0   : > { %v6788_v46 = vadd.f32 1.0, %v8385_v22 }
 0x6e1   : > { %v8387_v48 = vpop.eup %8386 }
 0x6e2   : > { %v6786_v54 = vadd.f32 1.0, %v8387_v48  ;;  %v6796_v51 = vmul.f32 0.5, %v6788_v46 }
 0x6e3   : > { %v8389_v10 = vpop.eup %8388 }
 0x6e4   : > { %v6789_v55 = vadd.f32 1.0, %v8389_v10  ;;  %v6794_v60 = vmul.f32 0.5, %v6786_v54  ;;  %v6804_v21 = vmul.f32 %v6796_v51, %v6716_v61 }
 0x6e5   : > { %v8391_v52 = vpop.eup %8390 }
 0x6e6   : > { %v6797_v56 = vmul.f32 0.5, %v6789_v55  ;;  %v6787_v29 = vadd.f32 1.0, %v8391_v52  ;;  %v6802_v25 = vmul.f32 %v6794_v60, %v6708_v57 }
 0x6e8   : > { %v6795_v15 = vmul.f32 0.5, %v6787_v29  ;;  %v6805_v0 = vmul.f32 %v6797_v56, %v6719_v1  ;;  %v7631_v29 = vld [vmem:[%s11844_s19] ss:$0 sm:$0xff] }
 0x6ea   : > { %v6803_v27 = vmul.f32 %v6795_v15, %v6711_v31  ;;  %v6811_v47 = vpack.c.bf16 %v6805_v0, %v6804_v21 }
 0x6ec   : > { %v6810_v45 = vpack.c.bf16 %v6803_v27, %v6802_v25 }
 0x6ee   : > { %7924 = vmatprep.mubr.bf16.mxu0 %v6810_v45 }
 0x6ef   : > { %7925 = vmatmul.mubr.bf16.vlgmr.msra.gmra.mxu0 %v6811_v47 }
 0x6fc   : > { %v7906_v24 = vpop.f32.mrf.mxu1 }
 0x6fd   : > { %v6732_v49 = vadd.f32 %v7906_v24, %v11679_v3 }
 0x6fe   : > { %v6723_v5 = vpop.f32.mrf.mxu1 }
 0x6ff   : > { %v6744_v39 = vmul.f32 %v6732_v49, %v6732_v49  ;;  %v6724_v26 = vadd.f32 %v11679_v3, %v6723_v5 }
 0x700   : > { %v7907_v20 = vpop.f32.mrf.mxu1 }
 0x701   : > { %v6752_v44 = vmul.f32 %v6744_v39, %v6732_v49  ;;  %v6742_v19 = vmul.f32 %v6724_v26, %v6724_v26  ;;  %v6735_v30 = vadd.f32 %v7907_v20, %v11679_v3 }
 0x702   : > { %v6726_v43 = vpop.f32.mrf.mxu1 }
 0x703   : > { %v6760_v11 = vmul.f32 0.044715, %v6752_v44  ;;  %v6750_v40 = vmul.f32 %v6742_v19, %v6724_v26  ;;  %v6745_v61 = vmul.f32 %v6735_v30, %v6735_v30  ;;  %v6727_v57 = vadd.f32 %v11679_v3, %v6726_v43  ;;  %v8160_v44 = vld [vmem:[#allocation11 + $0x28] sm:$0xff]  }
 0x705   : > { %v6768_v42 = vadd.f32 %v6760_v11, %v6732_v49  ;;  %v6758_v36 = vmul.f32 0.044715, %v6750_v40  ;;  %v6753_v62 = vmul.f32 %v6745_v61, %v6735_v30  ;;  %v6743_v1 = vmul.f32 %v6727_v57, %v6727_v57  ;;  %v8161_v61 = vld [vmem:[#allocation11 + $0x20] sm:$0xff]  }
 0x707   : > { %v6776_v59 = vmul.f32 0.7978846, %v6768_v42  ;;  %v6766_v14 = vadd.f32 %v6758_v36, %v6724_v26  ;;  %v6761_v13 = vmul.f32 0.044715, %v6753_v62  ;;  %v6751_v28 = vmul.f32 %v6743_v1, %v6727_v57 }
 0x709   : > { %v6774_v31 = vmul.f32 0.7978846, %v6766_v14  ;;  %v6769_v38 = vadd.f32 %v6761_v13, %v6735_v30  ;;  %v6759_v33 = vmul.f32 0.044715, %v6751_v28  ;;  %8392 = vtanh.f32 %v6776_v59  ;;  %v8164_v28 = vld [vmem:[#allocation11 + $0x8] sm:$0xff]  }
 0x70b   : > { %8394 = vtanh.f32 %v6774_v31  ;;  %v6777_v34 = vmul.f32 0.7978846, %v6769_v38  ;;  %v6767_v23 = vadd.f32 %v6759_v33, %v6727_v57  ;;  %v8165_v31 = vld [vmem:[#allocation11] sm:$0xff]  }
 0x70d   : > { %8396 = vtanh.f32 %v6777_v34  ;;  %v6775_v37 = vmul.f32 0.7978846, %v6767_v23 }
 0x70f   : > { %8398 = vtanh.f32 %v6775_v37 }
 0x716   : > { %v8393_v6 = vpop.eup %8392 }
 0x717   : > { %v6792_v2 = vadd.f32 1.0, %v8393_v6 }
 0x718   : > { %v8395_v3 = vpop.eup %8394 }
 0x719   : > { %v6790_v58 = vadd.f32 1.0, %v8395_v3  ;;  %v6800_v22 = vmul.f32 0.5, %v6792_v2 }
 0x71a   : > { %v8397_v9 = vpop.eup %8396 }
 0x71b   : > { %v6793_v7 = vadd.f32 1.0, %v8397_v9  ;;  %v6798_v53 = vmul.f32 0.5, %v6790_v58  ;;  %v6808_v55 = vmul.f32 %v6800_v22, %v6732_v49 }
 0x71c   : > { %v8399_v8 = vpop.eup %8398 }
 0x71d   : > { %v6791_v18 = vadd.f32 1.0, %v8399_v8  ;;  %v6801_v17 = vmul.f32 0.5, %v6793_v7  ;;  %v6806_v10 = vmul.f32 %v6798_v53, %v6724_v26  ;;  %v8159_v26 = vld [vmem:[#allocation11 + $0x30] sm:$0xff]  }
 0x71f   : > { %v6799_v48 = vmul.f32 0.5, %v6791_v18  ;;  %v6809_v54 = vmul.f32 %v6801_v17, %v6735_v30 }
 0x721   : > { %v6807_v46 = vmul.f32 %v6799_v48, %v6727_v57  ;;  %v6813_v56 = vpack.c.bf16 %v6809_v54, %v6808_v55 }
 0x723   : > { %v6812_v52 = vpack.c.bf16 %v6807_v46, %v6806_v10 }
 0x725   : > { %7928 = vmatprep.mubr.bf16.mxu0 %v6812_v52 }
 0x726   : > { %7929 = vmatmul.mubr.bf16.gmra.mxu0 %v6813_v56 }
 0x7af   : > { %v7926_v60 = vpop.f32.mrf.mxu0 }
 0x7b0   : > { %v6928_v51 = vadd.f32 %v7926_v60, %v7631_v29 }
 0x7b1   : > { %v6919_v15 = vpop.f32.mrf.mxu0 }
 0x7b2   : > { %v11693_v0 = vadd.f32 %v6928_v51, %v11605_v4  ;;  %v6920_v25 = vadd.f32 %v7631_v29, %v6919_v15 }
 0x7b3   : > { %v7927_v27 = vpop.f32.mrf.mxu0 }
 0x7b4   : > { %v6931_v21 = vadd.f32 %v7927_v27, %v7631_v29  ;;  %6962 = vadd.xlane.f32.xlu0 %v11693_v0  ;;  %v11697_v47 = vadd.f32 %v6920_v25, %v11609_v63  ;;  %v6984_v5 = vmul.f32 %v11693_v0, %v11693_v0 }
 0x7b5   : > { %v6922_v45 = vpop.f32.mrf.mxu0 }
 0x7b6   : > { %v11700_v24 = vadd.f32 %v6931_v21, %v11612_v50  ;;  %v6923_v49 = vadd.f32 %v7631_v29, %v6922_v45  ;;  %v6982_v50 = vmul.f32 %v11697_v47, %v11697_v47 }
 0x7b8   : > { %6964 = vadd.xlane.f32.xlu1 %v11700_v24  ;;  %6958 = vadd.xlane.f32.xlu0 %v11697_v47  ;;  %v11705_v4 = vadd.f32 %v6923_v49, %v11617_v16  ;;  %v6985_v63 = vmul.f32 %v11700_v24, %v11700_v24  ;;  %v8158_v16 = vld [vmem:[#allocation11 + $0x38] sm:$0xff]  }
 0x7b9   : > { %7932 = vmatprep.subr.bf16.mxu1 %v8158_v16 }
 0x7ba   : > { %v6983_v39 = vmul.f32 %v11705_v4, %v11705_v4  ;;  %7933 = vmatpush3.bf16.msra.mxu1 %v8158_v16 }
 0x7bb   : > { %7934 = vmatprep.subr.bf16.mxu1 %v8159_v26 }
 0x7bc   : > { %6960 = vadd.xlane.f32.xlu1 %v11705_v4  ;;  %6994 = vadd.xlane.f32.xlu0 %v6984_v5 }
 0x7be   : > { %7935 = vmatpush3.bf16.msra.mxu1 %v8159_v26 }
 0x7bf   : > { %7936 = vmatprep.subr.bf16.mxu1 %v8160_v44 }
 0x7c0   : > { %6996 = vadd.xlane.f32.xlu1 %v6985_v63  ;;  %6990 = vadd.xlane.f32.xlu0 %v6982_v50 }
 0x7c2   : > { %7937 = vmatpush3.bf16.msra.mxu1 %v8160_v44 }
 0x7c3   : > { %7938 = vmatprep.subr.bf16.mxu1 %v8161_v61 }
 0x7c4   : > { %6992 = vadd.xlane.f32.xlu1 %v6983_v39 }
 0x7c6   : > { %7939 = vmatpush3.bf16.msra.mxu1 %v8161_v61 }
 0x7e6   : > { %v7930_v20 = vpop.f32.mrf.mxu0 }
 0x7e7   : > { %v6944_v19 = vadd.f32 %v7930_v20, %v7631_v29  ;;  %v11747_v20 = vld [vmem:[%s11845_s20] ss:$0 sm:$0xff] }
 0x7e8   : > { %v6935_v30 = vpop.f32.mrf.mxu0 }
 0x7e9   : > { %v11717_v43 = vadd.f32 %v6944_v19, %v11629_v41  ;;  %v6936_v11 = vadd.f32 %v7631_v29, %v6935_v30  ;;  %v8162_v41 = vld [vmem:[#allocation11 + $0x18] sm:$0xff]  }
 0x7ea   : > { %v7931_v40 = vpop.f32.mrf.mxu0  ;;  %7940 = vmatprep.subr.bf16.mxu1 %v8162_v41 }
 0x7eb   : > { %v6947_v57 = vadd.f32 %v7931_v40, %v7631_v29  ;;  %6970 = vadd.xlane.f32.xlu0 %v11717_v43  ;;  %v11721_v36 = vadd.f32 %v6936_v11, %v11633_v12  ;;  %v8163_v12 = vld [vmem:[#allocation11 + $0x10] sm:$0xff]   ;;  %v6988_v13 = vmul.f32 %v11717_v43, %v11717_v43  ;;  %7941 = vmatpush3.bf16.msra.mxu1 %v8162_v41  ;;  %v7641_v11 = vld [vmem:[%s11846_s21] ss:$0 sm:$0xff] }
 0x7ec   : > { %v6938_v42 = vpop.f32.mrf.mxu0  ;;  %7942 = vmatprep.subr.bf16.mxu1 %v8163_v12 }
 0x7ed   : > { %v11724_v62 = vadd.f32 %v6947_v57, %v11636_v35  ;;  %v6939_v1 = vadd.f32 %v7631_v29, %v6938_v42  ;;  %v6986_v14 = vmul.f32 %v11721_v36, %v11721_v36 }
 0x7ef   : > { %6972 = vadd.xlane.f32.xlu1 %v11724_v62  ;;  %6966 = vadd.xlane.f32.xlu0 %v11721_v36  ;;  %v11729_v59 = vadd.f32 %v6939_v1, %v11641_v32  ;;  %v6989_v32 = vmul.f32 %v11724_v62, %v11724_v62 }
 0x7f0   : > { %7943 = vmatpush3.bf16.msra.mxu1 %v8163_v12 }
 0x7f1   : > { %v6987_v35 = vmul.f32 %v11729_v59, %v11729_v59  ;;  %7944 = vmatprep.subr.bf16.mxu1 %v8164_v28 }
 0x7f3   : > { %6968 = vadd.xlane.f32.xlu1 %v11729_v59  ;;  %6998 = vadd.xlane.f32.xlu0 %v6986_v14 }
 0x7f4   : > { %7945 = vmatpush3.bf16.msra.mxu1 %v8164_v28 }
 0x7f5   : > { %7946 = vmatprep.subr.bf16.mxu1 %v8165_v31 }
 0x7f7   : > { %7000 = vadd.xlane.f32.xlu1 %v6987_v35  ;;  %7002 = vadd.xlane.f32.xlu0 %v6988_v13 }
 0x7f8   : > { %7947 = vmatpush3.bf16.msra.mxu1 %v8165_v31 }
 0x7fb   : > { %7004 = vadd.xlane.f32.xlu1 %v6989_v32 }
 0x83d   : > { %v6963_v38 = vpop.xlane.xlu0 %6962 }
 0x83e   : > { %v6976_v23 = vmul.f32 0.03125, %v6963_v38 }
 0x840   : > { %v7016_v58 = vmul.f32 %v6976_v23, %v6976_v23  ;;  %v7032_v49 = vsub.f32 %v11693_v0, %v6976_v23 }
 0x841   : > { %v6959_v33 = vpop.xlane.xlu0 %6958  ;;  %v6965_v34 = vpop.xlane.xlu1 %6964 }
 0x842   : > { %v6974_v37 = vmul.f32 0.03125, %v6959_v33  ;;  %v6977_v9 = vmul.f32 0.03125, %v6965_v34 }
 0x844   : > { %v7014_v8 = vmul.f32 %v6974_v37, %v6974_v37  ;;  %v7017_v17 = vmul.f32 %v6977_v9, %v6977_v9  ;;  %v7030_v21 = vsub.f32 %v11697_v47, %v6974_v37  ;;  %v7033_v5 = vsub.f32 %v11700_v24, %v6977_v9 }
 0x845   : > { %v6995_v6 = vpop.xlane.xlu0 %6994  ;;  %v6961_v3 = vpop.xlane.xlu1 %6960 }
 0x846   : > { %v7008_v2 = vmul.f32 0.03125, %v6995_v6  ;;  %v6975_v22 = vmul.f32 0.03125, %v6961_v3 }
 0x848   : > { %v7024_v7 = vsub.f32 %v7008_v2, %v7016_v58  ;;  %v7015_v56 = vmul.f32 %v6975_v22, %v6975_v22  ;;  %v7031_v26 = vsub.f32 %v11705_v4, %v6975_v22 }
 0x849   : > { %v6991_v18 = vpop.xlane.xlu0 %6990  ;;  %v6997_v53 = vpop.xlane.xlu1 %6996 }
 0x84a   : > { %v7006_v48 = vmul.f32 0.03125, %v6991_v18  ;;  %v7009_v54 = vmul.f32 0.03125, %v6997_v53  ;;  %v7040_v10 = vadd.f32 1e-05, %v7024_v7 }
 0x84c   : > { %v7022_v46 = vsub.f32 %v7006_v48, %v7014_v8  ;;  %v7025_v55 = vsub.f32 %v7009_v54, %v7017_v17  ;;  %8400 = vrsqrt.f32 %v7040_v10 }
 0x84d   : > { %v6993_v52 = vpop.xlane.xlu1 %6992 }
 0x84e   : > { %v7038_v29 = vadd.f32 1e-05, %v7022_v46  ;;  %v7041_v60 = vadd.f32 1e-05, %v7025_v55  ;;  %v7007_v51 = vmul.f32 0.03125, %v6993_v52 }
 0x850   : > { %8402 = vrsqrt.f32 %v7038_v29  ;;  %v7023_v15 = vsub.f32 %v7007_v51, %v7015_v56 }
 0x851   : > { %8404 = vrsqrt.f32 %v7041_v60 }
 0x852   : > { %v7039_v25 = vadd.f32 1e-05, %v7023_v15 }
 0x854   : > { %8406 = vrsqrt.f32 %v7039_v25 }
 0x859   : > { %v8401_v27 = vpop.eup %8400 }
 0x85a   : > { %v7056_v39 = vmul.f32 %v8401_v27, %v7032_v49 }
 0x85c   : > { %v7071_v0 = vmul.f32 %v11747_v20, %v7056_v39 }
 0x85d   : > { %v8403_v45 = vpop.eup %8402 }
 0x85e   : > { %v8405_v63 = vpop.eup %8404  ;;  %v7054_v50 = vmul.f32 %v8403_v45, %v7030_v21  ;;  %v7086_v57 = vadd.f32 %v7641_v11, %v7071_v0 }
 0x85f   : > { %v7057_v16 = vmul.f32 %v8405_v63, %v7033_v5 }
 0x860   : > { %v7069_v30 = vmul.f32 %v11747_v20, %v7054_v50 }
 0x861   : > { %v8407_v44 = vpop.eup %8406  ;;  %v7072_v19 = vmul.f32 %v11747_v20, %v7057_v16 }
 0x862   : > { %v7055_v47 = vmul.f32 %v8407_v44, %v7031_v26  ;;  %v7084_v40 = vadd.f32 %v7641_v11, %v7069_v30 }
 0x863   : > { %v7087_v4 = vadd.f32 %v7641_v11, %v7072_v19 }
 0x864   : > { %v7070_v24 = vmul.f32 %v11747_v20, %v7055_v47 }
 0x865   : > { %v7093_v1 = vpack.c.bf16 %v7087_v4, %v7086_v57 }
 0x866   : > { %v7085_v61 = vadd.f32 %v7641_v11, %v7070_v24 }
 0x868   : > { %v7092_v42 = vpack.c.bf16 %v7085_v61, %v7084_v40 }
 0x86a   : > { %7948 = vmatprep.mubr.bf16.mxu1 %v7092_v42 }
 0x86b   : > { %7949 = vmatmul.mubr.bf16.vlgmr.msra.gmra.mxu1 %v7093_v1 }
 0x874   : > { %v6971_v41 = vpop.xlane.xlu0 %6970 }
 0x875   : > { %v6980_v13 = vmul.f32 0.03125, %v6971_v41 }
 0x877   : > { %v7020_v23 = vmul.f32 %v6980_v13, %v6980_v13  ;;  %v7036_v29 = vsub.f32 %v11717_v43, %v6980_v13 }
 0x878   : > { %v6967_v14 = vpop.xlane.xlu0 %6966  ;;  %v6973_v12 = vpop.xlane.xlu1 %6972 }
 0x879   : > { %v6978_v35 = vmul.f32 0.03125, %v6967_v14  ;;  %v6981_v37 = vmul.f32 0.03125, %v6973_v12 }
 0x87b   : > { %v7018_v31 = vmul.f32 %v6978_v35, %v6978_v35  ;;  %v7021_v17 = vmul.f32 %v6981_v37, %v6981_v37  ;;  %v7034_v52 = vsub.f32 %v11721_v36, %v6978_v35  ;;  %v7037_v45 = vsub.f32 %v11724_v62, %v6981_v37  ;;  %v7642_v62 = vld [vmem:[%s12293_s25] ss:$0 sm:$0xff]  ;;  %s8578_s25 = scalar_lea.vmem %s8577_s3, 1024 }
 0x87c   : > { %v6999_v28 = vpop.xlane.xlu0 %6998  ;;  %v6969_v32 = vpop.xlane.xlu1 %6968  ;;  %p8580_p2 = scmp.lt.s32.totalorder %s8578_s25, %s8572_s28 }
 0x87d   : > { %v7010_v38 = vmul.f32 0.03125, %v6999_v28  ;;  %v6979_v33 = vmul.f32 0.03125, %v6969_v32 }
 0x87e   : > { %p8581_p1 = por %p8580_p2, %p8579_p12 }
 0x87f   : > { %v7026_v34 = vsub.f32 %v7010_v38, %v7018_v31  ;;  %v7019_v9 = vmul.f32 %v6979_v33, %v6979_v33  ;;  %v7035_v51 = vsub.f32 %v11729_v59, %v6979_v33 }
 0x880   : > { %v7003_v6 = vpop.xlane.xlu0 %7002  ;;  %v7001_v3 = vpop.xlane.xlu1 %7000  ;;  %p8582_p5 = pnand %p8581_p1, %p8575_p0 }
 0x881   : > { %v7042_v58 = vadd.f32 1e-05, %v7026_v34  ;;  %v7012_v2 = vmul.f32 0.03125, %v7003_v6  ;;  %v7011_v7 = vmul.f32 0.03125, %v7001_v3 }
 0x883   : > { %8408 = vrsqrt.f32 %v7042_v58  ;;  %v7028_v8 = vsub.f32 %v7012_v2, %v7020_v23  ;;  %v7027_v18 = vsub.f32 %v7011_v7, %v7019_v9 }
 0x884   : > { %v7005_v53 = vpop.xlane.xlu1 %7004 }
 0x885   : > { %v7044_v22 = vadd.f32 1e-05, %v7028_v8  ;;  %v7043_v48 = vadd.f32 1e-05, %v7027_v18  ;;  %v7013_v54 = vmul.f32 0.03125, %v7005_v53 }
 0x887   : > { %8410 = vrsqrt.f32 %v7044_v22  ;;  %v7029_v10 = vsub.f32 %v7013_v54, %v7021_v17 }
 0x888   : > { %8412 = vrsqrt.f32 %v7043_v48 }
 0x889   : > { %v7045_v46 = vadd.f32 1e-05, %v7029_v10 }
 0x88b   : > { %8414 = vrsqrt.f32 %v7045_v46 }
 0x890   : > { %v8409_v55 = vpop.eup %8408 }
 0x891   : > { %v7058_v56 = vmul.f32 %v8409_v55, %v7034_v52 }
 0x893   : > { %v7073_v21 = vmul.f32 %v11747_v20, %v7058_v56 }
 0x894   : > { %v8411_v60 = vpop.eup %8410 }
 0x895   : > { %v8413_v15 = vpop.eup %8412  ;;  %v7060_v25 = vmul.f32 %v8411_v60, %v7036_v29  ;;  %v7088_v50 = vadd.f32 %v7641_v11, %v7073_v21 }
 0x896   : > { %v7059_v27 = vmul.f32 %v8413_v15, %v7035_v51 }
 0x897   : > { %v7075_v36 = vmul.f32 %v11747_v20, %v7060_v25 }
 0x898   : > { %v8415_v49 = vpop.eup %8414  ;;  %v7074_v5 = vmul.f32 %v11747_v20, %v7059_v27 }
 0x899   : > { %v7061_v63 = vmul.f32 %v8415_v49, %v7037_v45  ;;  %v7090_v16 = vadd.f32 %v7641_v11, %v7075_v36 }
 0x89a   : > { %v7089_v43 = vadd.f32 %v7641_v11, %v7074_v5 }
 0x89b   : > { %v7076_v39 = vmul.f32 %v11747_v20, %v7061_v63 }
 0x89c   : > { %v7094_v59 = vpack.c.bf16 %v7089_v43, %v7088_v50 }
 0x89d   : > { %v7091_v26 = vadd.f32 %v7641_v11, %v7076_v39 }
 0x89e   : > { %7952 = vmatprep.mubr.bf16.mxu1 %v7094_v59 }
 0x89f   : > { %v7095_v44 = vpack.c.bf16 %v7091_v26, %v7090_v16 }
 0x8a1   : > { %7953 = vmatmul.mubr.bf16.gmra.mxu1 %v7095_v44 }
 0x92b   : > { %v7950_v19 = vpop.f32.mrf.mxu1 }
 0x92c   : > { %v7210_v0 = vadd.f32 %v7950_v19, %v7642_v62 }
 0x92d   : > { %v7201_v47 = vpop.f32.mrf.mxu1 }
 0x92e   : > { %v7202_v4 = vadd.f32 %v7642_v62, %v7201_v47 }
 0x92f   : > { %v7951_v30 = vpop.f32.mrf.mxu1 }
 0x930   : > { %v7213_v24 = vadd.f32 %v7951_v30, %v7642_v62 }
 0x931   : > { %v7204_v20 = vpop.f32.mrf.mxu1 }
 0x932   : > { %v7666_v40 = vpack.c.bf16 %v7213_v24, %v7210_v0  ;;  %v7205_v11 = vadd.f32 %v7642_v62, %v7204_v20 }
 0x934   : > { %7678 = vst [vmem:[%s868_s27 + $0x8] sm:$0xff] %v7666_v40   ;;  %v7661_v61 = vpack.c.bf16 %v7205_v11, %v7202_v4 }
 0x936   : > { %7662 = vst [vmem:[%s868_s27] sm:$0xff] %v7661_v61  }
 0x961   : > { %v7954_v57 = vpop.f32.mrf.mxu1 }
 0x962   : > { %v7226_v41 = vadd.f32 %v7954_v57, %v7642_v62 }
 0x963   : > { %v7217_v42 = vpop.f32.mrf.mxu1 }
 0x964   : > { %v7218_v35 = vadd.f32 %v7642_v62, %v7217_v42 }
 0x965   : > { %v7955_v1 = vpop.f32.mrf.mxu1 }
 0x966   : > { %v7229_v14 = vadd.f32 %v7955_v1, %v7642_v62 }
 0x967   : > { %v7220_v12 = vpop.f32.mrf.mxu1 }
 0x968   : > { %v7676_v13 = vpack.c.bf16 %v7229_v14, %v7226_v41  ;;  %v7221_v28 = vadd.f32 %v7642_v62, %v7220_v12 }
 0x96a   : > { %7680 = vst [vmem:[%s868_s27 + $0x18] sm:$0xff] %v7676_v13   ;;  %v7671_v32 = vpack.c.bf16 %v7221_v28, %v7218_v35 }
 0x96c   : > { %7679 = vst [vmem:[%s868_s27 + $0x10] sm:$0xff] %v7671_v32  }
 0x96d   : > { %8585 = shalt.err (!%p8582_p5)
}
 0x96e   : > { %s8586_s5 = scalar_lea.hbm %s11776_s8, 512  ;;  %s8590_s7 = scalar_lea.hbm %s12295_s30, 1024 }
 0x96f   : > { %p8587_p3 = scmp.ne.s32.totalorder %s11776_s8, %s8586_s5  ;;  %p8591_p6 = scmp.lt.s32.totalorder %s11776_s8, %s12295_s30 }
 0x970   : > { %p8592_p9 = scmp.lt.s32.totalorder %s8590_s7, %s8586_s5 }
 0x971   : > { %p8588_p8 = pnand %p8587_p3, %p8847_p4 }
 0x972   : > { %p8593_p10 = por %p8592_p9, %p8591_p6 }
 0x973   : > { %p8589_p7 = pneg %p8588_p8 }
 0x975   : > { %p8594_p11 = pnand %p8593_p10, %p8589_p7 }
 0x977   : > { %8597 = shalt.err (!%p8594_p11)
}
 0x978   : > { %s8680_s28 = smov 64   ;;  %s8681_s6 = smov 4  }
 0x979   : > { %7981 = dma.vmem_to_hbm [thread:$0]  (%p8847_p4), %s11771_s2, 512, %s11776_s8, %s11780_s24, %s8680_s28, %s8680_s28, %s8681_s6  }
 0x97a PF: > { %s12296_s3 = sld [smem:[#allocation22_spill]] }
 0x97b   : > { %s12297_s25 = sld [smem:[#allocation19_spill]] }
 0x97c   : > { %s12298_s4 = sld [smem:[#allocation25_spill]] }
 0x980   : > { %p8018_p13 = scmp.ge.s32.totalorder %s12296_s3, 2 }
 0x981   : > { %s7279_s27 = sand.u32 1, %s12297_s25  }
 0x982   : > { %p12299_p0 = scmp.ne.s32.totalorder %s12298_s4, 0  ;;  %s7280_s5 = scalar_lea.sflag [#allocation4], %s7279_s27 }
 0x984   : > { %p8003_p12 = pnand %p8018_p13, %p12299_p0 }
 0x986   : > { %p8004_p2 = pneg %p8003_p12 }
 0x988   : > { %8639 = dma.done.wait (%p8004_p2), %s7280_s5, 512  }
 0x989   : > { %8641 = vsyncadd (%p8004_p2), %s7280_s5, 4294966784  ;;  %s41_s2 = sadd.s32 1, %s12296_s3   ;;  %s12300_s7 = sld [smem:[#allocation20_spill]] }
 0x98a   : > { %p38_p1 = scmp.ge.s32.totalorder %s41_s2, 4   ;;  %s12301_s27 = sld [smem:[#allocation26_spill]] }
 0x98b   : > { %s12302_s28 = sld [smem:[#allocation21_spill]]  ;;  %s12304_s5 = smov %s8648_s26 }
 0x98c   : > { %s12303_s6 = sld [smem:[#allocation23_spill]]  ;;  %40 = sbr.rel (!%p38_p1) target bundleno = 20 (0x14), region = 179 }
 0x98f   : > { %s12305_s26 = smov %s12300_s7 }
 0x991   :  { %7285 = vsyncpa [#allocation3], 1 }
 0x992   :  { %7287 = vsyncpa [#allocation3 + $0x1], 1 }
 0x993   :  { %7288 = vsyncpa [#allocation6], 1 }
 0x994   :  { %7289 = vsyncpa [#allocation9], 1 }
 0x995   :  { %7290 = vsyncpa [#allocation12], 1 }
 0x996   :  { %7291 = vsyncpa [#allocation4], 1 }
 0x997   :  { %7293 = vsyncpa [#allocation4 + $0x1], 1 }

</bundles_post_ra>
